<compile_context>
chip_gen: v5e
topology: v5e:2x2
jax: 0.10.0
libtpu: 0.0.40
codegen_flags: <defaults>
</compile_context>

<pallas_src>
import functools

import jax
import jax.numpy as jnp
import numpy as np
from jax.experimental import pallas as pl
from jax.experimental.pallas import tpu as pltpu


# ----------------------------------------------------------------------------
# Graph / parameter setup (plain JAX glue; mirrors cheb_polynomial_torch)
# ----------------------------------------------------------------------------
def build_cheb_polynomials(adj, K):
    """L_tilde = D - A (unnormalized Laplacian, zero-diagonal adj), then the
    Chebyshev recurrence exactly as written in the reference (elementwise *)."""
    deg = jnp.sum(adj, axis=1)
    L = jnp.diag(deg) - adj
    polys = [jnp.eye(adj.shape[0], dtype=adj.dtype), L]
    for _ in range(2, K):
        polys.append(2.0 * L * polys[-1] - polys[-2])  # elementwise, as in reference
    return jnp.stack(polys[:K], axis=0)  # (K, N, N)


# ----------------------------------------------------------------------------
# Fused kernel: cheb conv + ReLU + time conv + residual conv + ReLU + LayerNorm
# ----------------------------------------------------------------------------
def _mstgcn_fused_kernel(xf_ref, gcat_ref, wcat_ref, wtb_ref, wrb_ref,
                         params_ref, proj_ref, o_ref, *, K, Bt, N, Lsg, eps):
    # xf_ref:     (Bt*N, F_in*T)            bf16, lanes = f*T + t (PyTorch view)
    # gcat_ref:   (N, K*N)                  bf16, gcat[n, k*N+m] = T_k[m, n]
    # wcat_ref:   (F_in*T, K*F_chev*T)      bf16, K Theta blocks stacked on lanes
    # wtb_ref:    (F_chev*T, F_time*T_out)  bf16, block-banded 1x3 time conv
    # wrb_ref:    (F_in*T, F_time*T_out)    bf16, strided 1x1 residual conv
    # params_ref: (3, F_time*T_out)         f32, rows = [bt+br, gamma, beta]
    # proj_ref:   (F_time*T_out, F_time*T_out) f32, LayerNorm mean projector
    # o_ref:      (Bt*N, F_time*T_out)      f32, lanes = o*T_out + t (lane-dense)
    xf = xf_ref[...]

    # ---- stage 1: apply all K Theta_k at once (one lane-dense bf16 GEMM) ----
    y = jnp.dot(xf, wcat_ref[...], preferred_element_type=jnp.float32)
    ybf = y.astype(jnp.bfloat16)                                 # (Bt*N, K*Lsg)

    # ---- stage 2: graph conv, contraction stacked over (k, node) ----
    gcat = gcat_ref[...]
    sg_parts = []
    for b in range(Bt):                       # static unroll over the batch tile
        ystack = jnp.concatenate(
            [ybf[b * N:(b + 1) * N, k * Lsg:(k + 1) * Lsg] for k in range(K)],
            axis=0)                                              # (K*N, Lsg)
        sg_parts.append(jnp.dot(gcat, ystack,
                                preferred_element_type=jnp.float32))
    sg = jnp.concatenate(sg_parts, axis=0)                       # (Bt*N, Lsg)
    sg = jnp.maximum(sg, 0.0).astype(jnp.bfloat16)               # cheb-conv ReLU

    # ---- stage 3: time conv (1x3, stride) + residual (1x1, stride) + ReLU ----
    yt = jnp.dot(sg, wtb_ref[...], preferred_element_type=jnp.float32)
    yr = jnp.dot(xf, wrb_ref[...], preferred_element_type=jnp.float32)
    p = params_ref[...]                                          # f32 epilogue
    z = jnp.maximum(yt + yr + p[0:1, :], 0.0)

    # ---- stage 4: LayerNorm over F_time via one lane-dense projector GEMM ----
    proj = proj_ref[...]
    mu = jnp.dot(z, proj, preferred_element_type=jnp.float32)
    zc = z - mu
    var = jnp.dot(zc * zc, proj, preferred_element_type=jnp.float32)  # biased, like nn.LayerNorm
    zn = zc * jax.lax.rsqrt(var + eps)
    o_ref[...] = (zn * p[1:2, :] + p[2:3, :]).astype(o_ref.dtype)


def mstgcn_block_pallas(x, Tk, Theta, wt_conv, bt, wr_conv, br, gamma, beta,
                        *, time_strides=1, eps=1e-5, batch_tile=None,
                        single_buffer_weights=True):
    """x: (B, N, F_in, T) PyTorch layout. Returns (B, N, F_time, T_out)."""
    B, N, F_in, T = x.shape
    K, _, F_chev = Theta.shape
    F_time = wt_conv.shape[0]
    T_out = (T - 1) // time_strides + 1
    Lin, Lsg, Lout = F_in * T, F_chev * T, F_time * T_out

    # batch tile: largest divisor of B that is <= 8. Folds batches into the MXU
    # M dim and amortizes per-grid-step overhead; for larger B this still leaves
    # >=2 grid steps so both v7x TensorCores get work and the input pipeline
    # overlaps DMA with compute.
    if batch_tile is None:
        batch_tile = min(B, 8)
        while B % batch_tile:
            batch_tile -= 1
    Bt = batch_tile
    assert B % Bt == 0

    # ---- free-view input fold (lanes = f*T + t), bf16 MXU operands ----
    xf = x.reshape(B * N, Lin).astype(jnp.bfloat16)

    # ---- static block-structured weight matrices (wrapper glue) ----
    # Theta for all K, block-diagonal over time, stacked along lanes:
    # wcat[f*T+t, k*Lsg + c*T+u] = Theta[k,f,c] * delta(t,u)
    eyeT = np.eye(T, dtype=np.float32)
    wcat = jnp.einsum('tu,kfc->ftkcu', eyeT, Theta).reshape(Lin, K * Lsg)

    # time conv 1x3, padding 1, stride s -> block-banded matrix (f-major lanes)
    S_t = np.zeros((T, T_out, 3), np.float32)
    for to in range(T_out):
        for dt in range(3):
            ti = to * time_strides + dt - 1
            if 0 <= ti < T:
                S_t[ti, to, dt] = 1.0
    wtb = jnp.einsum('ijd,ocd->cioj', S_t, wt_conv[:, :, 0, :]).reshape(Lsg, Lout)

    # residual 1x1 conv, stride s -> strided block matrix
    S_r = np.zeros((T, T_out), np.float32)
    for to in range(T_out):
        S_r[to * time_strides, to] = 1.0
    wrb = jnp.einsum('ij,of->fioj', S_r, wr_conv[:, :, 0, 0]).reshape(Lin, Lout)

    # lane-concatenated (transposed) Chebyshev operators: gcat[n, k*N+m] = T_k[m, n]
    gcat = jnp.transpose(Tk, (2, 0, 1)).reshape(N, K * N)

    # biases / LN affine, broadcast over T_out lanes (lane index = o*T_out + t)
    params = jnp.stack([jnp.repeat(bt + br, T_out),
                        jnp.repeat(gamma, T_out),
                        jnp.repeat(beta, T_out)], axis=0).astype(jnp.float32)

    # LayerNorm mean projector over F_time channels (strided in lanes by T_out)
    proj = jnp.asarray(np.kron(np.ones((F_time, F_time), np.float32) / F_time,
                               np.eye(T_out, dtype=np.float32)), jnp.float32)

    gcat, wcat, wtb, wrb = (a.astype(jnp.bfloat16) for a in (gcat, wcat, wtb, wrb))

    def x_map(i):
        return (i, 0)

    def const_map(i):
        return (0, 0)

    def w_spec(shape):
        # grid-invariant weights: single-buffer them (no pointless double buffer)
        if single_buffer_weights:
            return pl.BlockSpec(shape, const_map, pipeline_mode=pl.Buffered(1))
        return pl.BlockSpec(shape, const_map)

    kernel = functools.partial(_mstgcn_fused_kernel,
                               K=K, Bt=Bt, N=N, Lsg=Lsg, eps=eps)
    out = pl.pallas_call(
        kernel,
        out_shape=jax.ShapeDtypeStruct((B * N, Lout), jnp.float32),
        grid_spec=pltpu.PrefetchScalarGridSpec(
            num_scalar_prefetch=0,
            grid=(B // Bt,),
            in_specs=[
                pl.BlockSpec((Bt * N, Lin), x_map),
                w_spec((N, K * N)),
                w_spec((Lin, K * Lsg)),
                w_spec((Lsg, Lout)),
                w_spec((Lin, Lout)),
                w_spec((3, Lout)),
                w_spec((Lout, Lout)),
            ],
            out_specs=pl.BlockSpec((Bt * N, Lout), x_map),
        ),
        compiler_params=pltpu.CompilerParams(
            dimension_semantics=("parallel",),
            vmem_limit_bytes=32 * 1024 * 1024),
    )(xf, gcat, wcat, wtb, wrb, params, proj)

    # free-view output unfold (lanes were o*T_out + t)
    return out.reshape(B, N, F_time, T_out)


# ----------------------------------------------------------------------------
# Pure-JAX reference (mirrors the PyTorch forward) for correctness check
# ----------------------------------------------------------------------------
def mstgcn_block_reference(x, Tk, Theta, wt_conv, bt, wr_conv, br, gamma, beta,
                           *, time_strides=1, eps=1e-5):
    sg = jnp.einsum('kmn,bmft,kfo->bnot', Tk, x, Theta)
    sg = jnp.maximum(sg, 0.0)                                    # (B, N, F_chev, T)

    inp = jnp.transpose(sg, (0, 2, 1, 3))                        # (B, F_chev, N, T)
    tc = jax.lax.conv_general_dilated(
        inp, wt_conv, window_strides=(1, time_strides),
        padding=((0, 0), (1, 1)), dimension_numbers=('NCHW', 'OIHW', 'NCHW'))
    tc = tc + bt[None, :, None, None]

    xr_in = jnp.transpose(x, (0, 2, 1, 3))                       # (B, F_in, N, T)
    rc = jax.lax.conv_general_dilated(
        xr_in, wr_conv, window_strides=(1, time_strides),
        padding=((0, 0), (0, 0)), dimension_numbers=('NCHW', 'OIHW', 'NCHW'))
    rc = rc + br[None, :, None, None]

    z = jnp.maximum(tc + rc, 0.0)                                # (B, F_time, N, T_out)
    z = jnp.transpose(z, (0, 3, 2, 1))                           # (B, T_out, N, F_time)
    mu = jnp.mean(z, axis=-1, keepdims=True)
    var = jnp.mean((z - mu) ** 2, axis=-1, keepdims=True)
    zn = (z - mu) / jnp.sqrt(var + eps) * gamma + beta
    return jnp.transpose(zn, (0, 2, 3, 1))                       # (B, N, F_time, T_out)


# ----------------------------------------------------------------------------
# Main
# ----------------------------------------------------------------------------
if __name__ == "__main__":
    B, N, F_in, T = 2, 16, 4, 8
    K = 3
    F_chev = 32       # nb_chev_filter
    F_time = 32       # nb_time_filter

    key = jax.random.PRNGKey(0)
    k0, k1, k2, k3, k4, k5, k6 = jax.random.split(key, 7)

    x = jax.random.normal(k0, (B, N, F_in, T), jnp.float32)

    # synthetic symmetric adjacency with zero diagonal (stands in for fusiongraph())
    adj_raw = jax.random.uniform(k1, (N, N), jnp.float32)
    adj = 0.1 * (adj_raw + adj_raw.T) * (1.0 - jnp.eye(N, dtype=jnp.float32))

    Theta = 0.1 * jax.random.normal(k2, (K, F_in, F_chev), jnp.float32)
    wt_conv = 0.1 * jax.random.normal(k3, (F_time, F_chev, 1, 3), jnp.float32)
    bt = 0.1 * jax.random.normal(k4, (F_time,), jnp.float32)
    wr_conv = 0.1 * jax.random.normal(k5, (F_time, F_in, 1, 1), jnp.float32)
    br = 0.1 * jax.random.normal(k6, (F_time,), jnp.float32)
    gamma = jnp.ones((F_time,), jnp.float32)     # nn.LayerNorm default init
    beta = jnp.zeros((F_time,), jnp.float32)

    Tk = build_cheb_polynomials(adj, K)          # (K, N, N)

    def run_pallas(time_strides):
        args = (x, Tk, Theta, wt_conv, bt, wr_conv, br, gamma, beta)
        try:
            return jax.block_until_ready(mstgcn_block_pallas(
                *args, time_strides=time_strides, single_buffer_weights=True))
        except Exception:
            # pipeline_mode=pl.Buffered(1) unsupported on this jax/libtpu ->
            # fall back to default (double-buffered) weight BlockSpecs.
            return jax.block_until_ready(mstgcn_block_pallas(
                *args, time_strides=time_strides, single_buffer_weights=False))

    for time_strides in (1, 2):
        out = run_pallas(time_strides)
        ref = jax.block_until_ready(mstgcn_block_reference(
            x, Tk, Theta, wt_conv, bt, wr_conv, br, gamma, beta,
            time_strides=time_strides))

        T_out = (T - 1) // time_strides + 1
        assert out.shape == (B, N, F_time, T_out), out.shape
        # bf16 MXU operands (f32 accumulation) bound per-element accuracy to
        # ~1e-2 after the 4-GEMM chain + LayerNorm; tolerance sized for that,
        # still tight enough to catch any layout / semantics error (O(1) off).
        np.testing.assert_allclose(np.asarray(out), np.asarray(ref),
                                   rtol=5e-2, atol=5e-2)

    print("KERNEL_OK")
</pallas_src>

<mosaic_0001>
module attributes {stable_mosaic.version = 11 : i64} {
  func.func @_mstgcn_fused_kernel(%arg0: i32, %arg1: memref<32x32xbf16, #tpu.memory_space<vmem>>, %arg2: memref<16x48xbf16, #tpu.memory_space<vmem>>, %arg3: memref<32x768xbf16, #tpu.memory_space<vmem>>, %arg4: memref<256x256xbf16, #tpu.memory_space<vmem>>, %arg5: memref<32x256xbf16, #tpu.memory_space<vmem>>, %arg6: memref<3x256xf32, #tpu.memory_space<vmem>>, %arg7: memref<256x256xf32, #tpu.memory_space<vmem>>, %arg8: memref<32x256xf32, #tpu.memory_space<vmem>>) attributes {dimension_semantics = [#tpu.dimension_semantics<parallel>], iteration_bounds = array<i64: 1>, scalar_prefetch = 0 : i64, scratch_operands = 0 : i64, tpu.core_type = #tpu.core_type<tc>, window_params = [{transform_indices = @transform_0, window_bounds = array<i64: 32, 32>}, {pipeline_mode = #tpu.pipeline_mode<synchronous>, transform_indices = @transform_1, window_bounds = array<i64: 16, 48>}, {pipeline_mode = #tpu.pipeline_mode<synchronous>, transform_indices = @transform_2, window_bounds = array<i64: 32, 768>}, {pipeline_mode = #tpu.pipeline_mode<synchronous>, transform_indices = @transform_3, window_bounds = array<i64: 256, 256>}, {pipeline_mode = #tpu.pipeline_mode<synchronous>, transform_indices = @transform_4, window_bounds = array<i64: 32, 256>}, {pipeline_mode = #tpu.pipeline_mode<synchronous>, transform_indices = @transform_5, window_bounds = array<i64: 3, 256>}, {pipeline_mode = #tpu.pipeline_mode<synchronous>, transform_indices = @transform_6, window_bounds = array<i64: 256, 256>}, {transform_indices = @transform_7, window_bounds = array<i64: 32, 256>}]} {
    %c0 = arith.constant 0 : index
    %c0_0 = arith.constant 0 : index
    %0 = vector.load %arg1[%c0, %c0_0] : memref<32x32xbf16, #tpu.memory_space<vmem>>, vector<32x32xbf16>
    %c0_1 = arith.constant 0 : index
    %c0_2 = arith.constant 0 : index
    %1 = vector.load %arg3[%c0_1, %c0_2] : memref<32x768xbf16, #tpu.memory_space<vmem>>, vector<32x768xbf16>
    %cst = arith.constant dense<0.000000e+00> : vector<32x768xf32>
    %2 = tpu.matmul %0, %1, %cst {dimension_numbers = #tpu.dot_dimension_numbers<[1], [0], [0], [1], [0, 0, 1, 1], [], []>} : vector<32x32xbf16>, vector<32x768xbf16>, vector<32x768xf32> -> vector<32x768xf32>
    %3 = arith.truncf %2 : vector<32x768xf32> to vector<32x768xbf16>
    %c0_3 = arith.constant 0 : index
    %c0_4 = arith.constant 0 : index
    %4 = vector.load %arg2[%c0_3, %c0_4] : memref<16x48xbf16, #tpu.memory_space<vmem>>, vector<16x48xbf16>
    %5 = vector.extract_strided_slice %3 {offsets = [0, 0], sizes = [16, 256], strides = [1, 1]} : vector<32x768xbf16> to vector<16x256xbf16>
    %6 = vector.extract_strided_slice %3 {offsets = [0, 256], sizes = [16, 256], strides = [1, 1]} : vector<32x768xbf16> to vector<16x256xbf16>
    %7 = vector.extract_strided_slice %3 {offsets = [0, 512], sizes = [16, 256], strides = [1, 1]} : vector<32x768xbf16> to vector<16x256xbf16>
    %8 = tpu.concatenate %5, %6, %7 in 0 : vector<16x256xbf16>, vector<16x256xbf16>, vector<16x256xbf16> -> vector<48x256xbf16>
    %cst_5 = arith.constant dense<0.000000e+00> : vector<16x256xf32>
    %9 = tpu.matmul %4, %8, %cst_5 {dimension_numbers = #tpu.dot_dimension_numbers<[1], [0], [0], [1], [0, 0, 1, 1], [], []>} : vector<16x48xbf16>, vector<48x256xbf16>, vector<16x256xf32> -> vector<16x256xf32>
    %10 = vector.extract_strided_slice %3 {offsets = [16, 0], sizes = [16, 256], strides = [1, 1]} : vector<32x768xbf16> to vector<16x256xbf16>
    %11 = vector.extract_strided_slice %3 {offsets = [16, 256], sizes = [16, 256], strides = [1, 1]} : vector<32x768xbf16> to vector<16x256xbf16>
    %12 = vector.extract_strided_slice %3 {offsets = [16, 512], sizes = [16, 256], strides = [1, 1]} : vector<32x768xbf16> to vector<16x256xbf16>
    %13 = tpu.concatenate %10, %11, %12 in 0 : vector<16x256xbf16>, vector<16x256xbf16>, vector<16x256xbf16> -> vector<48x256xbf16>
    %cst_6 = arith.constant dense<0.000000e+00> : vector<16x256xf32>
    %14 = tpu.matmul %4, %13, %cst_6 {dimension_numbers = #tpu.dot_dimension_numbers<[1], [0], [0], [1], [0, 0, 1, 1], [], []>} : vector<16x48xbf16>, vector<48x256xbf16>, vector<16x256xf32> -> vector<16x256xf32>
    %15 = tpu.concatenate %9, %14 in 0 : vector<16x256xf32>, vector<16x256xf32> -> vector<32x256xf32>
    %cst_7 = arith.constant 0.000000e+00 : f32
    %16 = vector.broadcast %cst_7 : f32 to vector<32x256xf32>
    %17 = arith.maximumf %15, %16 : vector<32x256xf32>
    %18 = arith.truncf %17 : vector<32x256xf32> to vector<32x256xbf16>
    %c0_8 = arith.constant 0 : index
    %c0_9 = arith.constant 0 : index
    %19 = vector.load %arg4[%c0_8, %c0_9] : memref<256x256xbf16, #tpu.memory_space<vmem>>, vector<256x256xbf16>
    %cst_10 = arith.constant dense<0.000000e+00> : vector<32x256xf32>
    %20 = tpu.matmul %18, %19, %cst_10 {dimension_numbers = #tpu.dot_dimension_numbers<[1], [0], [0], [1], [0, 0, 1, 1], [], []>} : vector<32x256xbf16>, vector<256x256xbf16>, vector<32x256xf32> -> vector<32x256xf32>
    %c0_11 = arith.constant 0 : index
    %c0_12 = arith.constant 0 : index
    %21 = vector.load %arg5[%c0_11, %c0_12] : memref<32x256xbf16, #tpu.memory_space<vmem>>, vector<32x256xbf16>
    %cst_13 = arith.constant dense<0.000000e+00> : vector<32x256xf32>
    %22 = tpu.matmul %0, %21, %cst_13 {dimension_numbers = #tpu.dot_dimension_numbers<[1], [0], [0], [1], [0, 0, 1, 1], [], []>} : vector<32x32xbf16>, vector<32x256xbf16>, vector<32x256xf32> -> vector<32x256xf32>
    %c0_14 = arith.constant 0 : index
    %c0_15 = arith.constant 0 : index
    %23 = vector.load %arg6[%c0_14, %c0_15] : memref<3x256xf32, #tpu.memory_space<vmem>>, vector<3x256xf32>
    %24 = arith.addf %20, %22 : vector<32x256xf32>
    %25 = vector.extract_strided_slice %23 {offsets = [0, 0], sizes = [1, 256], strides = [1, 1]} : vector<3x256xf32> to vector<1x256xf32>
    %26 = vector.broadcast %25 : vector<1x256xf32> to vector<32x256xf32>
    %27 = arith.addf %24, %26 : vector<32x256xf32>
    %cst_16 = arith.constant 0.000000e+00 : f32
    %28 = vector.broadcast %cst_16 : f32 to vector<32x256xf32>
    %29 = arith.maximumf %27, %28 : vector<32x256xf32>
    %c0_17 = arith.constant 0 : index
    %c0_18 = arith.constant 0 : index
    %30 = vector.load %arg7[%c0_17, %c0_18] : memref<256x256xf32, #tpu.memory_space<vmem>>, vector<256x256xf32>
    %cst_19 = arith.constant dense<0.000000e+00> : vector<32x256xf32>
    %31 = tpu.matmul %29, %30, %cst_19 {dimension_numbers = #tpu.dot_dimension_numbers<[1], [0], [0], [1], [0, 0, 1, 1], [], []>} : vector<32x256xf32>, vector<256x256xf32>, vector<32x256xf32> -> vector<32x256xf32>
    %32 = arith.subf %29, %31 : vector<32x256xf32>
    %33 = arith.mulf %32, %32 : vector<32x256xf32>
    %cst_20 = arith.constant dense<0.000000e+00> : vector<32x256xf32>
    %34 = tpu.matmul %33, %30, %cst_20 {dimension_numbers = #tpu.dot_dimension_numbers<[1], [0], [0], [1], [0, 0, 1, 1], [], []>} : vector<32x256xf32>, vector<256x256xf32>, vector<32x256xf32> -> vector<32x256xf32>
    %cst_21 = arith.constant 9.99999974E-6 : f32
    %35 = vector.broadcast %cst_21 : f32 to vector<32x256xf32>
    %36 = arith.addf %34, %35 : vector<32x256xf32>
    %37 = math.rsqrt %36 : vector<32x256xf32>
    %38 = arith.mulf %32, %37 : vector<32x256xf32>
    %39 = vector.extract_strided_slice %23 {offsets = [1, 0], sizes = [1, 256], strides = [1, 1]} : vector<3x256xf32> to vector<1x256xf32>
    %40 = vector.broadcast %39 : vector<1x256xf32> to vector<32x256xf32>
    %41 = arith.mulf %38, %40 : vector<32x256xf32>
    %42 = vector.extract_strided_slice %23 {offsets = [2, 0], sizes = [1, 256], strides = [1, 1]} : vector<3x256xf32> to vector<1x256xf32>
    %43 = vector.broadcast %42 : vector<1x256xf32> to vector<32x256xf32>
    %44 = arith.addf %41, %43 : vector<32x256xf32>
    %c0_22 = arith.constant 0 : index
    %c0_23 = arith.constant 0 : index
    %45 = vector.load %arg8[%c0_22, %c0_23] : memref<32x256xf32, #tpu.memory_space<vmem>>, vector<32x256xf32>
    tpu.vector_store %arg8[%c0_22, %c0_23], %44 {strides = array<i32>} : memref<32x256xf32, #tpu.memory_space<vmem>>, vector<32x256xf32>,
    return
  }
  func.func @transform_0(%arg0: i32) -> (i32, i32) {
    %c0_i32 = arith.constant 0 : i32
    %c0_i32_0 = arith.constant 0 : i32
    return %arg0, %c0_i32 : i32, i32
  }
  func.func @transform_1(%arg0: i32) -> (i32, i32) {
    %c0_i32 = arith.constant 0 : i32
    %c0_i32_0 = arith.constant 0 : i32
    %c0_i32_1 = arith.constant 0 : i32
    return %c0_i32, %c0_i32_0 : i32, i32
  }
  func.func @transform_2(%arg0: i32) -> (i32, i32) {
    %c0_i32 = arith.constant 0 : i32
    %c0_i32_0 = arith.constant 0 : i32
    %c0_i32_1 = arith.constant 0 : i32
    return %c0_i32, %c0_i32_0 : i32, i32
  }
  func.func @transform_3(%arg0: i32) -> (i32, i32) {
    %c0_i32 = arith.constant 0 : i32
    %c0_i32_0 = arith.constant 0 : i32
    %c0_i32_1 = arith.constant 0 : i32
    return %c0_i32, %c0_i32_0 : i32, i32
  }
  func.func @transform_4(%arg0: i32) -> (i32, i32) {
    %c0_i32 = arith.constant 0 : i32
    %c0_i32_0 = arith.constant 0 : i32
    %c0_i32_1 = arith.constant 0 : i32
    return %c0_i32, %c0_i32_0 : i32, i32
  }
  func.func @transform_5(%arg0: i32) -> (i32, i32) {
    %c0_i32 = arith.constant 0 : i32
    %c0_i32_0 = arith.constant 0 : i32
    %c0_i32_1 = arith.constant 0 : i32
    return %c0_i32, %c0_i32_0 : i32, i32
  }
  func.func @transform_6(%arg0: i32) -> (i32, i32) {
    %c0_i32 = arith.constant 0 : i32
    %c0_i32_0 = arith.constant 0 : i32
    %c0_i32_1 = arith.constant 0 : i32
    return %c0_i32, %c0_i32_0 : i32, i32
  }
  func.func @transform_7(%arg0: i32) -> (i32, i32) {
    %c0_i32 = arith.constant 0 : i32
    %c0_i32_0 = arith.constant 0 : i32
    return %arg0, %c0_i32 : i32, i32
  }
}

module attributes {stable_mosaic.version = 11 : i64} {
  func.func @_mstgcn_fused_kernel(%arg0: i32, %arg1: memref<32x32xbf16, #tpu.memory_space<vmem>>, %arg2: memref<16x48xbf16, #tpu.memory_space<vmem>>, %arg3: memref<32x768xbf16, #tpu.memory_space<vmem>>, %arg4: memref<256x256xbf16, #tpu.memory_space<vmem>>, %arg5: memref<32x256xbf16, #tpu.memory_space<vmem>>, %arg6: memref<3x256xf32, #tpu.memory_space<vmem>>, %arg7: memref<256x256xf32, #tpu.memory_space<vmem>>, %arg8: memref<32x256xf32, #tpu.memory_space<vmem>>) attributes {dimension_semantics = [#tpu.dimension_semantics<parallel>], iteration_bounds = array<i64: 1>, scalar_prefetch = 0 : i64, scratch_operands = 0 : i64, tpu.core_type = #tpu.core_type<tc>, window_params = [{transform_indices = @transform_0, window_bounds = array<i64: 32, 32>}, {pipeline_mode = #tpu.pipeline_mode<synchronous>, transform_indices = @transform_1, window_bounds = array<i64: 16, 48>}, {pipeline_mode = #tpu.pipeline_mode<synchronous>, transform_indices = @transform_2, window_bounds = array<i64: 32, 768>}, {pipeline_mode = #tpu.pipeline_mode<synchronous>, transform_indices = @transform_3, window_bounds = array<i64: 256, 256>}, {pipeline_mode = #tpu.pipeline_mode<synchronous>, transform_indices = @transform_4, window_bounds = array<i64: 32, 256>}, {pipeline_mode = #tpu.pipeline_mode<synchronous>, transform_indices = @transform_5, window_bounds = array<i64: 3, 256>}, {pipeline_mode = #tpu.pipeline_mode<synchronous>, transform_indices = @transform_6, window_bounds = array<i64: 256, 256>}, {transform_indices = @transform_7, window_bounds = array<i64: 32, 256>}]} {
    %c0 = arith.constant 0 : index
    %c0_0 = arith.constant 0 : index
    %0 = vector.load %arg1[%c0, %c0_0] : memref<32x32xbf16, #tpu.memory_space<vmem>>, vector<32x32xbf16>
    %c0_1 = arith.constant 0 : index
    %c0_2 = arith.constant 0 : index
    %1 = vector.load %arg3[%c0_1, %c0_2] : memref<32x768xbf16, #tpu.memory_space<vmem>>, vector<32x768xbf16>
    %cst = arith.constant dense<0.000000e+00> : vector<32x768xf32>
    %2 = tpu.matmul %0, %1, %cst {dimension_numbers = #tpu.dot_dimension_numbers<[1], [0], [0], [1], [0, 0, 1, 1], [], []>} : vector<32x32xbf16>, vector<32x768xbf16>, vector<32x768xf32> -> vector<32x768xf32>
    %3 = arith.truncf %2 : vector<32x768xf32> to vector<32x768xbf16>
    %c0_3 = arith.constant 0 : index
    %c0_4 = arith.constant 0 : index
    %4 = vector.load %arg2[%c0_3, %c0_4] : memref<16x48xbf16, #tpu.memory_space<vmem>>, vector<16x48xbf16>
    %5 = vector.extract_strided_slice %3 {offsets = [0, 0], sizes = [16, 256], strides = [1, 1]} : vector<32x768xbf16> to vector<16x256xbf16>
    %6 = vector.extract_strided_slice %3 {offsets = [0, 256], sizes = [16, 256], strides = [1, 1]} : vector<32x768xbf16> to vector<16x256xbf16>
    %7 = vector.extract_strided_slice %3 {offsets = [0, 512], sizes = [16, 256], strides = [1, 1]} : vector<32x768xbf16> to vector<16x256xbf16>
    %8 = tpu.concatenate %5, %6, %7 in 0 : vector<16x256xbf16>, vector<16x256xbf16>, vector<16x256xbf16> -> vector<48x256xbf16>
    %cst_5 = arith.constant dense<0.000000e+00> : vector<16x256xf32>
    %9 = tpu.matmul %4, %8, %cst_5 {dimension_numbers = #tpu.dot_dimension_numbers<[1], [0], [0], [1], [0, 0, 1, 1], [], []>} : vector<16x48xbf16>, vector<48x256xbf16>, vector<16x256xf32> -> vector<16x256xf32>
    %10 = vector.extract_strided_slice %3 {offsets = [16, 0], sizes = [16, 256], strides = [1, 1]} : vector<32x768xbf16> to vector<16x256xbf16>
    %11 = vector.extract_strided_slice %3 {offsets = [16, 256], sizes = [16, 256], strides = [1, 1]} : vector<32x768xbf16> to vector<16x256xbf16>
    %12 = vector.extract_strided_slice %3 {offsets = [16, 512], sizes = [16, 256], strides = [1, 1]} : vector<32x768xbf16> to vector<16x256xbf16>
    %13 = tpu.concatenate %10, %11, %12 in 0 : vector<16x256xbf16>, vector<16x256xbf16>, vector<16x256xbf16> -> vector<48x256xbf16>
    %cst_6 = arith.constant dense<0.000000e+00> : vector<16x256xf32>
    %14 = tpu.matmul %4, %13, %cst_6 {dimension_numbers = #tpu.dot_dimension_numbers<[1], [0], [0], [1], [0, 0, 1, 1], [], []>} : vector<16x48xbf16>, vector<48x256xbf16>, vector<16x256xf32> -> vector<16x256xf32>
    %15 = tpu.concatenate %9, %14 in 0 : vector<16x256xf32>, vector<16x256xf32> -> vector<32x256xf32>
    %cst_7 = arith.constant 0.000000e+00 : f32
    %16 = vector.broadcast %cst_7 : f32 to vector<32x256xf32>
    %17 = arith.maximumf %15, %16 : vector<32x256xf32>
    %18 = arith.truncf %17 : vector<32x256xf32> to vector<32x256xbf16>
    %c0_8 = arith.constant 0 : index
    %c0_9 = arith.constant 0 : index
    %19 = vector.load %arg4[%c0_8, %c0_9] : memref<256x256xbf16, #tpu.memory_space<vmem>>, vector<256x256xbf16>
    %cst_10 = arith.constant dense<0.000000e+00> : vector<32x256xf32>
    %20 = tpu.matmul %18, %19, %cst_10 {dimension_numbers = #tpu.dot_dimension_numbers<[1], [0], [0], [1], [0, 0, 1, 1], [], []>} : vector<32x256xbf16>, vector<256x256xbf16>, vector<32x256xf32> -> vector<32x256xf32>
    %c0_11 = arith.constant 0 : index
    %c0_12 = arith.constant 0 : index
    %21 = vector.load %arg5[%c0_11, %c0_12] : memref<32x256xbf16, #tpu.memory_space<vmem>>, vector<32x256xbf16>
    %cst_13 = arith.constant dense<0.000000e+00> : vector<32x256xf32>
    %22 = tpu.matmul %0, %21, %cst_13 {dimension_numbers = #tpu.dot_dimension_numbers<[1], [0], [0], [1], [0, 0, 1, 1], [], []>} : vector<32x32xbf16>, vector<32x256xbf16>, vector<32x256xf32> -> vector<32x256xf32>
    %c0_14 = arith.constant 0 : index
    %c0_15 = arith.constant 0 : index
    %23 = vector.load %arg6[%c0_14, %c0_15] : memref<3x256xf32, #tpu.memory_space<vmem>>, vector<3x256xf32>
    %24 = arith.addf %20, %22 : vector<32x256xf32>
    %25 = vector.extract_strided_slice %23 {offsets = [0, 0], sizes = [1, 256], strides = [1, 1]} : vector<3x256xf32> to vector<1x256xf32>
    %26 = vector.broadcast %25 : vector<1x256xf32> to vector<32x256xf32>
    %27 = arith.addf %24, %26 : vector<32x256xf32>
    %cst_16 = arith.constant 0.000000e+00 : f32
    %28 = vector.broadcast %cst_16 : f32 to vector<32x256xf32>
    %29 = arith.maximumf %27, %28 : vector<32x256xf32>
    %c0_17 = arith.constant 0 : index
    %c0_18 = arith.constant 0 : index
    %30 = vector.load %arg7[%c0_17, %c0_18] : memref<256x256xf32, #tpu.memory_space<vmem>>, vector<256x256xf32>
    %cst_19 = arith.constant dense<0.000000e+00> : vector<32x256xf32>
    %31 = tpu.matmul %29, %30, %cst_19 {dimension_numbers = #tpu.dot_dimension_numbers<[1], [0], [0], [1], [0, 0, 1, 1], [], []>} : vector<32x256xf32>, vector<256x256xf32>, vector<32x256xf32> -> vector<32x256xf32>
    %32 = arith.subf %29, %31 : vector<32x256xf32>
    %33 = arith.mulf %32, %32 : vector<32x256xf32>
    %cst_20 = arith.constant dense<0.000000e+00> : vector<32x256xf32>
    %34 = tpu.matmul %33, %30, %cst_20 {dimension_numbers = #tpu.dot_dimension_numbers<[1], [0], [0], [1], [0, 0, 1, 1], [], []>} : vector<32x256xf32>, vector<256x256xf32>, vector<32x256xf32> -> vector<32x256xf32>
    %cst_21 = arith.constant 9.99999974E-6 : f32
    %35 = vector.broadcast %cst_21 : f32 to vector<32x256xf32>
    %36 = arith.addf %34, %35 : vector<32x256xf32>
    %37 = math.rsqrt %36 : vector<32x256xf32>
    %38 = arith.mulf %32, %37 : vector<32x256xf32>
    %39 = vector.extract_strided_slice %23 {offsets = [1, 0], sizes = [1, 256], strides = [1, 1]} : vector<3x256xf32> to vector<1x256xf32>
    %40 = vector.broadcast %39 : vector<1x256xf32> to vector<32x256xf32>
    %41 = arith.mulf %38, %40 : vector<32x256xf32>
    %42 = vector.extract_strided_slice %23 {offsets = [2, 0], sizes = [1, 256], strides = [1, 1]} : vector<3x256xf32> to vector<1x256xf32>
    %43 = vector.broadcast %42 : vector<1x256xf32> to vector<32x256xf32>
    %44 = arith.addf %41, %43 : vector<32x256xf32>
    %c0_22 = arith.constant 0 : index
    %c0_23 = arith.constant 0 : index
    %45 = vector.load %arg8[%c0_22, %c0_23] : memref<32x256xf32, #tpu.memory_space<vmem>>, vector<32x256xf32>
    tpu.vector_store %arg8[%c0_22, %c0_23], %44 {strides = array<i32>} : memref<32x256xf32, #tpu.memory_space<vmem>>, vector<32x256xf32>,
    return
  }
  func.func @transform_0(%arg0: i32) -> (i32, i32) {
    %c0_i32 = arith.constant 0 : i32
    %c0_i32_0 = arith.constant 0 : i32
    return %arg0, %c0_i32 : i32, i32
  }
  func.func @transform_1(%arg0: i32) -> (i32, i32) {
    %c0_i32 = arith.constant 0 : i32
    %c0_i32_0 = arith.constant 0 : i32
    %c0_i32_1 = arith.constant 0 : i32
    return %c0_i32, %c0_i32_0 : i32, i32
  }
  func.func @transform_2(%arg0: i32) -> (i32, i32) {
    %c0_i32 = arith.constant 0 : i32
    %c0_i32_0 = arith.constant 0 : i32
    %c0_i32_1 = arith.constant 0 : i32
    return %c0_i32, %c0_i32_0 : i32, i32
  }
  func.func @transform_3(%arg0: i32) -> (i32, i32) {
    %c0_i32 = arith.constant 0 : i32
    %c0_i32_0 = arith.constant 0 : i32
    %c0_i32_1 = arith.constant 0 : i32
    return %c0_i32, %c0_i32_0 : i32, i32
  }
  func.func @transform_4(%arg0: i32) -> (i32, i32) {
    %c0_i32 = arith.constant 0 : i32
    %c0_i32_0 = arith.constant 0 : i32
    %c0_i32_1 = arith.constant 0 : i32
    return %c0_i32, %c0_i32_0 : i32, i32
  }
  func.func @transform_5(%arg0: i32) -> (i32, i32) {
    %c0_i32 = arith.constant 0 : i32
    %c0_i32_0 = arith.constant 0 : i32
    %c0_i32_1 = arith.constant 0 : i32
    return %c0_i32, %c0_i32_0 : i32, i32
  }
  func.func @transform_6(%arg0: i32) -> (i32, i32) {
    %c0_i32 = arith.constant 0 : i32
    %c0_i32_0 = arith.constant 0 : i32
    %c0_i32_1 = arith.constant 0 : i32
    return %c0_i32, %c0_i32_0 : i32, i32
  }
  func.func @transform_7(%arg0: i32) -> (i32, i32) {
    %c0_i32 = arith.constant 0 : i32
    %c0_i32_0 = arith.constant 0 : i32
    return %arg0, %c0_i32 : i32, i32
  }
}

</mosaic_0001>

<bundles_post_ra>
// kernel: tpu_custom_call.1
= control target key start
LH: loop header
LB: loop body
LE: loop exit
PB: predicated region body
PF: predicated region fallthrough
CT: control target
= control target key end

     0   :  { %12 = vsyncpa [#allocation3], 0  ;;  %s2448_s0 = inlined_call_operand.hbm [shape: bf16[32,32], index: 0, kind: input, shape index: {}]   ;;  %s2449_s1 = inlined_call_operand.hbm [shape: bf16[16,48], index: 1, kind: input, shape index: {}]   ;;  %s2450_s2 = inlined_call_operand.hbm [shape: bf16[32,768], index: 2, kind: input, shape index: {}]   ;;  %s2451_s3 = inlined_call_operand.hbm [shape: bf16[256,256], index: 3, kind: input, shape index: {}]   ;;  %s2452_s4 = inlined_call_operand.hbm [shape: bf16[32,256], index: 4, kind: input, shape index: {}]   ;;  %s2453_s5 = inlined_call_operand.hbm [shape: f32[3,256], index: 5, kind: input, shape index: {}]   ;;  %s2454_s6 = inlined_call_operand.hbm [shape: f32[256,256], index: 6, kind: input, shape index: {}]   ;;  %s2455_s7 = inlined_call_operand.hbm [shape: f32[32,256], index: 7, kind: output, shape index: {}]  }
   0x1   :  { %13 = vsyncpa [#allocation6], 0 }
   0x2   :  { %14 = vsyncpa [#allocation9], 0 }
   0x3   :  { %15 = vsyncpa [#allocation12], 0 }
   0x4   :  { %16 = vsyncpa [#allocation4], 0  ;;  %s34_s26 = sshll.u32 %s2449_s1, 4  ;;  %s1846_s27 = smov [#allocation5]   ;;  %s35_s26 = int_to_ptr.hbm [resolvable:$true] %s34_s26 }
   0x5   :  { %s36_s28 = sshll.u32 %s1846_s27, 4  ;;  %s60_s8 = sshll.u32 %s2451_s3, 4  ;;  %s37_s28 = int_to_ptr.vmem [resolvable:$true] %s36_s28  ;;  %s61_s8 = int_to_ptr.hbm [resolvable:$true] %s60_s8 }
   0x6   :  { %s1847_s9 = smov 64   ;;  %s1848_s10 = smov 4  }
   0x7   :  { %42 = dma.hbm_to_vmem [thread:$0]  %s35_s26, 128, %s37_s28, [#allocation6], %s1847_s9, %s1847_s9, %s1848_s10  }
   0x8   :  { %s1849_s11 = smov [#allocation8]   ;;  %s1850_s13 = smov 128  }
   0x9   :  { %s62_s12 = sshll.u32 %s1849_s11, 4  ;;  %s1851_s14 = smov 8   ;;  %s63_s12 = int_to_ptr.vmem [resolvable:$true] %s62_s12 }
   0xa   :  { %68 = dma.hbm_to_vmem [thread:$0]  %s61_s8, 4096, %s63_s12, [#allocation9], %s1850_s13, %s1850_s13, %s1851_s14  }
   0xb   :  { %s87_s16 = sshll.u32 %s2453_s5, 4  ;;  %s1852_s17 = smov [#allocation11]   ;;  %s88_s16 = int_to_ptr.hbm [resolvable:$true] %s87_s16 }
   0xc   :  { %s89_s3 = sshll.u32 %s1852_s17, 4  ;;  %s21_s20 = sshll.u32 %s2448_s0, 4  ;;  %s90_s3 = int_to_ptr.vmem [resolvable:$true] %s89_s3  ;;  %s22_s20 = int_to_ptr.hbm [resolvable:$true] %s21_s20 }
   0xd   :  { %92 = dma.hbm_to_vmem [thread:$0]  %s88_s16, 128, %s90_s3, [#allocation12]  }
   0xe   :  { %s1853_s21 = smov [#allocation2]   ;;  %s47_s25 = sshll.u32 %s2450_s2, 4  ;;  %s48_s25 = int_to_ptr.hbm [resolvable:$true] %s47_s25 }
   0xf   :  { %s23_s22 = sshll.u32 %s1853_s21, 4  ;;  %s1854_s5 = smov [#allocation7]   ;;  %s24_s22 = int_to_ptr.vmem [resolvable:$true] %s23_s22 }
  0x10   :  { %29 = dma.hbm_to_vmem [thread:$0]  %s22_s20, 256, %s24_s22, [#allocation3], %s1847_s9, %s1847_s9, %s1848_s10  }
  0x11   :  { %s49_s26 = sshll.u32 %s1854_s5, 4  ;;  %s73_s29 = sshll.u32 %s2452_s4, 4  ;;  %s50_s26 = int_to_ptr.vmem [resolvable:$true] %s49_s26  ;;  %s74_s29 = int_to_ptr.hbm [resolvable:$true] %s73_s29 }
  0x12   :  { %s1855_s30 = smov 384   ;;  %s1856_s0 = smov 24  }
  0x13   :  { %55 = dma.hbm_to_vmem [thread:$0]  %s48_s25, 1536, %s50_s26, [#allocation6], %s1855_s30, %s1855_s30, %s1856_s0  }
  0x14   :  { %s1857_s8 = smov [#allocation10]   ;;  %s97_s2 = sshll.u32 %s2454_s6, 4  ;;  %s98_s2 = int_to_ptr.hbm [resolvable:$true] %s97_s2 }
  0x15   :  { %s75_s11 = sshll.u32 %s1857_s8, 4  ;;  %s1858_s9 = smov [#allocation13]   ;;  %s76_s11 = int_to_ptr.vmem [resolvable:$true] %s75_s11 }
  0x16   :  { %81 = dma.hbm_to_vmem [thread:$0]  %s74_s29, 512, %s76_s11, [#allocation9], %s1850_s13, %s1850_s13, %s1851_s14  }
  0x17   :  { %s99_s10 = sshll.u32 %s1858_s9, 4  ;;  %s1859_s4 = smov 256   ;;  %s100_s10 = int_to_ptr.vmem [resolvable:$true] %s99_s10 }
  0x18   :  { %s1860_s15 = smov 16  }
  0x19   :  { %105 = dma.hbm_to_vmem [thread:$0]  %s98_s2, 8192, %s100_s10, [#allocation12], %s1859_s4, %s1859_s4, %s1860_s15  }
  0x1a   :  { %1836 = dma.done.wait [#allocation3], 256  }
  0x1b   :  { %1837 = vsyncadd [#allocation3], 4294967040 }
  0x1c   :  { %1838 = dma.done.wait [#allocation6], 1664  }
  0x1d   :  { %1839 = vsyncadd [#allocation6], 4294965632 }
  0x1e   :  { %1840 = dma.done.wait [#allocation9], 4608  }
  0x1f   :  { %1841 = vsyncadd [#allocation9], 4294962688 }
  0x20   :  { %1842 = dma.done.wait [#allocation12], 8320  }
  0x21   :  { %1843 = vsyncadd [#allocation12], 4294958976  ;;  %v1339_v0 = vld [vmem:[#allocation7 + $0x30] sm:$0xf]  ;;  %v1540_v1 = vld [vmem:[#allocation7 + $0x44] sm:$0xf0] }
  0x22   :  { %v1537_v2 = vld [vmem:[#allocation7 + $0x34] sm:$0xf]  ;;  %v1340_v3 = vor.u32 %v1540_v1, %v1339_v0  ;;  %v1341_v4 = vld [vmem:[#allocation7 + $0x48] sm:$0xf0]  ;;  %v1315_v5 = vld [vmem:[#allocation7] sm:$0xf] }
  0x23   :  { %v1534_v6 = vld [vmem:[#allocation7 + $0x14] sm:$0xf0]  ;;  %v1344_v7 = vor.u32 %v1537_v2, %v1341_v4  ;;  %v1531_v8 = vld [vmem:[#allocation7 + $0x4] sm:$0xf]  ;;  %v1317_v9 = vld [vmem:[#allocation7 + $0x18] sm:$0xf0] }
  0x24   :  { %234 = vmatpush.bf16.msra.mxu0 %v1340_v3  ;;  %v1316_v10 = vor.u32 %v1534_v6, %v1315_v5  ;;  %vm221_vm0 = vcmask 261120   ;;  %v1355_v11 = vld [vmem:[#allocation7 + $0x40] sm:$0xf]  ;;  %v1542_v12 = vld [vmem:[#allocation7 + $0x54] sm:$0xf0]  ;;  %v1320_v13 = vor.u32 %v1531_v8, %v1317_v9  ;;  %v1932_v14 = vld [vmem:[#allocation2] sm:$0xff] }
  0x25   :  { %253 = vmatpush.bf16.msra.mxu1 %v1344_v7  ;;  %v1356_v15 = vor.u32 %v1542_v12, %v1355_v11  ;;  %v1539_v16 = vld [vmem:[#allocation7 + $0x44] sm:$0xf]  ;;  %v1357_v17 = vld [vmem:[#allocation7 + $0x58] sm:$0xf0]  ;;  %v1347_v18 = vld [vmem:[#allocation7 + $0x38] sm:$0xf] }
  0x26   :  { %v1360_v19 = vor.u32 %v1539_v16, %v1357_v17  ;;  %v1541_v20 = vld [vmem:[#allocation7 + $0x4c] sm:$0xf0]  ;;  %v1538_v21 = vld [vmem:[#allocation7 + $0x3c] sm:$0xf]  ;;  %v1349_v22 = vld [vmem:[#allocation7 + $0x50] sm:$0xf0] }
  0x27   :  { %v1348_v23 = vor.u32 %v1541_v20, %v1347_v18  ;;  %v1352_v24 = vor.u32 %v1538_v21, %v1349_v22  ;;  %v1323_v25 = vld [vmem:[#allocation7 + $0x8] sm:$0xf]  ;;  %v1535_v26 = vld [vmem:[#allocation7 + $0x1c] sm:$0xf0]  ;;  %v1532_v27 = vld [vmem:[#allocation7 + $0xc] sm:$0xf] }
  0x28   :  { %235 = vmatpush.bf16.msra.mxu0 %v1316_v10  ;;  %v1325_v28 = vld [vmem:[#allocation7 + $0x20] sm:$0xf0]  ;;  %v1331_v29 = vld [vmem:[#allocation7 + $0x10] sm:$0xf]  ;;  %v1536_v30 = vld [vmem:[#allocation7 + $0x24] sm:$0xf0]  ;;  %v1324_v34 = vor.u32 %v1535_v26, %v1323_v25 }
  0x29   :  { %254 = vmatpush.bf16.msra.mxu1 %v1320_v13  ;;  %v1332_v31 = vor.u32 %v1536_v30, %v1331_v29  ;;  %v1533_v32 = vld [vmem:[#allocation7 + $0x14] sm:$0xf]  ;;  %v1333_v33 = vld [vmem:[#allocation7 + $0x28] sm:$0xf0]  ;;  %272 = vmatpush.bf16.msra.mxu2 %v1348_v23  ;;  %v1328_v36 = vor.u32 %v1532_v27, %v1325_v28  ;;  %v1391_v60 = vld [vmem:[#allocation10 + $0x10] sm:$0xf] }
  0x2a   :  { %v1336_v35 = vor.u32 %v1533_v32, %v1333_v33  ;;  %291 = vmatpush.bf16.msra.mxu3 %v1352_v24  ;;  %v1942_v37 = vld [vmem:[#allocation2 + $0x8] sm:$0xff]  ;;  %v1579_v61 = vld [vmem:[#allocation10 + $0x14] sm:$0xf0]  ;;  %v1393_v3 = vld [vmem:[#allocation10 + $0x18] sm:$0xf0]  ;;  %vm391_vm1 = vcmask 392192  }
  0x2b   :  { %1361 = vmatmul.msk.bf16.vlgmr.msra.gmra.mxu0 %vm221_vm0, %v1932_v14  ;;  %v1578_v62 = vld [vmem:[#allocation10 + $0x14] sm:$0xf]  ;;  %v1392_v2 = vor.u32 %v1579_v61, %v1391_v60  ;;  %v1383_v4 = vld [vmem:[#allocation10] sm:$0xf]  ;;  %v1577_v5 = vld [vmem:[#allocation10 + $0x4] sm:$0xf0] }
  0x2c   :  { %310 = vmatpush.bf16.msrb.mxu0 %v1356_v15  ;;  %1363 = vmatmul.msk.bf16.vlgmr.msra.gmra.mxu1 %vm221_vm0, %v1932_v14  ;;  %v1396_v11 = vor.u32 %v1578_v62, %v1393_v3  ;;  %v1576_v12 = vld [vmem:[#allocation10 + $0x4] sm:$0xf]  ;;  %v1385_v13 = vld [vmem:[#allocation10 + $0x8] sm:$0xf0]  ;;  %v1384_v18 = vor.u32 %v1577_v5, %v1383_v4  ;;  %v1461_v20 = vld [vmem:[#allocation8 + $0x78] sm:$0xf0] }
  0x2d   :  { %329 = vmatpush.bf16.msrb.mxu1 %v1360_v19  ;;  %273 = vmatpush.bf16.msra.mxu2 %v1324_v34  ;;  %v1558_v19 = vld [vmem:[#allocation8 + $0x74] sm:$0xf]  ;;  %v1388_v21 = vor.u32 %v1576_v12, %v1385_v13  ;;  %v1525_v26 = vld [vmem:[#allocation8 + $0xf8] sm:$0xf0]  ;;  %v1556_v29 = vld [vmem:[#allocation8 + $0x64] sm:$0xf] }
  0x2e   :  { %292 = vmatpush.bf16.msra.mxu3 %v1328_v36  ;;  %v1464_v22 = vor.u32 %v1558_v19, %v1461_v20  ;;  %v1574_v23 = vld [vmem:[#allocation8 + $0xf4] sm:$0xf]  ;;  %v1453_v30 = vld [vmem:[#allocation8 + $0x68] sm:$0xf0]  ;;  %v1552_v61 = vld [vmem:[#allocation8 + $0x44] sm:$0xf] }
  0x2f   :  { %v1528_v28 = vor.u32 %v1574_v23, %v1525_v26  ;;  %v1517_v36 = vld [vmem:[#allocation8 + $0xe8] sm:$0xf0]  ;;  %v1523_v23 = vld [vmem:[#allocation8 + $0xf0] sm:$0xf]  ;;  %s1861_s6 = smov [#allocation14]   ;;  %s1289_s17 = sshll.u32 %s2455_s7, 4  ;;  %s1290_s17 = int_to_ptr.hbm [resolvable:$true] %s1289_s17 }
  0x30   :  { %311 = vmatpush.bf16.msrb.mxu0 %v1332_v31  ;;  %1365 = vmatmul.msk.bf16.vlgmr.msra.gmra.mxu2 %vm221_vm0, %v1932_v14  ;;  %s1287_s13 = sshll.u32 %s1861_s6, 4  ;;  %s1288_s13 = int_to_ptr.vmem [resolvable:$true] %s1287_s13 }
  0x31   :  { %330 = vmatpush.bf16.msrb.mxu1 %v1336_v35  ;;  %1367 = vmatmul.msk.bf16.vlgmr.msra.gmra.mxu3 %vm221_vm0, %v1932_v14  ;;  %v1572_v35 = vld [vmem:[#allocation8 + $0xe4] sm:$0xf] }
  0x34   :  { %555 = vmatpush.bf16.msra.mxu0 %v1392_v2 }
  0x35   :  { %574 = vmatpush.bf16.msra.mxu1 %v1396_v11 }
  0x38   :  { %556 = vmatpush.bf16.msra.mxu0 %v1384_v18  ;;  %v1459_v18 = vld [vmem:[#allocation8 + $0x70] sm:$0xf] }
  0x39   :  { %575 = vmatpush.bf16.msra.mxu1 %v1388_v21 }
  0x3b   :  { %1362 = vmatmul.msk.bf16.gmra.mxu0 %vm221_vm0, %v1942_v37 }
  0x3c   :  { %1364 = vmatmul.msk.bf16.gmra.mxu1 %vm221_vm0, %v1942_v37 }
  0x40   :  { %1366 = vmatmul.msk.bf16.gmra.mxu2 %vm221_vm0, %v1942_v37 }
  0x41   :  { %1368 = vmatmul.msk.bf16.gmra.mxu3 %vm221_vm0, %v1942_v37 }
  0x4b   :  { %1369 = vmatmul.msk.bf16.vlgmr.msrb.gmra.mxu0 %vm221_vm0, %v1932_v14 }
  0x4c   :  { %1371 = vmatmul.msk.bf16.vlgmr.msrb.gmra.mxu1 %vm221_vm0, %v1932_v14  ;;  %786 = vmatpush.bf16.msrb.mxu0 %v1464_v22  ;;  %v1559_v22 = vld [vmem:[#allocation8 + $0x74] sm:$0xf0] }
  0x4d   :  { %805 = vmatpush.bf16.msrb.mxu1 %v1528_v28  ;;  %v1460_v28 = vor.u32 %v1559_v22, %v1459_v18 }
  0x5b   :  { %1370 = vmatmul.msk.bf16.gmra.mxu0 %vm221_vm0, %v1942_v37 }
  0x5c   :  { %1372 = vmatmul.msk.bf16.gmra.mxu1 %vm221_vm0, %v1942_v37 }
  0x6b   :  { %1397 = vmatmul.msk.bf16.vlgmr.msra.gmra.mxu0 %vm221_vm0, %v1932_v14 }
  0x6c   :  { %1399 = vmatmul.msk.bf16.vlgmr.msra.gmra.mxu1 %vm221_vm0, %v1932_v14 }
  0x7b   :  { %1398 = vmatmul.msk.bf16.gmra.mxu0 %vm221_vm0, %v1942_v37 }
  0x7c   :  { %1400 = vmatmul.msk.bf16.gmra.mxu1 %vm221_vm0, %v1942_v37 }
  0xa8   :  { %v237_v38 = vpop.f32.mrf.mxu0 }
  0xa9   :  { %v256_v39 = vpop.f32.mrf.mxu1 }
  0xaa   :  { %v342_v24 = vpack.c.bf16 %v256_v39, %v237_v38  ;;  %v1520_v39 = vor.u32 %v1572_v35, %v1517_v36  ;;  %v1443_v36 = vld [vmem:[#allocation8 + $0x50] sm:$0xf] }
  0xac   :  { %v359_v38 = vunpack.c.h.b16 %v342_v24  ;;  %806 = vmatpush.bf16.msrb.mxu1 %v1520_v39 }
  0xb0   :  { %v239_v40 = vpop.f32.mrf.mxu0 }
  0xb1   :  { %v258_v41 = vpop.f32.mrf.mxu1 }
  0xb2   :  { %v345_v58 = vpack.c.bf16 %v258_v41, %v239_v40  ;;  %v1456_v40 = vor.u32 %v1556_v29, %v1453_v30  ;;  %v358_v41 = vunpack.c.l.b16 %v342_v24  ;;  %v1575_v24 = vld [vmem:[#allocation8 + $0xf4] sm:$0xf0] }
  0xb3   :  { %v275_v45 = vpop.f32.mrf.mxu2  ;;  %v1524_v29 = vor.u32 %v1575_v24, %v1523_v23  ;;  %v1405_v23 = vld [vmem:[#allocation8 + $0x8] sm:$0xf0]  ;;  %v1467_v24 = vld [vmem:[#allocation8 + $0x80] sm:$0xf] }
  0xb4   :  { %v294_v47 = vpop.f32.mrf.mxu3  ;;  %v360_v31 = vunpack.c.l.b16 %v345_v58  ;;  %v361_v32 = vunpack.c.h.b16 %v345_v58  ;;  %787 = vmatpush.bf16.msrb.mxu0 %v1456_v40  ;;  %v1555_v40 = vld [vmem:[#allocation8 + $0x54] sm:$0xf0] }
  0xb5   :  { %v343_v54 = vpack.c.bf16 %v294_v47, %v275_v45  ;;  %v1554_v45 = vld [vmem:[#allocation8 + $0x54] sm:$0xf]  ;;  %v1445_v47 = vld [vmem:[#allocation8 + $0x58] sm:$0xf0]  ;;  %v1444_v39 = vor.u32 %v1555_v40, %v1443_v36  ;;  %v2002_v36 = vld [vmem:[#allocation13 + $0x1d8] sm:$0xff] }
  0xb6   :  { %v2004_v40 = vld [vmem:[#allocation13 + $0xf0] sm:$0xff] }
  0xb7   :  { %v368_v6 = vunpack.c.l.b16 %v343_v54  ;;  %v369_v7 = vunpack.c.h.b16 %v343_v54 }
  0xb8   :  { %v1960_v42 = vpop.f32.mrf.mxu0 }
  0xb9   :  { %v1962_v43 = vpop.f32.mrf.mxu1 }
  0xbb   :  { %v277_v50 = vpop.f32.mrf.mxu2 }
  0xbc   :  { %v296_v51 = vpop.f32.mrf.mxu3 }
  0xbd   :  { %v346_v56 = vpack.c.bf16 %v296_v51, %v277_v50  ;;  %v1570_v50 = vld [vmem:[#allocation8 + $0xd4] sm:$0xf]  ;;  %v1509_v51 = vld [vmem:[#allocation8 + $0xd8] sm:$0xf0] }
  0xbe   :  { %v1512_v60 = vor.u32 %v1570_v50, %v1509_v51 }
  0xbf   :  { %v370_v8 = vunpack.c.l.b16 %v346_v56  ;;  %v371_v15 = vunpack.c.h.b16 %v346_v56 }
  0xc0   :  { %v1964_v44 = vpop.f32.mrf.mxu0  ;;  %807 = vmatpush.bf16.msrb.mxu1 %v1512_v60 }
  0xc1   :  { %v1966_v46 = vpop.f32.mrf.mxu1  ;;  %v372_v33 = vpack.c.b16 %v370_v8, %v368_v6  ;;  %v373_v34 = vpack.c.b16 %v371_v15, %v369_v7  ;;  %v1429_v15 = vld [vmem:[#allocation8 + $0x38] sm:$0xf0] }
  0xc2   :  { %v351_v2 = vpack.c.bf16 %v1966_v46, %v1964_v44  ;;  %v1550_v46 = vld [vmem:[#allocation8 + $0x34] sm:$0xf] }
  0xc3   :  { %v280_v9 = vpop.f32.mrf.mxu2 }
  0xc4   :  { %v299_v10 = vpop.f32.mrf.mxu3  ;;  %v428_v19 = vunpack.c.h.b16 %v351_v2 }
  0xc5   :  { %v349_v58 = vpack.c.bf16 %v299_v10, %v280_v9 }
  0xc7   :  { %v435_v7 = vunpack.c.l.b16 %v349_v58  ;;  %v436_v8 = vunpack.c.h.b16 %v349_v58 }
  0xc8   :  { %v313_v48 = vpop.f32.mrf.mxu0 }
  0xc9   :  { %v332_v49 = vpop.f32.mrf.mxu1 }
  0xca   :  { %v344_v52 = vpack.c.bf16 %v332_v49, %v313_v48  ;;  %v362_v48 = vpack.c.b16 %v360_v31, %v358_v41  ;;  %v363_v49 = vpack.c.b16 %v361_v32, %v359_v38  ;;  %v1557_v31 = vld [vmem:[#allocation8 + $0x64] sm:$0xf0]  ;;  %v1515_v32 = vld [vmem:[#allocation8 + $0xe0] sm:$0xf]  ;;  %v1507_v41 = vld [vmem:[#allocation8 + $0xd0] sm:$0xf] }
  0xcb   :  { %v1571_v38 = vld [vmem:[#allocation8 + $0xd4] sm:$0xf0] }
  0xcc   :  { %v378_v59 = vunpack.c.l.b16 %v344_v52  ;;  %v379_v63 = vunpack.c.h.b16 %v344_v52  ;;  %v1972_v52 = vld [vmem:[#allocation5] sm:$0xff]  ;;  %v301_v54 = vpop.f32.mrf.mxu3  ;;  %v1508_v37 = vor.u32 %v1571_v38, %v1507_v41  ;;  %v2006_v41 = vld [vmem:[#allocation13 + $0xf8] sm:$0xff]  ;;  %v2010_v38 = vld [vmem:[#allocation13 + $0xe0] sm:$0xff] }
  0xd0   :  { %v315_v53 = vpop.f32.mrf.mxu0 }
  0xd1   :  { %v334_v55 = vpop.f32.mrf.mxu1 }
  0xd2   :  { %v347_v57 = vpack.c.bf16 %v334_v55, %v315_v53  ;;  %v282_v53 = vpop.f32.mrf.mxu2 }
  0xd3   :  { %v352_v14 = vpack.c.bf16 %v301_v54, %v282_v53  ;;  %v1427_v53 = vld [vmem:[#allocation8 + $0x30] sm:$0xf]  ;;  %v1551_v54 = vld [vmem:[#allocation8 + $0x34] sm:$0xf0] }
  0xd4   :  { %v380_v0 = vunpack.c.l.b16 %v347_v57  ;;  %v381_v1 = vunpack.c.h.b16 %v347_v57  ;;  %v1448_v57 = vor.u32 %v1554_v45, %v1445_v47  ;;  %v1435_v45 = vld [vmem:[#allocation8 + $0x40] sm:$0xf]  ;;  %v1553_v47 = vld [vmem:[#allocation8 + $0x44] sm:$0xf0] }
  0xd5   :  { %v437_v13 = vunpack.c.l.b16 %v352_v14  ;;  %v438_v44 = vunpack.c.h.b16 %v352_v14  ;;  %v1436_v50 = vor.u32 %v1553_v47, %v1435_v45  ;;  %v1548_v14 = vld [vmem:[#allocation8 + $0x24] sm:$0xf]  ;;  %v2018_v45 = vld [vmem:[#allocation13 + $0xe8] sm:$0xff]  ;;  %v2022_v47 = vld [vmem:[#allocation13 + $0xd0] sm:$0xff] }
  0xd6   :  { %v382_v16 = vpack.c.b16 %v380_v0, %v378_v59  ;;  %v383_v17 = vpack.c.b16 %v381_v1, %v379_v63  ;;  %v1437_v63 = vld [vmem:[#allocation8 + $0x48] sm:$0xf0]  ;;  %v1568_v0 = vld [vmem:[#allocation8 + $0xc4] sm:$0xf]  ;;  %788 = vmatpush.bf16.msrb.mxu0 %v1448_v57  ;;  %v1566_v57 = vld [vmem:[#allocation8 + $0xb4] sm:$0xf] }
  0xd7   :  { %v1501_v1 = vld [vmem:[#allocation8 + $0xc8] sm:$0xf0]  ;;  %v1440_v9 = vor.u32 %v1552_v61, %v1437_v63  ;;  %v439_v20 = vpack.c.b16 %v437_v13, %v435_v7  ;;  %v440_v21 = vpack.c.b16 %v438_v44, %v436_v8  ;;  %v1419_v61 = vld [vmem:[#allocation8 + $0x20] sm:$0xf]  ;;  %v1411_v7 = vld [vmem:[#allocation8 + $0x10] sm:$0xf] }
  0xd8   :  { %400 = vmatpush.bf16.msrb.mxu2 %v382_v16  ;;  %414 = vmatpush.bf16.msrb.mxu3 %v383_v17  ;;  %v318_v25 = vpop.f32.mrf.mxu0  ;;  %v1504_v10 = vor.u32 %v1568_v0, %v1501_v1  ;;  %v348_v16 = vpack.c.bf16 %v1962_v43, %v1960_v42  ;;  %v427_v17 = vunpack.c.l.b16 %v351_v2  ;;  %v1451_v42 = vld [vmem:[#allocation8 + $0x60] sm:$0xf]  ;;  %v1421_v0 = vld [vmem:[#allocation8 + $0x28] sm:$0xf0]  ;;  %v1565_v2 = vld [vmem:[#allocation8 + $0xa4] sm:$0xf0] }
  0xd9   :  { %v337_v27 = vpop.f32.mrf.mxu1  ;;  %v1483_v1 = vld [vmem:[#allocation8 + $0xa0] sm:$0xf]  ;;  %v1475_v44 = vld [vmem:[#allocation8 + $0x90] sm:$0xf] }
  0xda   :  { %v350_v55 = vpack.c.bf16 %v337_v27, %v318_v25  ;;  %789 = vmatpush.bf16.msrb.mxu0 %v1440_v9  ;;  %808 = vmatpush.bf16.msrb.mxu1 %v1504_v10  ;;  %v1432_v25 = vor.u32 %v1550_v46, %v1429_v15  ;;  %v425_v26 = vunpack.c.l.b16 %v348_v16  ;;  %v426_v27 = vunpack.c.h.b16 %v348_v16  ;;  %v1547_v9 = vld [vmem:[#allocation8 + $0x14] sm:$0xf0]  ;;  %v1546_v10 = vld [vmem:[#allocation8 + $0x14] sm:$0xf] }
  0xdb   :  { %v1563_v46 = vld [vmem:[#allocation8 + $0x94] sm:$0xf0]  ;;  %v1562_v15 = vld [vmem:[#allocation8 + $0x94] sm:$0xf] }
  0xdc   :  { %401 = vmatpush.bf16.msrb.mxu2 %v372_v33  ;;  %415 = vmatpush.bf16.msrb.mxu3 %v373_v34  ;;  %v445_v3 = vunpack.c.l.b16 %v350_v55  ;;  %v446_v4 = vunpack.c.h.b16 %v350_v55  ;;  %v429_v43 = vpack.c.b16 %v427_v17, %v425_v26  ;;  %v430_v30 = vpack.c.b16 %v428_v19, %v426_v27  ;;  %v1573_v33 = vld [vmem:[#allocation8 + $0xe4] sm:$0xf0]  ;;  %v1477_v17 = vld [vmem:[#allocation8 + $0x98] sm:$0xf0]  ;;  %v1403_v19 = vld [vmem:[#allocation8] sm:$0xf] }
  0xdd   :  { %v1452_v34 = vor.u32 %v1557_v31, %v1451_v42  ;;  %v1516_v35 = vor.u32 %v1573_v33, %v1515_v32  ;;  %v1428_v55 = vor.u32 %v1551_v54, %v1427_v53  ;;  %v1476_v16 = vor.u32 %v1563_v46, %v1475_v44  ;;  %v1994_v31 = vld [vmem:[#allocation13 + $0x1e0] sm:$0xff]  ;;  %v1998_v32 = vld [vmem:[#allocation13 + $0x1e8] sm:$0xff]  ;;  %v2000_v33 = vld [vmem:[#allocation13 + $0x1d0] sm:$0xff] }
  0xde   :  { %790 = vmatpush.bf16.msrb.mxu0 %v1432_v25  ;;  %v1480_v18 = vor.u32 %v1562_v15, %v1477_v17  ;;  %v1561_v25 = vld [vmem:[#allocation8 + $0x84] sm:$0xf0]  ;;  %v2036_v53 = vld [vmem:[#allocation13 + $0xc8] sm:$0xff]  ;;  %v2095_v15 = vld [vmem:[#allocation13 + $0x150] sm:$0xff] }
  0xdf   :  { %v1468_v27 = vor.u32 %v1561_v25, %v1467_v24  ;;  %v2039_v54 = vld [vmem:[#allocation13 + $0x1a0] sm:$0xff]  ;;  %v2090_v46 = vld [vmem:[#allocation13 + $0x168] sm:$0xff] }
  0xe0   :  { %402 = vmatpush.bf16.msrb.mxu2 %v362_v48  ;;  %416 = vmatpush.bf16.msrb.mxu3 %v363_v49  ;;  %v320_v56 = vpop.f32.mrf.mxu0  ;;  %v1499_v48 = vld [vmem:[#allocation8 + $0xc0] sm:$0xf]  ;;  %v1569_v49 = vld [vmem:[#allocation8 + $0xc4] sm:$0xf0] }
  0xe1   :  { %v339_v59 = vpop.f32.mrf.mxu1  ;;  %v1500_v51 = vor.u32 %v1569_v49, %v1499_v48  ;;  %v2024_v48 = vld [vmem:[#allocation13 + $0xd8] sm:$0xff]  ;;  %v2027_v49 = vld [vmem:[#allocation13 + $0x1b0] sm:$0xff]  ;;  %v2087_v44 = vld [vmem:[#allocation13 + $0x160] sm:$0xff] }
  0xe2   :  { %v353_v62 = vpack.c.bf16 %v339_v59, %v320_v56  ;;  %v1491_v56 = vld [vmem:[#allocation8 + $0xb0] sm:$0xf]  ;;  %v1493_v59 = vld [vmem:[#allocation8 + $0xb8] sm:$0xf0] }
  0xe3   :  { %1377 = vmatmul.msk.bf16.vlgmr.msrb.gmra.mxu2 %vm391_vm1, %v1972_v52  ;;  %1378 = vmatmul.msk.bf16.vlgmr.msrb.gmra.mxu3 %vm391_vm1, %v1972_v52  ;;  %v1496_v60 = vor.u32 %v1566_v57, %v1493_v59  ;;  %v2051_v59 = vld [vmem:[#allocation13 + $0x190] sm:$0xff] }
  0xe4   :  { %v447_v5 = vunpack.c.l.b16 %v353_v62  ;;  %v448_v6 = vunpack.c.h.b16 %v353_v62  ;;  %v1549_v62 = vld [vmem:[#allocation8 + $0x24] sm:$0xf0] }
  0xe5   :  { %809 = vmatpush.bf16.msrb.mxu1 %v1496_v60  ;;  %v1420_v63 = vor.u32 %v1549_v62, %v1419_v61  ;;  %v2054_v60 = vld [vmem:[#allocation13 + $0x198] sm:$0xff] }
  0xe6   :  { %v449_v11 = vpack.c.b16 %v447_v5, %v445_v3  ;;  %v450_v12 = vpack.c.b16 %v448_v6, %v446_v4  ;;  %v1424_v3 = vor.u32 %v1548_v14, %v1421_v0  ;;  %v1484_v4 = vor.u32 %v1565_v2, %v1483_v1  ;;  %v1564_v5 = vld [vmem:[#allocation8 + $0xa4] sm:$0xf]  ;;  %v1485_v6 = vld [vmem:[#allocation8 + $0xa8] sm:$0xf0]  ;;  %v2060_v1 = vld [vmem:[#allocation13 + $0xa8] sm:$0xff] }
  0xe7   :  { %v1488_v8 = vor.u32 %v1564_v5, %v1485_v6  ;;  %v2058_v0 = vld [vmem:[#allocation13 + $0xa0] sm:$0xff]  ;;  %v2068_v5 = vld [vmem:[#allocation13 + $0x188] sm:$0xff]  ;;  %v2072_v6 = vld [vmem:[#allocation13 + $0x90] sm:$0xff] }
  0xe8   :  { %458 = vmatpush.bf16.msra.mxu2 %v449_v11  ;;  %472 = vmatpush.bf16.msra.mxu3 %v450_v12  ;;  %v1413_v11 = vld [vmem:[#allocation8 + $0x18] sm:$0xf0]  ;;  %v1412_v12 = vor.u32 %v1547_v9, %v1411_v7  ;;  %v2074_v7 = vld [vmem:[#allocation13 + $0x98] sm:$0xff] }
  0xe9   :  { %791 = vmatpush.bf16.msrb.mxu0 %v1424_v3  ;;  %v1416_v13 = vor.u32 %v1546_v10, %v1413_v11  ;;  %810 = vmatpush.bf16.msrb.mxu1 %v1488_v8  ;;  %v2076_v8 = vld [vmem:[#allocation13 + $0x170] sm:$0xff]  ;;  %v2078_v9 = vld [vmem:[#allocation13 + $0x178] sm:$0xff]  ;;  %v2082_v10 = vld [vmem:[#allocation13 + $0x80] sm:$0xff]  ;;  %v2104_v25 = vpop.f32.mrf.mxu1 }
  0xea   :  { %v2084_v11 = vld [vmem:[#allocation13 + $0x88] sm:$0xff] }
  0xec   :  { %459 = vmatpush.bf16.msra.mxu2 %v439_v20  ;;  %473 = vmatpush.bf16.msra.mxu3 %v440_v21  ;;  %v1545_v20 = vld [vmem:[#allocation8 + $0x4] sm:$0xf0]  ;;  %v1544_v21 = vld [vmem:[#allocation8 + $0x4] sm:$0xf] }
  0xed   :  { %792 = vmatpush.bf16.msrb.mxu0 %v1416_v13  ;;  %811 = vmatpush.bf16.msrb.mxu1 %v1480_v18  ;;  %v1404_v22 = vor.u32 %v1545_v20, %v1403_v19  ;;  %v1408_v26 = vor.u32 %v1544_v21, %v1405_v23 }
  0xf0   :  { %460 = vmatpush.bf16.msra.mxu2 %v429_v43  ;;  %474 = vmatpush.bf16.msra.mxu3 %v430_v30  ;;  %v1990_v43 = vld [vmem:[#allocation13 + $0x1f0] sm:$0xff]  ;;  %v1992_v30 = vld [vmem:[#allocation13 + $0x1f8] sm:$0xff] }
  0xf1   :  { %793 = vmatpush.bf16.msrb.mxu0 %v1408_v26  ;;  %v2106_v26 = vpop.f32.mrf.mxu0 }
  0xf3   :  { %1379 = vmatmul.msk.bf16.vlgmr.msra.gmra.mxu2 %vm391_vm1, %v1972_v52  ;;  %1380 = vmatmul.msk.bf16.vlgmr.msra.gmra.mxu3 %vm391_vm1, %v1972_v52  ;;  %v1567_v52 = vld [vmem:[#allocation8 + $0xb4] sm:$0xf0] }
  0xf4   :  { %748 = vmatpush.bf16.msrb.mxu2 %v1460_v28  ;;  %767 = vmatpush.bf16.msrb.mxu3 %v1524_v29  ;;  %v1492_v58 = vor.u32 %v1567_v52, %v1491_v56  ;;  %v1560_v28 = vld [vmem:[#allocation8 + $0x84] sm:$0xf]  ;;  %v1469_v29 = vld [vmem:[#allocation8 + $0x88] sm:$0xf0]  ;;  %v2046_v56 = vld [vmem:[#allocation13 + $0xb0] sm:$0xff] }
  0xf5   :  { %v1472_v42 = vor.u32 %v1560_v28, %v1469_v29  ;;  %969 = vmatpush.msra.mxu0 %v2006_v41  ;;  %v2048_v52 = vld [vmem:[#allocation13 + $0xb8] sm:$0xff]  ;;  %v2110_v28 = vld [vmem:[#allocation13 + $0x140] sm:$0xff] }
  0xf6   :  { %v2112_v29 = vld [vmem:[#allocation13 + $0x78] sm:$0xff] }
  0xf7   :  { %812 = vmatpush.bf16.msrb.mxu1 %v1472_v42  ;;  %970 = vmatpush.msra.mxu0 %v2018_v45  ;;  %v2116_v42 = vld [vmem:[#allocation13 + $0x148] sm:$0xff] }
  0xf8   :  { %749 = vmatpush.bf16.msrb.mxu2 %v1452_v34  ;;  %768 = vmatpush.bf16.msrb.mxu3 %v1516_v35 }
  0xf9   :  { %971 = vmatpush.msra.mxu0 %v2024_v48 }
  0xfb   :  { %998 = vmatpush.msra.mxu1 %v1992_v30  ;;  %972 = vmatpush.msra.mxu0 %v2036_v53 }
  0xfc   :  { %750 = vmatpush.bf16.msrb.mxu2 %v1444_v39  ;;  %769 = vmatpush.bf16.msrb.mxu3 %v1508_v37  ;;  %v2013_v39 = vld [vmem:[#allocation13 + $0x1c0] sm:$0xff]  ;;  %v2016_v37 = vld [vmem:[#allocation13 + $0x1c8] sm:$0xff] }
  0xfd   :  { %999 = vmatpush.msra.mxu1 %v1998_v32  ;;  %973 = vmatpush.msra.mxu0 %v2048_v52 }
  0xff   :  { %1000 = vmatpush.msra.mxu1 %v2002_v36  ;;  %974 = vmatpush.msra.mxu0 %v2060_v1 }
 0x100   :  { %751 = vmatpush.bf16.msrb.mxu2 %v1436_v50  ;;  %770 = vmatpush.bf16.msrb.mxu3 %v1500_v51  ;;  %v2030_v50 = vld [vmem:[#allocation13 + $0x1b8] sm:$0xff]  ;;  %v2034_v51 = vld [vmem:[#allocation13 + $0xc0] sm:$0xff] }
 0x101   :  { %1001 = vmatpush.msra.mxu1 %v2016_v37  ;;  %975 = vmatpush.msra.mxu0 %v2074_v7 }
 0x103   :  { %1002 = vmatpush.msra.mxu1 %v2030_v50  ;;  %976 = vmatpush.msra.mxu0 %v2084_v11 }
 0x104   :  { %752 = vmatpush.bf16.msrb.mxu2 %v1428_v55  ;;  %771 = vmatpush.bf16.msrb.mxu3 %v1492_v58  ;;  %v2042_v55 = vld [vmem:[#allocation13 + $0x1a8] sm:$0xff] }
 0x105   :  { %1003 = vmatpush.msra.mxu1 %v2042_v55  ;;  %977 = vmatpush.msra.mxu0 %v2112_v29 }
 0x107   :  { %1004 = vmatpush.msra.mxu1 %v2054_v60 }
 0x108   :  { %753 = vmatpush.bf16.msrb.mxu2 %v1420_v63  ;;  %772 = vmatpush.bf16.msrb.mxu3 %v1484_v4  ;;  %v2066_v4 = vld [vmem:[#allocation13 + $0x180] sm:$0xff] }
 0x109   :  { %1005 = vmatpush.msra.mxu1 %v2068_v5 }
 0x10b   :  { %1006 = vmatpush.msra.mxu1 %v2078_v9 }
 0x10c   :  { %754 = vmatpush.bf16.msrb.mxu2 %v1412_v12  ;;  %773 = vmatpush.bf16.msrb.mxu3 %v1476_v16  ;;  %v2098_v16 = vld [vmem:[#allocation13 + $0x158] sm:$0xff] }
 0x10d   :  { %1007 = vmatpush.msra.mxu1 %v2090_v46 }
 0x10f   :  { %1008 = vmatpush.msra.mxu1 %v2098_v16 }
 0x110   :  { %755 = vmatpush.bf16.msrb.mxu2 %v1404_v22  ;;  %774 = vmatpush.bf16.msrb.mxu3 %v1468_v27  ;;  %v2108_v27 = vld [vmem:[#allocation13 + $0x70] sm:$0xff] }
 0x111   :  { %1009 = vmatpush.msra.mxu1 %v2116_v42 }
 0x114   :  { %940 = vmatpush.msra.mxu3 %v1990_v43  ;;  %911 = vmatpush.msra.mxu2 %v2004_v40 }
 0x116   :  { %941 = vmatpush.msra.mxu3 %v1994_v31  ;;  %912 = vmatpush.msra.mxu2 %v2010_v38 }
 0x118   :  { %942 = vmatpush.msra.mxu3 %v2000_v33  ;;  %913 = vmatpush.msra.mxu2 %v2022_v47 }
 0x11a   :  { %943 = vmatpush.msra.mxu3 %v2013_v39  ;;  %914 = vmatpush.msra.mxu2 %v2034_v51 }
 0x11c   :  { %944 = vmatpush.msra.mxu3 %v2027_v49  ;;  %915 = vmatpush.msra.mxu2 %v2046_v56 }
 0x11e   :  { %945 = vmatpush.msra.mxu3 %v2039_v54  ;;  %916 = vmatpush.msra.mxu2 %v2058_v0 }
 0x120   :  { %946 = vmatpush.msra.mxu3 %v2051_v59  ;;  %917 = vmatpush.msra.mxu2 %v2072_v6 }
 0x122   :  { %947 = vmatpush.msra.mxu3 %v2066_v4  ;;  %918 = vmatpush.msra.mxu2 %v2082_v10 }
 0x124   :  { %948 = vmatpush.msra.mxu3 %v2076_v8  ;;  %919 = vmatpush.msra.mxu2 %v2108_v27 }
 0x126   :  { %949 = vmatpush.msra.mxu3 %v2087_v44 }
 0x128   :  { %950 = vmatpush.msra.mxu3 %v2095_v15 }
 0x12a   :  { %951 = vmatpush.msra.mxu3 %v2110_v28 }
 0x166   :  { %v404_v34 = vpop.f32.mrf.mxu2  ;;  %v418_v35 = vpop.f32.mrf.mxu3 }
 0x167   :  { %v481_v61 = vmax.f32 %v404_v34, 0.0  ;;  %v482_v62 = vmax.f32 %v418_v35, 0.0  ;;  %v2120_v34 = vld [vmem:[#allocation13 + $0x60] sm:$0xff]  ;;  %v2122_v35 = vld [vmem:[#allocation13 + $0x130] sm:$0xff] }
 0x168   :  { %920 = vmatpush.msra.mxu2 %v2120_v34  ;;  %952 = vmatpush.msra.mxu3 %v2122_v35 }
 0x16e   :  { %v406_v57 = vpop.f32.mrf.mxu2  ;;  %v420_v58 = vpop.f32.mrf.mxu3 }
 0x16f   :  { %v483_v14 = vmax.f32 %v406_v57, 0.0  ;;  %v484_v63 = vmax.f32 %v420_v58, 0.0  ;;  %v2124_v57 = vld [vmem:[#allocation13 + $0x68] sm:$0xff]  ;;  %v2126_v58 = vpop.f32.mrf.mxu1 }
 0x170   :  { %978 = vmatpush.msra.mxu0 %v2124_v57 }
 0x171   :  { %v489_v2 = vpack.c.bf16 %v483_v14, %v481_v61  ;;  %v490_v3 = vpack.c.bf16 %v484_v63, %v482_v62  ;;  %v2130_v61 = vld [vmem:[#allocation13 + $0x138] sm:$0xff]  ;;  %v2132_v62 = vpop.f32.mrf.mxu0  ;;  %v2136_v14 = vld [vmem:[#allocation13 + $0x50] sm:$0xff]  ;;  %v2138_v63 = vld [vmem:[#allocation13 + $0x120] sm:$0xff] }
 0x172   :  { %2461 = vst [vmem:[#allocation20_spill] sm:$0xff] %v2132_v62  ;;  %1010 = vmatpush.msra.mxu1 %v2130_v61  ;;  %921 = vmatpush.msra.mxu2 %v2136_v14  ;;  %v2179_v62 = vld [vmem:[#allocation13 + $0x10] sm:$0xff] }
 0x173   :  { %756 = vmatmul.bf16.vlgmr.msrb.gmra.mxu2 %v489_v2  ;;  %794 = vmatmul.bf16.vlgmr.msrb.gmra.mxu0 %v489_v2  ;;  %v2140_v2 = vld [vmem:[#allocation13 + $0x58] sm:$0xff] }
 0x174   :  { %775 = vmatmul.bf16.vlgmr.msrb.gmra.mxu3 %v490_v3  ;;  %813 = vmatmul.bf16.vlgmr.msrb.gmra.mxu1 %v490_v3  ;;  %v2144_v3 = vld [vmem:[#allocation13 + $0x128] sm:$0xff] }
 0x175   :  { %953 = vmatpush.msra.mxu3 %v2138_v63  ;;  %979 = vmatpush.msra.mxu0 %v2140_v2 }
 0x176   :  { %v462_v12 = vpop.f32.mrf.mxu2  ;;  %v476_v13 = vpop.f32.mrf.mxu3  ;;  %1011 = vmatpush.msra.mxu1 %v2144_v3 }
 0x177   :  { %v485_v19 = vmax.f32 %v462_v12, 0.0  ;;  %v486_v20 = vmax.f32 %v476_v13, 0.0  ;;  %v2148_v12 = vld [vmem:[#allocation13 + $0x40] sm:$0xff]  ;;  %v2150_v13 = vld [vmem:[#allocation13 + $0x110] sm:$0xff] }
 0x178   :  { %922 = vmatpush.msra.mxu2 %v2148_v12  ;;  %954 = vmatpush.msra.mxu3 %v2150_v13 }
 0x17e   :  { %v464_v17 = vpop.f32.mrf.mxu2  ;;  %v478_v18 = vpop.f32.mrf.mxu3 }
 0x17f   :  { %v487_v21 = vmax.f32 %v464_v17, 0.0  ;;  %v488_v22 = vmax.f32 %v478_v18, 0.0  ;;  %v2152_v17 = vld [vmem:[#allocation13 + $0x48] sm:$0xff]  ;;  %v2156_v18 = vld [vmem:[#allocation13 + $0x118] sm:$0xff] }
 0x180   :  { %980 = vmatpush.msra.mxu0 %v2152_v17  ;;  %1012 = vmatpush.msra.mxu1 %v2156_v18 }
 0x181   :  { %v491_v23 = vpack.c.bf16 %v487_v21, %v485_v19  ;;  %v492_v24 = vpack.c.bf16 %v488_v22, %v486_v20  ;;  %v2160_v19 = vld [vmem:[#allocation13 + $0x30] sm:$0xff]  ;;  %v2162_v20 = vld [vmem:[#allocation13 + $0x100] sm:$0xff]  ;;  %v2164_v21 = vld [vmem:[#allocation13 + $0x38] sm:$0xff] }
 0x182   :  { %2462 = vst [vmem:[#allocation21_spill] sm:$0xff] %v2160_v19  ;;  %923 = vmatpush.msra.mxu2 %v2160_v19  ;;  %955 = vmatpush.msra.mxu3 %v2162_v20  ;;  %v2168_v22 = vld [vmem:[#allocation13 + $0x108] sm:$0xff]  ;;  %v2181_v19 = vld [vmem:[#allocation13 + $0x18] sm:$0xff] }
 0x183   :  { %761 = vmatmul.bf16.gmra.mxu2 %v491_v23  ;;  %799 = vmatmul.bf16.gmra.mxu0 %v491_v23  ;;  %2463 = vst [vmem:[#allocation22_spill] sm:$0xff] %v2162_v20  ;;  %v2172_v23 = vld [vmem:[#allocation13 + $0x20] sm:$0xff]  ;;  %v2184_v20 = vpop.f32.mrf.mxu1 }
 0x184   :  { %780 = vmatmul.bf16.gmra.mxu3 %v492_v24  ;;  %818 = vmatmul.bf16.gmra.mxu1 %v492_v24  ;;  %2464 = vst [vmem:[#allocation23_spill] sm:$0xff] %v2168_v22  ;;  %v2174_v24 = vld [vmem:[#allocation13 + $0x28] sm:$0xff] }
 0x185   :  { %981 = vmatpush.msra.mxu0 %v2164_v21  ;;  %1013 = vmatpush.msra.mxu1 %v2168_v22  ;;  %2465 = vst [vmem:[#allocation24_spill] sm:$0xff] %v2172_v23  ;;  %v2188_v22 = vpop.f32.mrf.mxu0 }
 0x186   :  { %924 = vmatpush.msra.mxu2 %v2172_v23  ;;  %1072 = vmatpush.msrb.mxu3 %v1990_v43  ;;  %v2191_v23 = vld [vmem:[#allocation13] sm:$0xff]  ;;  %v2193_v43 = vld [vmem:[#allocation13 + $0x8] sm:$0xff] }
 0x187   :  { %982 = vmatpush.msra.mxu0 %v2174_v24  ;;  %1130 = vmatpush.msrb.mxu1 %v1992_v30 }
 0x188   :  { %925 = vmatpush.msra.mxu2 %v2179_v62  ;;  %1073 = vmatpush.msrb.mxu3 %v1994_v31 }
 0x189   :  { %983 = vmatpush.msra.mxu0 %v2181_v19  ;;  %1131 = vmatpush.msrb.mxu1 %v1998_v32 }
 0x18a   :  { %926 = vmatpush.msra.mxu2 %v2191_v23  ;;  %1074 = vmatpush.msrb.mxu3 %v2000_v33 }
 0x18b   :  { %984 = vmatpush.msra.mxu0 %v2193_v43  ;;  %1132 = vmatpush.msrb.mxu1 %v2002_v36  ;;  %v2212_v31 = vpop.f32.mrf.mxu1 }
 0x18c   :  { %1043 = vmatpush.msrb.mxu2 %v2004_v40  ;;  %1075 = vmatpush.msrb.mxu3 %v2013_v39  ;;  %v2222_v40 = vld [vmem:[#allocation11] sm:$0x77] }
 0x18d   :  { %1101 = vmatpush.msrb.mxu0 %v2006_v41  ;;  %1133 = vmatpush.msrb.mxu1 %v2016_v37  ;;  %v2216_v33 = vpop.f32.mrf.mxu0 }
 0x18e   :  { %1044 = vmatpush.msrb.mxu2 %v2010_v38  ;;  %1076 = vmatpush.msrb.mxu3 %v2027_v49  ;;  %v826_v38 = vperm.slane %v2222_v40, 4 }
 0x18f   :  { %1102 = vmatpush.msrb.mxu0 %v2018_v45  ;;  %1134 = vmatpush.msrb.mxu1 %v2030_v50 }
 0x190   :  { %1045 = vmatpush.msrb.mxu2 %v2022_v47  ;;  %1077 = vmatpush.msrb.mxu3 %v2039_v54 }
 0x191   :  { %1103 = vmatpush.msrb.mxu0 %v2024_v48  ;;  %1135 = vmatpush.msrb.mxu1 %v2042_v55 }
 0x192   :  { %1046 = vmatpush.msrb.mxu2 %v2034_v51  ;;  %1078 = vmatpush.msrb.mxu3 %v2051_v59  ;;  %v2240_v51 = vperm.slane %v826_v38, 0 }
 0x193   :  { %1104 = vmatpush.msrb.mxu0 %v2036_v53  ;;  %1136 = vmatpush.msrb.mxu1 %v2054_v60 }
 0x194   :  { %1047 = vmatpush.msrb.mxu2 %v2046_v56  ;;  %1079 = vmatpush.msrb.mxu3 %v2066_v4  ;;  %v825_v56 = vperm.slane %v2222_v40, 0 }
 0x195   :  { %1105 = vmatpush.msrb.mxu0 %v2048_v52  ;;  %1137 = vmatpush.msrb.mxu1 %v2068_v5 }
 0x196   :  { %1048 = vmatpush.msrb.mxu2 %v2058_v0  ;;  %1080 = vmatpush.msrb.mxu3 %v2076_v8 }
 0x197   :  { %1106 = vmatpush.msrb.mxu0 %v2060_v1  ;;  %1138 = vmatpush.msrb.mxu1 %v2078_v9 }
 0x198   :  { %1049 = vmatpush.msrb.mxu2 %v2072_v6  ;;  %1081 = vmatpush.msrb.mxu3 %v2087_v44 }
 0x199   :  { %1107 = vmatpush.msrb.mxu0 %v2074_v7  ;;  %1139 = vmatpush.msrb.mxu1 %v2090_v46 }
 0x19a   :  { %1050 = vmatpush.msrb.mxu2 %v2082_v10  ;;  %1082 = vmatpush.msrb.mxu3 %v2095_v15  ;;  %v2259_v10 = vperm.slane %v825_v56, 0 }
 0x19b   :  { %1108 = vmatpush.msrb.mxu0 %v2084_v11  ;;  %1140 = vmatpush.msrb.mxu1 %v2098_v16 }
 0x19c   :  { %1051 = vmatpush.msrb.mxu2 %v2108_v27  ;;  %1083 = vmatpush.msrb.mxu3 %v2110_v28  ;;  %v2466_v27 = vld [vmem:[#allocation21_spill] sm:$0xff]  ;;  %v2467_v28 = vld [vmem:[#allocation22_spill] sm:$0xff] }
 0x19d   :  { %1109 = vmatpush.msrb.mxu0 %v2112_v29  ;;  %1141 = vmatpush.msrb.mxu1 %v2116_v42 }
 0x19e   :  { %1052 = vmatpush.msrb.mxu2 %v2120_v34  ;;  %1084 = vmatpush.msrb.mxu3 %v2122_v35 }
 0x19f   :  { %1110 = vmatpush.msrb.mxu0 %v2124_v57  ;;  %1142 = vmatpush.msrb.mxu1 %v2130_v61 }
 0x1a0   :  { %1053 = vmatpush.msrb.mxu2 %v2136_v14  ;;  %1085 = vmatpush.msrb.mxu3 %v2138_v63  ;;  %v2468_v14 = vld [vmem:[#allocation23_spill] sm:$0xff]  ;;  %v2469_v63 = vld [vmem:[#allocation24_spill] sm:$0xff] }
 0x1a1   :  { %1111 = vmatpush.msrb.mxu0 %v2140_v2  ;;  %1143 = vmatpush.msrb.mxu1 %v2144_v3 }
 0x1a2   :  { %1054 = vmatpush.msrb.mxu2 %v2148_v12  ;;  %1086 = vmatpush.msrb.mxu3 %v2150_v13 }
 0x1a3   :  { %1112 = vmatpush.msrb.mxu0 %v2152_v17  ;;  %1144 = vmatpush.msrb.mxu1 %v2156_v18 }
 0x1a4   :  { %1055 = vmatpush.msrb.mxu2 %v2466_v27  ;;  %1087 = vmatpush.msrb.mxu3 %v2467_v28 }
 0x1a5   :  { %1113 = vmatpush.msrb.mxu0 %v2164_v21  ;;  %1145 = vmatpush.msrb.mxu1 %v2468_v14 }
 0x1a6   :  { %1056 = vmatpush.msrb.mxu2 %v2469_v63 }
 0x1a7   :  { %1114 = vmatpush.msrb.mxu0 %v2174_v24 }
 0x1a8   :  { %1057 = vmatpush.msrb.mxu2 %v2179_v62 }
 0x1a9   :  { %1115 = vmatpush.msrb.mxu0 %v2181_v19 }
 0x1aa   :  { %1058 = vmatpush.msrb.mxu2 %v2191_v23 }
 0x1ab   :  { %1116 = vmatpush.msrb.mxu0 %v2193_v43 }
 0x1f0   :  { %v795_v39 = vpop.f32.mrf.mxu0 }
 0x1f1   :  { %v796_v47 = vadd.f32 %v795_v39, %v2104_v25  ;;  %v814_v49 = vpop.f32.mrf.mxu1  ;;  %v2470_v39 = vld [vmem:[#allocation20_spill] sm:$0xff] }
 0x1f3   :  { %v815_v54 = vadd.f32 %v814_v49, %v796_v47 }
 0x1f5   :  { %v832_v59 = vadd.f32 %v2240_v51, %v815_v54 }
 0x1f6   :  { %v757_v0 = vpop.f32.mrf.mxu2 }
 0x1f7   :  { %v2256_v4 = vmax.f32 %v832_v59, 0.0  ;;  %v758_v6 = vadd.f32 %v757_v0, %v2106_v26  ;;  %v776_v8 = vpop.f32.mrf.mxu3 }
 0x1f8   :  { %v797_v44 = vpop.f32.mrf.mxu0 }
 0x1f9   :  { %v777_v15 = vadd.f32 %v776_v8, %v758_v6  ;;  %v798_v25 = vadd.f32 %v797_v44, %v2126_v58  ;;  %956 = vmatmul.f32.vlgmr.msra.gmra.mxu3 %v2256_v4  ;;  %1014 = vmatmul.f32.vlgmr.msra.gmra.mxu1 %v2256_v4  ;;  %v816_v26 = vpop.f32.mrf.mxu1 }
 0x1fa   :  { %1596 = vmatpush.msra.mxu3 %v1992_v30 }
 0x1fb   :  { %v831_v34 = vadd.f32 %v2259_v10, %v777_v15  ;;  %v817_v35 = vadd.f32 %v816_v26, %v798_v25 }
 0x1fc   :  { %1597 = vmatpush.msra.mxu3 %v1998_v32 }
 0x1fd   :  { %v2275_v58 = vmax.f32 %v831_v34, 0.0  ;;  %v834_v12 = vadd.f32 %v2240_v51, %v817_v35 }
 0x1fe   :  { %v759_v13 = vpop.f32.mrf.mxu2  ;;  %1598 = vmatpush.msra.mxu3 %v2002_v36 }
 0x1ff   :  { %v2281_v38 = vmax.f32 %v834_v12, 0.0  ;;  %v760_v47 = vadd.f32 %v759_v13, %v2470_v39  ;;  %927 = vmatmul.f32.vlgmr.msra.gmra.mxu2 %v2275_v58  ;;  %985 = vmatmul.f32.vlgmr.msra.gmra.mxu0 %v2275_v58  ;;  %v778_v30 = vpop.f32.mrf.mxu3 }
 0x200   :  { %v800_v49 = vpop.f32.mrf.mxu0  ;;  %1580 = vmatpush.msra.mxu2 %v2006_v41  ;;  %1599 = vmatpush.msra.mxu3 %v2016_v37 }
 0x201   :  { %v779_v54 = vadd.f32 %v778_v30, %v760_v47  ;;  %v801_v56 = vadd.f32 %v800_v49, %v2184_v20  ;;  %959 = vmatmul.f32.gmra.mxu3 %v2281_v38  ;;  %1017 = vmatmul.f32.gmra.mxu1 %v2281_v38  ;;  %v819_v32 = vpop.f32.mrf.mxu1 }
 0x202   :  { %1581 = vmatpush.msra.mxu2 %v2018_v45  ;;  %1600 = vmatpush.msra.mxu3 %v2030_v50 }
 0x203   :  { %v833_v62 = vadd.f32 %v2259_v10, %v779_v54  ;;  %v820_v59 = vadd.f32 %v819_v32, %v801_v56 }
 0x204   :  { %1582 = vmatpush.msra.mxu2 %v2024_v48  ;;  %1601 = vmatpush.msra.mxu3 %v2042_v55 }
 0x205   :  { %v2296_v23 = vmax.f32 %v833_v62, 0.0  ;;  %v836_v20 = vadd.f32 %v2240_v51, %v820_v59 }
 0x206   :  { %v762_v0 = vpop.f32.mrf.mxu2  ;;  %1583 = vmatpush.msra.mxu2 %v2036_v53  ;;  %1602 = vmatpush.msra.mxu3 %v2054_v60 }
 0x207   :  { %v2301_v6 = vmax.f32 %v836_v20, 0.0  ;;  %v763_v36 = vadd.f32 %v762_v0, %v2188_v22  ;;  %930 = vmatmul.f32.gmra.mxu2 %v2296_v23  ;;  %988 = vmatmul.f32.gmra.mxu0 %v2296_v23  ;;  %v781_v41 = vpop.f32.mrf.mxu3 }
 0x208   :  { %v802_v8 = vpop.f32.mrf.mxu0  ;;  %1584 = vmatpush.msra.mxu2 %v2048_v52  ;;  %1603 = vmatpush.msra.mxu3 %v2068_v5 }
 0x209   :  { %v782_v37 = vadd.f32 %v781_v41, %v763_v36  ;;  %v803_v45 = vadd.f32 %v802_v8, %v2212_v31  ;;  %962 = vmatmul.f32.gmra.mxu3 %v2301_v6  ;;  %1020 = vmatmul.f32.gmra.mxu1 %v2301_v6  ;;  %v821_v50 = vpop.f32.mrf.mxu1 }
 0x20a   :  { %1585 = vmatpush.msra.mxu2 %v2060_v1  ;;  %1604 = vmatpush.msra.mxu3 %v2078_v9 }
 0x20b   :  { %v835_v22 = vadd.f32 %v2259_v10, %v782_v37  ;;  %v822_v44 = vadd.f32 %v821_v50, %v803_v45 }
 0x20c   :  { %1586 = vmatpush.msra.mxu2 %v2074_v7  ;;  %1605 = vmatpush.msra.mxu3 %v2090_v46 }
 0x20d   :  { %v2316_v48 = vmax.f32 %v835_v22, 0.0  ;;  %v838_v55 = vadd.f32 %v2240_v51, %v822_v44 }
 0x20e   :  { %v764_v31 = vpop.f32.mrf.mxu2  ;;  %1587 = vmatpush.msra.mxu2 %v2084_v11  ;;  %1606 = vmatpush.msra.mxu3 %v2098_v16 }
 0x20f   :  { %v2321_v15 = vmax.f32 %v838_v55, 0.0  ;;  %v765_v53 = vadd.f32 %v764_v31, %v2216_v33  ;;  %933 = vmatmul.f32.gmra.mxu2 %v2316_v48  ;;  %991 = vmatmul.f32.gmra.mxu0 %v2316_v48  ;;  %v783_v52 = vpop.f32.mrf.mxu3 }
 0x210   :  { %1588 = vmatpush.msra.mxu2 %v2112_v29  ;;  %1607 = vmatpush.msra.mxu3 %v2116_v42 }
 0x211   :  { %v784_v60 = vadd.f32 %v783_v52, %v765_v53  ;;  %965 = vmatmul.f32.gmra.mxu3 %v2321_v15  ;;  %1023 = vmatmul.f32.gmra.mxu1 %v2321_v15 }
 0x212   :  { %1589 = vmatpush.msra.mxu2 %v2124_v57  ;;  %1608 = vmatpush.msra.mxu3 %v2130_v61 }
 0x213   :  { %v837_v1 = vadd.f32 %v2259_v10, %v784_v60 }
 0x214   :  { %1590 = vmatpush.msra.mxu2 %v2140_v2  ;;  %1609 = vmatpush.msra.mxu3 %v2144_v3 }
 0x215   :  { %v2335_v5 = vmax.f32 %v837_v1, 0.0  ;;  %v1248_v1 = vperm.slane %v2222_v40, 5 }
 0x216   :  { %1591 = vmatpush.msra.mxu2 %v2152_v17  ;;  %1610 = vmatpush.msra.mxu3 %v2156_v18 }
 0x217   :  { %936 = vmatmul.f32.gmra.mxu2 %v2335_v5  ;;  %994 = vmatmul.f32.gmra.mxu0 %v2335_v5 }
 0x218   :  { %1592 = vmatpush.msra.mxu2 %v2164_v21  ;;  %1611 = vmatpush.msra.mxu3 %v2468_v14 }
 0x21a   :  { %1593 = vmatpush.msra.mxu2 %v2174_v24 }
 0x21c   :  { %1594 = vmatpush.msra.mxu2 %v2181_v19 }
 0x21e   :  { %1595 = vmatpush.msra.mxu2 %v2193_v43 }
 0x276   :  { %v1015_v7 = vpop.f32.mrf.mxu1 }
 0x27c   :  { %v957_v9 = vpop.f32.mrf.mxu3  ;;  %v986_v11 = vpop.f32.mrf.mxu0 }
 0x27d   :  { %v1016_v46 = vadd.f32 %v1015_v7, %v986_v11 }
 0x27e   :  { %v1018_v29 = vpop.f32.mrf.mxu1 }
 0x27f   :  { %v2351_v16 = vsub.f32 %v2256_v4, %v1016_v46 }
 0x281   :  { %v1036_v42 = vmul.f32 %v2351_v16, %v2351_v16 }
 0x282   :  { %v928_v57 = vpop.f32.mrf.mxu2 }
 0x283   :  { %v958_v61 = vadd.f32 %v957_v9, %v928_v57  ;;  %1088 = vmatmul.f32.vlgmr.msrb.gmra.mxu3 %v1036_v42  ;;  %1146 = vmatmul.f32.vlgmr.msrb.gmra.mxu1 %v1036_v42  ;;  %v1262_v42 = vperm.slane %v2222_v40, 6 }
 0x284   :  { %v989_v2 = vpop.f32.mrf.mxu0  ;;  %v960_v18 = vpop.f32.mrf.mxu3 }
 0x285   :  { %v2356_v3 = vsub.f32 %v2275_v58, %v958_v61  ;;  %v1019_v17 = vadd.f32 %v1018_v29, %v989_v2 }
 0x286   :  { %v1021_v43 = vpop.f32.mrf.mxu1 }
 0x287   :  { %v1035_v19 = vmul.f32 %v2356_v3, %v2356_v3  ;;  %v2361_v21 = vsub.f32 %v2281_v38, %v1019_v17 }
 0x289   :  { %1059 = vmatmul.f32.vlgmr.msrb.gmra.mxu2 %v1035_v19  ;;  %1117 = vmatmul.f32.vlgmr.msrb.gmra.mxu0 %v1035_v19  ;;  %v1038_v24 = vmul.f32 %v2361_v21, %v2361_v21  ;;  %v2397_v19 = vperm.slane %v1248_v1, 1 }
 0x28a   :  { %v931_v33 = vpop.f32.mrf.mxu2 }
 0x28b   :  { %v961_v51 = vadd.f32 %v960_v18, %v931_v33  ;;  %1091 = vmatmul.f32.gmra.mxu3 %v1038_v24  ;;  %1149 = vmatmul.f32.gmra.mxu1 %v1038_v24 }
 0x28c   :  { %v992_v4 = vpop.f32.mrf.mxu0  ;;  %v963_v28 = vpop.f32.mrf.mxu3 }
 0x28d   :  { %v2366_v10 = vsub.f32 %v2296_v23, %v961_v51  ;;  %v1022_v25 = vadd.f32 %v1021_v43, %v992_v4 }
 0x28e   :  { %v1024_v63 = vpop.f32.mrf.mxu1 }
 0x28f   :  { %v2369_v26 = vsub.f32 %v2301_v6, %v1022_v25  ;;  %v1037_v27 = vmul.f32 %v2366_v10, %v2366_v10  ;;  %v2401_v25 = vperm.slane %v1262_v42, 2 }
 0x291   :  { %1062 = vmatmul.f32.gmra.mxu2 %v1037_v27  ;;  %1120 = vmatmul.f32.gmra.mxu0 %v1037_v27  ;;  %v1040_v34 = vmul.f32 %v2369_v26, %v2369_v26  ;;  %v1247_v27 = vperm.slane %v2222_v40, 1 }
 0x292   :  { %v934_v35 = vpop.f32.mrf.mxu2 }
 0x293   :  { %v964_v14 = vadd.f32 %v963_v28, %v934_v35  ;;  %1094 = vmatmul.f32.gmra.mxu3 %v1040_v34  ;;  %1152 = vmatmul.f32.gmra.mxu1 %v1040_v34 }
 0x294   :  { %v995_v58 = vpop.f32.mrf.mxu0  ;;  %v966_v30 = vpop.f32.mrf.mxu3 }
 0x295   :  { %v2376_v12 = vsub.f32 %v2316_v48, %v964_v14  ;;  %v1025_v13 = vadd.f32 %v1024_v63, %v995_v58  ;;  %v1261_v58 = vperm.slane %v2222_v40, 2 }
 0x297   :  { %v2379_v38 = vsub.f32 %v2321_v15, %v1025_v13  ;;  %v1039_v39 = vmul.f32 %v2376_v12, %v2376_v12 }
 0x299   :  { %1065 = vmatmul.f32.gmra.mxu2 %v1039_v39  ;;  %1123 = vmatmul.f32.gmra.mxu0 %v1039_v39  ;;  %v1042_v47 = vmul.f32 %v2379_v38, %v2379_v38 }
 0x29a   :  { %v937_v49 = vpop.f32.mrf.mxu2 }
 0x29b   :  { %v967_v54 = vadd.f32 %v966_v30, %v937_v49  ;;  %1097 = vmatmul.f32.gmra.mxu3 %v1042_v47 }
 0x29d   :  { %v2386_v56 = vsub.f32 %v2335_v5, %v967_v54  ;;  %v2410_v54 = vperm.slane %v1247_v27, 1 }
 0x29f   :  { %v1041_v32 = vmul.f32 %v2386_v56, %v2386_v56 }
 0x2a1   :  { %1068 = vmatmul.f32.gmra.mxu2 %v1041_v32 }
 0x2a3   :  { %1155 = vmatmul.f32.vlgmr.msra.gmra.mxu3 %v1042_v47 }
 0x2a9   :  { %1126 = vmatmul.f32.vlgmr.msra.gmra.mxu2 %v1041_v32 }
 0x300   :  { %v1147_v62 = vpop.f32.mrf.mxu1 }
 0x306   :  { %v1089_v59 = vpop.f32.mrf.mxu3  ;;  %v1118_v23 = vpop.f32.mrf.mxu0 }
 0x307   :  { %v1119_v20 = vadd.f32 1e-05, %v1118_v23 }
 0x308   :  { %v1150_v41 = vpop.f32.mrf.mxu1 }
 0x309   :  { %v1148_v0 = vadd.f32 %v1147_v62, %v1119_v20  ;;  %v2415_v20 = vperm.slane %v1261_v58, 2 }
 0x30b   :  { %1628 = vrsqrt.f32 %v1148_v0  ;;  %vm1175_vm3 = vweird.f32 %v1148_v0 }
 0x30c   :  { %v1060_v6 = vpop.f32.mrf.mxu2 }
 0x30d   :  { %v1061_v36 = vadd.f32 1e-05, %v1060_v6 }
 0x30e   :  { %v1121_v8 = vpop.f32.mrf.mxu0  ;;  %v1092_v50 = vpop.f32.mrf.mxu3 }
 0x30f   :  { %v1090_v37 = vadd.f32 %v1089_v59, %v1061_v36  ;;  %v1122_v45 = vadd.f32 1e-05, %v1121_v8 }
 0x310   :  { %v1153_v46 = vpop.f32.mrf.mxu1 }
 0x311   :  { %v1629_v22 = vpop.eup %1628  ;;  %1630 = vrsqrt.f32 %v1090_v37  ;;  %v1151_v44 = vadd.f32 %v1150_v41, %v1122_v45  ;;  %vm1165_vm6 = vweird.f32 %v1090_v37 }
 0x312   :  { %v1170_v48 = vmul.f32 %v1629_v22, %v1148_v0  ;;  %vm1176_vm2 = vweird.f32 %v1629_v22 }
 0x313   :  { %1632 = vrsqrt.f32 %v1151_v44  ;;  %vm1177_vm4 = vmor %vm1175_vm3, %vm1176_vm2  ;;  %vm1195_vm9 = vweird.f32 %v1151_v44 }
 0x314   :  { %v1171_v55 = vmul.f32 %v1629_v22, %v1170_v48  ;;  %v1063_v31 = vpop.f32.mrf.mxu2 }
 0x315   :  { %v1064_v15 = vadd.f32 1e-05, %v1063_v31 }
 0x316   :  { %v1172_v53 = vmul.f32 0.5, %v1171_v55  ;;  %v1124_v52 = vpop.f32.mrf.mxu0  ;;  %v1095_v18 = vpop.f32.mrf.mxu3 }
 0x317   :  { %v1631_v60 = vpop.eup %1630  ;;  %v2391_v5 = vadd.f32 %v1092_v50, %v1064_v15  ;;  %v1125_v7 = vadd.f32 1e-05, %v1124_v52 }
 0x318   :  { %v1173_v9 = vsub.f32 1.5, %v1172_v53  ;;  %v1160_v11 = vmul.f32 %v1631_v60, %v1090_v37  ;;  %vm1166_vm5 = vweird.f32 %v1631_v60 }
 0x319   :  { %v1633_v29 = vpop.eup %1632  ;;  %1634 = vrsqrt.f32 %v2391_v5  ;;  %v2395_v57 = vadd.f32 %v1153_v46, %v1125_v7  ;;  %vm1167_vm8 = vmor %vm1165_vm6, %vm1166_vm5  ;;  %vm1185_vm12 = vweird.f32 %v2391_v5 }
 0x31a   :  { %v1174_v61 = vmul.f32 %v1629_v22, %v1173_v9  ;;  %v1161_v2 = vmul.f32 %v1631_v60, %v1160_v11  ;;  %v1190_v17 = vmul.f32 %v1633_v29, %v1151_v44  ;;  %vm1196_vm7 = vweird.f32 %v1633_v29 }
 0x31b   :  { %1636 = vrsqrt.f32 %v2395_v57  ;;  %vm1197_vm10 = vmor %vm1195_vm9, %vm1196_vm7  ;;  %vm1215_vm15 = vweird.f32 %v2395_v57 }
 0x31c   :  { %v1178_v24 = vsel %vm1177_vm4, %v1629_v22, %v1174_v61  ;;  %v1162_v43 = vmul.f32 0.5, %v1161_v2  ;;  %v1191_v33 = vmul.f32 %v1633_v29, %v1190_v17  ;;  %v1066_v51 = vpop.f32.mrf.mxu2 }
 0x31d   :  { %v1240_v4 = vmul.f32 %v1178_v24, %v2351_v16  ;;  %v1067_v28 = vadd.f32 1e-05, %v1066_v51 }
 0x31e   :  { %v1163_v34 = vsub.f32 1.5, %v1162_v43  ;;  %v1192_v35 = vmul.f32 0.5, %v1191_v33  ;;  %v1098_v41 = vpop.f32.mrf.mxu3 }
 0x31f   :  { %v1635_v14 = vpop.eup %1634  ;;  %v1254_v63 = vmul.f32 %v2397_v19, %v1240_v4  ;;  %v2406_v13 = vadd.f32 %v1095_v18, %v1067_v28 }
 0x320   :  { %v1164_v39 = vmul.f32 %v1631_v60, %v1163_v34  ;;  %v1193_v47 = vsub.f32 1.5, %v1192_v35  ;;  %v1180_v16 = vmul.f32 %v1635_v14, %v2391_v5  ;;  %vm1186_vm11 = vweird.f32 %v1635_v14 }
 0x321   :  { %v1637_v30 = vpop.eup %1636  ;;  %v1268_v49 = vadd.f32 %v2401_v25, %v1254_v63  ;;  %1638 = vrsqrt.f32 %v2406_v13  ;;  %vm1187_vm14 = vmor %vm1185_vm12, %vm1186_vm11  ;;  %vm1205_vm2 = vweird.f32 %v2406_v13 }
 0x322   :  { %v1168_v32 = vsel %vm1167_vm8, %v1631_v60, %v1164_v39  ;;  %v1194_v62 = vmul.f32 %v1633_v29, %v1193_v47  ;;  %v1181_v59 = vmul.f32 %v1635_v14, %v1180_v16  ;;  %v1210_v40 = vmul.f32 %v1637_v30, %v2395_v57 }
 0x323   :  { %1276 = vst [vmem:[#allocation14 + $0x8] sm:$0xff] %v1268_v49  ;;  %v1239_v23 = vmul.f32 %v1168_v32, %v2356_v3  ;;  %vm1216_vm13 = vweird.f32 %v1637_v30 }
 0x324   :  { %v1198_v0 = vsel %vm1197_vm10, %v1633_v29, %v1194_v62  ;;  %v1182_v6 = vmul.f32 0.5, %v1181_v59  ;;  %v1211_v36 = vmul.f32 %v1637_v30, %v1210_v40  ;;  %v1069_v8 = vpop.f32.mrf.mxu2  ;;  %vm1217_vm0 = vmor %vm1215_vm15, %vm1216_vm13 }
 0x325   :  { %v1253_v37 = vmul.f32 %v2410_v54, %v1239_v23  ;;  %v1242_v45 = vmul.f32 %v1198_v0, %v2361_v21  ;;  %v1070_v50 = vadd.f32 1e-05, %v1069_v8 }
 0x326   :  { %v1183_v22 = vsub.f32 1.5, %v1182_v6  ;;  %v1212_v44 = vmul.f32 0.5, %v1211_v36  ;;  %v1156_v17 = vpop.f32.mrf.mxu3 }
 0x327   :  { %v1639_v48 = vpop.eup %1638  ;;  %v1267_v3 = vadd.f32 %v2415_v20, %v1253_v37  ;;  %v1256_v55 = vmul.f32 %v2397_v19, %v1242_v45  ;;  %v1099_v31 = vadd.f32 %v1098_v41, %v1070_v50 }
 0x328   :  { %v1184_v15 = vmul.f32 %v1635_v14, %v1183_v22  ;;  %v1213_v53 = vsub.f32 1.5, %v1212_v44  ;;  %v1200_v52 = vmul.f32 %v1639_v48, %v2406_v13  ;;  %vm1206_vm1 = vweird.f32 %v1639_v48 }
 0x329   :  { %1275 = vst [vmem:[#allocation14] sm:$0xff] %v1267_v3  ;;  %v1270_v21 = vadd.f32 %v2401_v25, %v1256_v55  ;;  %1640 = vrsqrt.f32 %v1099_v31  ;;  %vm1207_vm3 = vmor %vm1205_vm2, %vm1206_vm1  ;;  %vm1225_vm5 = vweird.f32 %v1099_v31 }
 0x32a   :  { %v1188_v60 = vsel %vm1187_vm14, %v1635_v14, %v1184_v15  ;;  %v1214_v1 = vmul.f32 %v1637_v30, %v1213_v53  ;;  %v1201_v7 = vmul.f32 %v1639_v48, %v1200_v52 }
 0x32b   :  { %1278 = vst [vmem:[#allocation14 + $0x18] sm:$0xff] %v1270_v21  ;;  %v1241_v9 = vmul.f32 %v1188_v60, %v2366_v10 }
 0x32c   :  { %v1218_v5 = vsel %vm1217_vm0, %v1637_v30, %v1214_v1  ;;  %v1202_v11 = vmul.f32 0.5, %v1201_v7  ;;  %v1127_v46 = vpop.f32.mrf.mxu2 }
 0x32d   :  { %v1255_v29 = vmul.f32 %v2410_v54, %v1241_v9  ;;  %v1244_v42 = vmul.f32 %v1218_v5, %v2369_v26  ;;  %v1128_v61 = vadd.f32 1e-05, %v1127_v46 }
 0x32e   :  { %v1203_v2 = vsub.f32 1.5, %v1202_v11 }
 0x32f   :  { %v1641_v18 = vpop.eup %1640  ;;  %v1269_v24 = vadd.f32 %v2415_v20, %v1255_v29  ;;  %v1258_v57 = vmul.f32 %v2397_v19, %v1244_v42  ;;  %v1157_v43 = vadd.f32 %v1156_v17, %v1128_v61 }
 0x330   :  { %v1204_v33 = vmul.f32 %v1639_v48, %v1203_v2  ;;  %v1220_v10 = vmul.f32 %v1641_v18, %v1099_v31  ;;  %vm1226_vm4 = vweird.f32 %v1641_v18 }
 0x331   :  { %1277 = vst [vmem:[#allocation14 + $0x10] sm:$0xff] %v1269_v24  ;;  %v1272_v51 = vadd.f32 %v2401_v25, %v1258_v57  ;;  %1642 = vrsqrt.f32 %v1157_v43  ;;  %vm1227_vm6 = vmor %vm1225_vm5, %vm1226_vm4  ;;  %vm1235_vm8 = vweird.f32 %v1157_v43 }
 0x332   :  { %v1208_v26 = vsel %vm1207_vm3, %v1639_v48, %v1204_v33  ;;  %v1221_v4 = vmul.f32 %v1641_v18, %v1220_v10 }
 0x333   :  { %1280 = vst [vmem:[#allocation14 + $0x28] sm:$0xff] %v1272_v51  ;;  %v1243_v27 = vmul.f32 %v1208_v26, %v2376_v12 }
 0x334   :  { %v1222_v28 = vmul.f32 0.5, %v1221_v4 }
 0x335   :  { %v1257_v34 = vmul.f32 %v2410_v54, %v1243_v27 }
 0x336   :  { %v1223_v35 = vsub.f32 1.5, %v1222_v28 }
 0x337   :  { %v1643_v14 = vpop.eup %1642  ;;  %v1271_v63 = vadd.f32 %v2415_v20, %v1257_v34 }
 0x338   :  { %v1224_v58 = vmul.f32 %v1641_v18, %v1223_v35  ;;  %v1230_v13 = vmul.f32 %v1643_v14, %v1157_v43  ;;  %vm1236_vm7 = vweird.f32 %v1643_v14 }
 0x339   :  { %1279 = vst [vmem:[#allocation14 + $0x20] sm:$0xff] %v1271_v63  ;;  %vm1237_vm9 = vmor %vm1235_vm8, %vm1236_vm7 }
 0x33a   :  { %v1228_v39 = vsel %vm1227_vm6, %v1641_v18, %v1224_v58  ;;  %v1231_v47 = vmul.f32 %v1643_v14, %v1230_v13 }
 0x33b   :  { %v1245_v16 = vmul.f32 %v1228_v39, %v2386_v56 }
 0x33c   :  { %v1232_v30 = vmul.f32 0.5, %v1231_v47 }
 0x33d   :  { %v1259_v12 = vmul.f32 %v2410_v54, %v1245_v16 }
 0x33e   :  { %v1233_v49 = vsub.f32 1.5, %v1232_v30 }
 0x33f   :  { %v1273_v32 = vadd.f32 %v2415_v20, %v1259_v12 }
 0x340   :  { %v1234_v62 = vmul.f32 %v1643_v14, %v1233_v49 }
 0x341   :  { %1281 = vst [vmem:[#allocation14 + $0x30] sm:$0xff] %v1273_v32 }
 0x342   :  { %v1238_v59 = vsel %vm1237_vm9, %v1643_v14, %v1234_v62 }
 0x343   :  { %v1246_v40 = vmul.f32 %v1238_v59, %v2379_v38 }
 0x345   :  { %v1260_v56 = vmul.f32 %v2397_v19, %v1246_v40 }
 0x347   :  { %v1274_v54 = vadd.f32 %v2401_v25, %v1260_v56 }
 0x349   :  { %1282 = vst [vmem:[#allocation14 + $0x38] sm:$0xff] %v1274_v54 }
 0x34a   :  { %1295 = dma.vmem_to_hbm [thread:$0]  %s1288_s13, 1024, %s1290_s17, [#allocation4], %s1859_s4, %s1859_s4, %s1860_s15  }
 0x34b   :  { %1844 = dma.done.wait [#allocation4], 1024  }
 0x34c   :  { %1845 = vsyncadd [#allocation4], 4294966272 }
 0x34d   :  { %1300 = vsyncpa [#allocation3], 1 }
 0x34e   :  { %1301 = vsyncpa [#allocation6], 1 }
 0x34f   :  { %1302 = vsyncpa [#allocation9], 1 }
 0x350   :  { %1303 = vsyncpa [#allocation12], 1 }
 0x351   :  { %1304 = vsyncpa [#allocation4], 1 }

// kernel: tpu_custom_call.1
= control target key start
LH: loop header
LB: loop body
LE: loop exit
PB: predicated region body
PF: predicated region fallthrough
CT: control target
= control target key end

     0   :  { %12 = vsyncpa [#allocation3], 0  ;;  %s2448_s0 = inlined_call_operand.hbm [shape: bf16[32,32], index: 0, kind: input, shape index: {}]   ;;  %s2449_s1 = inlined_call_operand.hbm [shape: bf16[16,48], index: 1, kind: input, shape index: {}]   ;;  %s2450_s2 = inlined_call_operand.hbm [shape: bf16[32,768], index: 2, kind: input, shape index: {}]   ;;  %s2451_s3 = inlined_call_operand.hbm [shape: bf16[256,256], index: 3, kind: input, shape index: {}]   ;;  %s2452_s4 = inlined_call_operand.hbm [shape: bf16[32,256], index: 4, kind: input, shape index: {}]   ;;  %s2453_s5 = inlined_call_operand.hbm [shape: f32[3,256], index: 5, kind: input, shape index: {}]   ;;  %s2454_s6 = inlined_call_operand.hbm [shape: f32[256,256], index: 6, kind: input, shape index: {}]   ;;  %s2455_s7 = inlined_call_operand.hbm [shape: f32[32,256], index: 7, kind: output, shape index: {}]  }
   0x1   :  { %13 = vsyncpa [#allocation6], 0 }
   0x2   :  { %14 = vsyncpa [#allocation9], 0 }
   0x3   :  { %15 = vsyncpa [#allocation12], 0 }
   0x4   :  { %16 = vsyncpa [#allocation4], 0  ;;  %s34_s26 = sshll.u32 %s2449_s1, 4  ;;  %s1846_s27 = smov [#allocation5]   ;;  %s35_s26 = int_to_ptr.hbm [resolvable:$true] %s34_s26 }
   0x5   :  { %s36_s28 = sshll.u32 %s1846_s27, 4  ;;  %s60_s8 = sshll.u32 %s2451_s3, 4  ;;  %s37_s28 = int_to_ptr.vmem [resolvable:$true] %s36_s28  ;;  %s61_s8 = int_to_ptr.hbm [resolvable:$true] %s60_s8 }
   0x6   :  { %s1847_s9 = smov 64   ;;  %s1848_s10 = smov 4  }
   0x7   :  { %42 = dma.hbm_to_vmem [thread:$0]  %s35_s26, 128, %s37_s28, [#allocation6], %s1847_s9, %s1847_s9, %s1848_s10  }
   0x8   :  { %s1849_s11 = smov [#allocation8]   ;;  %s1850_s13 = smov 128  }
   0x9   :  { %s62_s12 = sshll.u32 %s1849_s11, 4  ;;  %s1851_s14 = smov 8   ;;  %s63_s12 = int_to_ptr.vmem [resolvable:$true] %s62_s12 }
   0xa   :  { %68 = dma.hbm_to_vmem [thread:$0]  %s61_s8, 4096, %s63_s12, [#allocation9], %s1850_s13, %s1850_s13, %s1851_s14  }
   0xb   :  { %s87_s16 = sshll.u32 %s2453_s5, 4  ;;  %s1852_s17 = smov [#allocation11]   ;;  %s88_s16 = int_to_ptr.hbm [resolvable:$true] %s87_s16 }
   0xc   :  { %s89_s3 = sshll.u32 %s1852_s17, 4  ;;  %s21_s20 = sshll.u32 %s2448_s0, 4  ;;  %s90_s3 = int_to_ptr.vmem [resolvable:$true] %s89_s3  ;;  %s22_s20 = int_to_ptr.hbm [resolvable:$true] %s21_s20 }
   0xd   :  { %92 = dma.hbm_to_vmem [thread:$0]  %s88_s16, 128, %s90_s3, [#allocation12]  }
   0xe   :  { %s1853_s21 = smov [#allocation2]   ;;  %s47_s25 = sshll.u32 %s2450_s2, 4  ;;  %s48_s25 = int_to_ptr.hbm [resolvable:$true] %s47_s25 }
   0xf   :  { %s23_s22 = sshll.u32 %s1853_s21, 4  ;;  %s1854_s5 = smov [#allocation7]   ;;  %s24_s22 = int_to_ptr.vmem [resolvable:$true] %s23_s22 }
  0x10   :  { %29 = dma.hbm_to_vmem [thread:$0]  %s22_s20, 256, %s24_s22, [#allocation3], %s1847_s9, %s1847_s9, %s1848_s10  }
  0x11   :  { %s49_s26 = sshll.u32 %s1854_s5, 4  ;;  %s73_s29 = sshll.u32 %s2452_s4, 4  ;;  %s50_s26 = int_to_ptr.vmem [resolvable:$true] %s49_s26  ;;  %s74_s29 = int_to_ptr.hbm [resolvable:$true] %s73_s29 }
  0x12   :  { %s1855_s30 = smov 384   ;;  %s1856_s0 = smov 24  }
  0x13   :  { %55 = dma.hbm_to_vmem [thread:$0]  %s48_s25, 1536, %s50_s26, [#allocation6], %s1855_s30, %s1855_s30, %s1856_s0  }
  0x14   :  { %s1857_s8 = smov [#allocation10]   ;;  %s97_s2 = sshll.u32 %s2454_s6, 4  ;;  %s98_s2 = int_to_ptr.hbm [resolvable:$true] %s97_s2 }
  0x15   :  { %s75_s11 = sshll.u32 %s1857_s8, 4  ;;  %s1858_s9 = smov [#allocation13]   ;;  %s76_s11 = int_to_ptr.vmem [resolvable:$true] %s75_s11 }
  0x16   :  { %81 = dma.hbm_to_vmem [thread:$0]  %s74_s29, 512, %s76_s11, [#allocation9], %s1850_s13, %s1850_s13, %s1851_s14  }
  0x17   :  { %s99_s10 = sshll.u32 %s1858_s9, 4  ;;  %s1859_s4 = smov 256   ;;  %s100_s10 = int_to_ptr.vmem [resolvable:$true] %s99_s10 }
  0x18   :  { %s1860_s15 = smov 16  }
  0x19   :  { %105 = dma.hbm_to_vmem [thread:$0]  %s98_s2, 8192, %s100_s10, [#allocation12], %s1859_s4, %s1859_s4, %s1860_s15  }
  0x1a   :  { %1836 = dma.done.wait [#allocation3], 256  }
  0x1b   :  { %1837 = vsyncadd [#allocation3], 4294967040 }
  0x1c   :  { %1838 = dma.done.wait [#allocation6], 1664  }
  0x1d   :  { %1839 = vsyncadd [#allocation6], 4294965632 }
  0x1e   :  { %1840 = dma.done.wait [#allocation9], 4608  }
  0x1f   :  { %1841 = vsyncadd [#allocation9], 4294962688 }
  0x20   :  { %1842 = dma.done.wait [#allocation12], 8320  }
  0x21   :  { %1843 = vsyncadd [#allocation12], 4294958976  ;;  %v1339_v0 = vld [vmem:[#allocation7 + $0x30] sm:$0xf]  ;;  %v1540_v1 = vld [vmem:[#allocation7 + $0x44] sm:$0xf0] }
  0x22   :  { %v1537_v2 = vld [vmem:[#allocation7 + $0x34] sm:$0xf]  ;;  %v1340_v3 = vor.u32 %v1540_v1, %v1339_v0  ;;  %v1341_v4 = vld [vmem:[#allocation7 + $0x48] sm:$0xf0]  ;;  %v1315_v5 = vld [vmem:[#allocation7] sm:$0xf] }
  0x23   :  { %v1534_v6 = vld [vmem:[#allocation7 + $0x14] sm:$0xf0]  ;;  %v1344_v7 = vor.u32 %v1537_v2, %v1341_v4  ;;  %v1531_v8 = vld [vmem:[#allocation7 + $0x4] sm:$0xf]  ;;  %v1317_v9 = vld [vmem:[#allocation7 + $0x18] sm:$0xf0] }
  0x24   :  { %234 = vmatpush.bf16.msra.mxu0 %v1340_v3  ;;  %v1316_v10 = vor.u32 %v1534_v6, %v1315_v5  ;;  %vm221_vm0 = vcmask 261120   ;;  %v1355_v11 = vld [vmem:[#allocation7 + $0x40] sm:$0xf]  ;;  %v1542_v12 = vld [vmem:[#allocation7 + $0x54] sm:$0xf0]  ;;  %v1320_v13 = vor.u32 %v1531_v8, %v1317_v9  ;;  %v1932_v14 = vld [vmem:[#allocation2] sm:$0xff] }
  0x25   :  { %253 = vmatpush.bf16.msra.mxu1 %v1344_v7  ;;  %v1356_v15 = vor.u32 %v1542_v12, %v1355_v11  ;;  %v1539_v16 = vld [vmem:[#allocation7 + $0x44] sm:$0xf]  ;;  %v1357_v17 = vld [vmem:[#allocation7 + $0x58] sm:$0xf0]  ;;  %v1347_v18 = vld [vmem:[#allocation7 + $0x38] sm:$0xf] }
  0x26   :  { %v1360_v19 = vor.u32 %v1539_v16, %v1357_v17  ;;  %v1541_v20 = vld [vmem:[#allocation7 + $0x4c] sm:$0xf0]  ;;  %v1538_v21 = vld [vmem:[#allocation7 + $0x3c] sm:$0xf]  ;;  %v1349_v22 = vld [vmem:[#allocation7 + $0x50] sm:$0xf0] }
  0x27   :  { %v1348_v23 = vor.u32 %v1541_v20, %v1347_v18  ;;  %v1352_v24 = vor.u32 %v1538_v21, %v1349_v22  ;;  %v1323_v25 = vld [vmem:[#allocation7 + $0x8] sm:$0xf]  ;;  %v1535_v26 = vld [vmem:[#allocation7 + $0x1c] sm:$0xf0]  ;;  %v1532_v27 = vld [vmem:[#allocation7 + $0xc] sm:$0xf] }
  0x28   :  { %235 = vmatpush.bf16.msra.mxu0 %v1316_v10  ;;  %v1325_v28 = vld [vmem:[#allocation7 + $0x20] sm:$0xf0]  ;;  %v1331_v29 = vld [vmem:[#allocation7 + $0x10] sm:$0xf]  ;;  %v1536_v30 = vld [vmem:[#allocation7 + $0x24] sm:$0xf0]  ;;  %v1324_v34 = vor.u32 %v1535_v26, %v1323_v25 }
  0x29   :  { %254 = vmatpush.bf16.msra.mxu1 %v1320_v13  ;;  %v1332_v31 = vor.u32 %v1536_v30, %v1331_v29  ;;  %v1533_v32 = vld [vmem:[#allocation7 + $0x14] sm:$0xf]  ;;  %v1333_v33 = vld [vmem:[#allocation7 + $0x28] sm:$0xf0]  ;;  %272 = vmatpush.bf16.msra.mxu2 %v1348_v23  ;;  %v1328_v36 = vor.u32 %v1532_v27, %v1325_v28  ;;  %v1391_v60 = vld [vmem:[#allocation10 + $0x10] sm:$0xf] }
  0x2a   :  { %v1336_v35 = vor.u32 %v1533_v32, %v1333_v33  ;;  %291 = vmatpush.bf16.msra.mxu3 %v1352_v24  ;;  %v1942_v37 = vld [vmem:[#allocation2 + $0x8] sm:$0xff]  ;;  %v1579_v61 = vld [vmem:[#allocation10 + $0x14] sm:$0xf0]  ;;  %v1393_v3 = vld [vmem:[#allocation10 + $0x18] sm:$0xf0]  ;;  %vm391_vm1 = vcmask 392192  }
  0x2b   :  { %1361 = vmatmul.msk.bf16.vlgmr.msra.gmra.mxu0 %vm221_vm0, %v1932_v14  ;;  %v1578_v62 = vld [vmem:[#allocation10 + $0x14] sm:$0xf]  ;;  %v1392_v2 = vor.u32 %v1579_v61, %v1391_v60  ;;  %v1383_v4 = vld [vmem:[#allocation10] sm:$0xf]  ;;  %v1577_v5 = vld [vmem:[#allocation10 + $0x4] sm:$0xf0] }
  0x2c   :  { %310 = vmatpush.bf16.msrb.mxu0 %v1356_v15  ;;  %1363 = vmatmul.msk.bf16.vlgmr.msra.gmra.mxu1 %vm221_vm0, %v1932_v14  ;;  %v1396_v11 = vor.u32 %v1578_v62, %v1393_v3  ;;  %v1576_v12 = vld [vmem:[#allocation10 + $0x4] sm:$0xf]  ;;  %v1385_v13 = vld [vmem:[#allocation10 + $0x8] sm:$0xf0]  ;;  %v1384_v18 = vor.u32 %v1577_v5, %v1383_v4  ;;  %v1461_v20 = vld [vmem:[#allocation8 + $0x78] sm:$0xf0] }
  0x2d   :  { %329 = vmatpush.bf16.msrb.mxu1 %v1360_v19  ;;  %273 = vmatpush.bf16.msra.mxu2 %v1324_v34  ;;  %v1558_v19 = vld [vmem:[#allocation8 + $0x74] sm:$0xf]  ;;  %v1388_v21 = vor.u32 %v1576_v12, %v1385_v13  ;;  %v1525_v26 = vld [vmem:[#allocation8 + $0xf8] sm:$0xf0]  ;;  %v1556_v29 = vld [vmem:[#allocation8 + $0x64] sm:$0xf] }
  0x2e   :  { %292 = vmatpush.bf16.msra.mxu3 %v1328_v36  ;;  %v1464_v22 = vor.u32 %v1558_v19, %v1461_v20  ;;  %v1574_v23 = vld [vmem:[#allocation8 + $0xf4] sm:$0xf]  ;;  %v1453_v30 = vld [vmem:[#allocation8 + $0x68] sm:$0xf0]  ;;  %v1552_v61 = vld [vmem:[#allocation8 + $0x44] sm:$0xf] }
  0x2f   :  { %v1528_v28 = vor.u32 %v1574_v23, %v1525_v26  ;;  %v1517_v36 = vld [vmem:[#allocation8 + $0xe8] sm:$0xf0]  ;;  %v1523_v23 = vld [vmem:[#allocation8 + $0xf0] sm:$0xf]  ;;  %s1861_s6 = smov [#allocation14]   ;;  %s1289_s17 = sshll.u32 %s2455_s7, 4  ;;  %s1290_s17 = int_to_ptr.hbm [resolvable:$true] %s1289_s17 }
  0x30   :  { %311 = vmatpush.bf16.msrb.mxu0 %v1332_v31  ;;  %1365 = vmatmul.msk.bf16.vlgmr.msra.gmra.mxu2 %vm221_vm0, %v1932_v14  ;;  %s1287_s13 = sshll.u32 %s1861_s6, 4  ;;  %s1288_s13 = int_to_ptr.vmem [resolvable:$true] %s1287_s13 }
  0x31   :  { %330 = vmatpush.bf16.msrb.mxu1 %v1336_v35  ;;  %1367 = vmatmul.msk.bf16.vlgmr.msra.gmra.mxu3 %vm221_vm0, %v1932_v14  ;;  %v1572_v35 = vld [vmem:[#allocation8 + $0xe4] sm:$0xf] }
  0x34   :  { %555 = vmatpush.bf16.msra.mxu0 %v1392_v2 }
  0x35   :  { %574 = vmatpush.bf16.msra.mxu1 %v1396_v11 }
  0x38   :  { %556 = vmatpush.bf16.msra.mxu0 %v1384_v18  ;;  %v1459_v18 = vld [vmem:[#allocation8 + $0x70] sm:$0xf] }
  0x39   :  { %575 = vmatpush.bf16.msra.mxu1 %v1388_v21 }
  0x3b   :  { %1362 = vmatmul.msk.bf16.gmra.mxu0 %vm221_vm0, %v1942_v37 }
  0x3c   :  { %1364 = vmatmul.msk.bf16.gmra.mxu1 %vm221_vm0, %v1942_v37 }
  0x40   :  { %1366 = vmatmul.msk.bf16.gmra.mxu2 %vm221_vm0, %v1942_v37 }
  0x41   :  { %1368 = vmatmul.msk.bf16.gmra.mxu3 %vm221_vm0, %v1942_v37 }
  0x4b   :  { %1369 = vmatmul.msk.bf16.vlgmr.msrb.gmra.mxu0 %vm221_vm0, %v1932_v14 }
  0x4c   :  { %1371 = vmatmul.msk.bf16.vlgmr.msrb.gmra.mxu1 %vm221_vm0, %v1932_v14  ;;  %786 = vmatpush.bf16.msrb.mxu0 %v1464_v22  ;;  %v1559_v22 = vld [vmem:[#allocation8 + $0x74] sm:$0xf0] }
  0x4d   :  { %805 = vmatpush.bf16.msrb.mxu1 %v1528_v28  ;;  %v1460_v28 = vor.u32 %v1559_v22, %v1459_v18 }
  0x5b   :  { %1370 = vmatmul.msk.bf16.gmra.mxu0 %vm221_vm0, %v1942_v37 }
  0x5c   :  { %1372 = vmatmul.msk.bf16.gmra.mxu1 %vm221_vm0, %v1942_v37 }
  0x6b   :  { %1397 = vmatmul.msk.bf16.vlgmr.msra.gmra.mxu0 %vm221_vm0, %v1932_v14 }
  0x6c   :  { %1399 = vmatmul.msk.bf16.vlgmr.msra.gmra.mxu1 %vm221_vm0, %v1932_v14 }
  0x7b   :  { %1398 = vmatmul.msk.bf16.gmra.mxu0 %vm221_vm0, %v1942_v37 }
  0x7c   :  { %1400 = vmatmul.msk.bf16.gmra.mxu1 %vm221_vm0, %v1942_v37 }
  0xa8   :  { %v237_v38 = vpop.f32.mrf.mxu0 }
  0xa9   :  { %v256_v39 = vpop.f32.mrf.mxu1 }
  0xaa   :  { %v342_v24 = vpack.c.bf16 %v256_v39, %v237_v38  ;;  %v1520_v39 = vor.u32 %v1572_v35, %v1517_v36  ;;  %v1443_v36 = vld [vmem:[#allocation8 + $0x50] sm:$0xf] }
  0xac   :  { %v359_v38 = vunpack.c.h.b16 %v342_v24  ;;  %806 = vmatpush.bf16.msrb.mxu1 %v1520_v39 }
  0xb0   :  { %v239_v40 = vpop.f32.mrf.mxu0 }
  0xb1   :  { %v258_v41 = vpop.f32.mrf.mxu1 }
  0xb2   :  { %v345_v58 = vpack.c.bf16 %v258_v41, %v239_v40  ;;  %v1456_v40 = vor.u32 %v1556_v29, %v1453_v30  ;;  %v358_v41 = vunpack.c.l.b16 %v342_v24  ;;  %v1575_v24 = vld [vmem:[#allocation8 + $0xf4] sm:$0xf0] }
  0xb3   :  { %v275_v45 = vpop.f32.mrf.mxu2  ;;  %v1524_v29 = vor.u32 %v1575_v24, %v1523_v23  ;;  %v1405_v23 = vld [vmem:[#allocation8 + $0x8] sm:$0xf0]  ;;  %v1467_v24 = vld [vmem:[#allocation8 + $0x80] sm:$0xf] }
  0xb4   :  { %v294_v47 = vpop.f32.mrf.mxu3  ;;  %v360_v31 = vunpack.c.l.b16 %v345_v58  ;;  %v361_v32 = vunpack.c.h.b16 %v345_v58  ;;  %787 = vmatpush.bf16.msrb.mxu0 %v1456_v40  ;;  %v1555_v40 = vld [vmem:[#allocation8 + $0x54] sm:$0xf0] }
  0xb5   :  { %v343_v54 = vpack.c.bf16 %v294_v47, %v275_v45  ;;  %v1554_v45 = vld [vmem:[#allocation8 + $0x54] sm:$0xf]  ;;  %v1445_v47 = vld [vmem:[#allocation8 + $0x58] sm:$0xf0]  ;;  %v1444_v39 = vor.u32 %v1555_v40, %v1443_v36  ;;  %v2002_v36 = vld [vmem:[#allocation13 + $0x1d8] sm:$0xff] }
  0xb6   :  { %v2004_v40 = vld [vmem:[#allocation13 + $0xf0] sm:$0xff] }
  0xb7   :  { %v368_v6 = vunpack.c.l.b16 %v343_v54  ;;  %v369_v7 = vunpack.c.h.b16 %v343_v54 }
  0xb8   :  { %v1960_v42 = vpop.f32.mrf.mxu0 }
  0xb9   :  { %v1962_v43 = vpop.f32.mrf.mxu1 }
  0xbb   :  { %v277_v50 = vpop.f32.mrf.mxu2 }
  0xbc   :  { %v296_v51 = vpop.f32.mrf.mxu3 }
  0xbd   :  { %v346_v56 = vpack.c.bf16 %v296_v51, %v277_v50  ;;  %v1570_v50 = vld [vmem:[#allocation8 + $0xd4] sm:$0xf]  ;;  %v1509_v51 = vld [vmem:[#allocation8 + $0xd8] sm:$0xf0] }
  0xbe   :  { %v1512_v60 = vor.u32 %v1570_v50, %v1509_v51 }
  0xbf   :  { %v370_v8 = vunpack.c.l.b16 %v346_v56  ;;  %v371_v15 = vunpack.c.h.b16 %v346_v56 }
  0xc0   :  { %v1964_v44 = vpop.f32.mrf.mxu0  ;;  %807 = vmatpush.bf16.msrb.mxu1 %v1512_v60 }
  0xc1   :  { %v1966_v46 = vpop.f32.mrf.mxu1  ;;  %v372_v33 = vpack.c.b16 %v370_v8, %v368_v6  ;;  %v373_v34 = vpack.c.b16 %v371_v15, %v369_v7  ;;  %v1429_v15 = vld [vmem:[#allocation8 + $0x38] sm:$0xf0] }
  0xc2   :  { %v351_v2 = vpack.c.bf16 %v1966_v46, %v1964_v44  ;;  %v1550_v46 = vld [vmem:[#allocation8 + $0x34] sm:$0xf] }
  0xc3   :  { %v280_v9 = vpop.f32.mrf.mxu2 }
  0xc4   :  { %v299_v10 = vpop.f32.mrf.mxu3  ;;  %v428_v19 = vunpack.c.h.b16 %v351_v2 }
  0xc5   :  { %v349_v58 = vpack.c.bf16 %v299_v10, %v280_v9 }
  0xc7   :  { %v435_v7 = vunpack.c.l.b16 %v349_v58  ;;  %v436_v8 = vunpack.c.h.b16 %v349_v58 }
  0xc8   :  { %v313_v48 = vpop.f32.mrf.mxu0 }
  0xc9   :  { %v332_v49 = vpop.f32.mrf.mxu1 }
  0xca   :  { %v344_v52 = vpack.c.bf16 %v332_v49, %v313_v48  ;;  %v362_v48 = vpack.c.b16 %v360_v31, %v358_v41  ;;  %v363_v49 = vpack.c.b16 %v361_v32, %v359_v38  ;;  %v1557_v31 = vld [vmem:[#allocation8 + $0x64] sm:$0xf0]  ;;  %v1515_v32 = vld [vmem:[#allocation8 + $0xe0] sm:$0xf]  ;;  %v1507_v41 = vld [vmem:[#allocation8 + $0xd0] sm:$0xf] }
  0xcb   :  { %v1571_v38 = vld [vmem:[#allocation8 + $0xd4] sm:$0xf0] }
  0xcc   :  { %v378_v59 = vunpack.c.l.b16 %v344_v52  ;;  %v379_v63 = vunpack.c.h.b16 %v344_v52  ;;  %v1972_v52 = vld [vmem:[#allocation5] sm:$0xff]  ;;  %v301_v54 = vpop.f32.mrf.mxu3  ;;  %v1508_v37 = vor.u32 %v1571_v38, %v1507_v41  ;;  %v2006_v41 = vld [vmem:[#allocation13 + $0xf8] sm:$0xff]  ;;  %v2010_v38 = vld [vmem:[#allocation13 + $0xe0] sm:$0xff] }
  0xd0   :  { %v315_v53 = vpop.f32.mrf.mxu0 }
  0xd1   :  { %v334_v55 = vpop.f32.mrf.mxu1 }
  0xd2   :  { %v347_v57 = vpack.c.bf16 %v334_v55, %v315_v53  ;;  %v282_v53 = vpop.f32.mrf.mxu2 }
  0xd3   :  { %v352_v14 = vpack.c.bf16 %v301_v54, %v282_v53  ;;  %v1427_v53 = vld [vmem:[#allocation8 + $0x30] sm:$0xf]  ;;  %v1551_v54 = vld [vmem:[#allocation8 + $0x34] sm:$0xf0] }
  0xd4   :  { %v380_v0 = vunpack.c.l.b16 %v347_v57  ;;  %v381_v1 = vunpack.c.h.b16 %v347_v57  ;;  %v1448_v57 = vor.u32 %v1554_v45, %v1445_v47  ;;  %v1435_v45 = vld [vmem:[#allocation8 + $0x40] sm:$0xf]  ;;  %v1553_v47 = vld [vmem:[#allocation8 + $0x44] sm:$0xf0] }
  0xd5   :  { %v437_v13 = vunpack.c.l.b16 %v352_v14  ;;  %v438_v44 = vunpack.c.h.b16 %v352_v14  ;;  %v1436_v50 = vor.u32 %v1553_v47, %v1435_v45  ;;  %v1548_v14 = vld [vmem:[#allocation8 + $0x24] sm:$0xf]  ;;  %v2018_v45 = vld [vmem:[#allocation13 + $0xe8] sm:$0xff]  ;;  %v2022_v47 = vld [vmem:[#allocation13 + $0xd0] sm:$0xff] }
  0xd6   :  { %v382_v16 = vpack.c.b16 %v380_v0, %v378_v59  ;;  %v383_v17 = vpack.c.b16 %v381_v1, %v379_v63  ;;  %v1437_v63 = vld [vmem:[#allocation8 + $0x48] sm:$0xf0]  ;;  %v1568_v0 = vld [vmem:[#allocation8 + $0xc4] sm:$0xf]  ;;  %788 = vmatpush.bf16.msrb.mxu0 %v1448_v57  ;;  %v1566_v57 = vld [vmem:[#allocation8 + $0xb4] sm:$0xf] }
  0xd7   :  { %v1501_v1 = vld [vmem:[#allocation8 + $0xc8] sm:$0xf0]  ;;  %v1440_v9 = vor.u32 %v1552_v61, %v1437_v63  ;;  %v439_v20 = vpack.c.b16 %v437_v13, %v435_v7  ;;  %v440_v21 = vpack.c.b16 %v438_v44, %v436_v8  ;;  %v1419_v61 = vld [vmem:[#allocation8 + $0x20] sm:$0xf]  ;;  %v1411_v7 = vld [vmem:[#allocation8 + $0x10] sm:$0xf] }
  0xd8   :  { %400 = vmatpush.bf16.msrb.mxu2 %v382_v16  ;;  %414 = vmatpush.bf16.msrb.mxu3 %v383_v17  ;;  %v318_v25 = vpop.f32.mrf.mxu0  ;;  %v1504_v10 = vor.u32 %v1568_v0, %v1501_v1  ;;  %v348_v16 = vpack.c.bf16 %v1962_v43, %v1960_v42  ;;  %v427_v17 = vunpack.c.l.b16 %v351_v2  ;;  %v1451_v42 = vld [vmem:[#allocation8 + $0x60] sm:$0xf]  ;;  %v1421_v0 = vld [vmem:[#allocation8 + $0x28] sm:$0xf0]  ;;  %v1565_v2 = vld [vmem:[#allocation8 + $0xa4] sm:$0xf0] }
  0xd9   :  { %v337_v27 = vpop.f32.mrf.mxu1  ;;  %v1483_v1 = vld [vmem:[#allocation8 + $0xa0] sm:$0xf]  ;;  %v1475_v44 = vld [vmem:[#allocation8 + $0x90] sm:$0xf] }
  0xda   :  { %v350_v55 = vpack.c.bf16 %v337_v27, %v318_v25  ;;  %789 = vmatpush.bf16.msrb.mxu0 %v1440_v9  ;;  %808 = vmatpush.bf16.msrb.mxu1 %v1504_v10  ;;  %v1432_v25 = vor.u32 %v1550_v46, %v1429_v15  ;;  %v425_v26 = vunpack.c.l.b16 %v348_v16  ;;  %v426_v27 = vunpack.c.h.b16 %v348_v16  ;;  %v1547_v9 = vld [vmem:[#allocation8 + $0x14] sm:$0xf0]  ;;  %v1546_v10 = vld [vmem:[#allocation8 + $0x14] sm:$0xf] }
  0xdb   :  { %v1563_v46 = vld [vmem:[#allocation8 + $0x94] sm:$0xf0]  ;;  %v1562_v15 = vld [vmem:[#allocation8 + $0x94] sm:$0xf] }
  0xdc   :  { %401 = vmatpush.bf16.msrb.mxu2 %v372_v33  ;;  %415 = vmatpush.bf16.msrb.mxu3 %v373_v34  ;;  %v445_v3 = vunpack.c.l.b16 %v350_v55  ;;  %v446_v4 = vunpack.c.h.b16 %v350_v55  ;;  %v429_v43 = vpack.c.b16 %v427_v17, %v425_v26  ;;  %v430_v30 = vpack.c.b16 %v428_v19, %v426_v27  ;;  %v1573_v33 = vld [vmem:[#allocation8 + $0xe4] sm:$0xf0]  ;;  %v1477_v17 = vld [vmem:[#allocation8 + $0x98] sm:$0xf0]  ;;  %v1403_v19 = vld [vmem:[#allocation8] sm:$0xf] }
  0xdd   :  { %v1452_v34 = vor.u32 %v1557_v31, %v1451_v42  ;;  %v1516_v35 = vor.u32 %v1573_v33, %v1515_v32  ;;  %v1428_v55 = vor.u32 %v1551_v54, %v1427_v53  ;;  %v1476_v16 = vor.u32 %v1563_v46, %v1475_v44  ;;  %v1994_v31 = vld [vmem:[#allocation13 + $0x1e0] sm:$0xff]  ;;  %v1998_v32 = vld [vmem:[#allocation13 + $0x1e8] sm:$0xff]  ;;  %v2000_v33 = vld [vmem:[#allocation13 + $0x1d0] sm:$0xff] }
  0xde   :  { %790 = vmatpush.bf16.msrb.mxu0 %v1432_v25  ;;  %v1480_v18 = vor.u32 %v1562_v15, %v1477_v17  ;;  %v1561_v25 = vld [vmem:[#allocation8 + $0x84] sm:$0xf0]  ;;  %v2036_v53 = vld [vmem:[#allocation13 + $0xc8] sm:$0xff]  ;;  %v2095_v15 = vld [vmem:[#allocation13 + $0x150] sm:$0xff] }
  0xdf   :  { %v1468_v27 = vor.u32 %v1561_v25, %v1467_v24  ;;  %v2039_v54 = vld [vmem:[#allocation13 + $0x1a0] sm:$0xff]  ;;  %v2090_v46 = vld [vmem:[#allocation13 + $0x168] sm:$0xff] }
  0xe0   :  { %402 = vmatpush.bf16.msrb.mxu2 %v362_v48  ;;  %416 = vmatpush.bf16.msrb.mxu3 %v363_v49  ;;  %v320_v56 = vpop.f32.mrf.mxu0  ;;  %v1499_v48 = vld [vmem:[#allocation8 + $0xc0] sm:$0xf]  ;;  %v1569_v49 = vld [vmem:[#allocation8 + $0xc4] sm:$0xf0] }
  0xe1   :  { %v339_v59 = vpop.f32.mrf.mxu1  ;;  %v1500_v51 = vor.u32 %v1569_v49, %v1499_v48  ;;  %v2024_v48 = vld [vmem:[#allocation13 + $0xd8] sm:$0xff]  ;;  %v2027_v49 = vld [vmem:[#allocation13 + $0x1b0] sm:$0xff]  ;;  %v2087_v44 = vld [vmem:[#allocation13 + $0x160] sm:$0xff] }
  0xe2   :  { %v353_v62 = vpack.c.bf16 %v339_v59, %v320_v56  ;;  %v1491_v56 = vld [vmem:[#allocation8 + $0xb0] sm:$0xf]  ;;  %v1493_v59 = vld [vmem:[#allocation8 + $0xb8] sm:$0xf0] }
  0xe3   :  { %1377 = vmatmul.msk.bf16.vlgmr.msrb.gmra.mxu2 %vm391_vm1, %v1972_v52  ;;  %1378 = vmatmul.msk.bf16.vlgmr.msrb.gmra.mxu3 %vm391_vm1, %v1972_v52  ;;  %v1496_v60 = vor.u32 %v1566_v57, %v1493_v59  ;;  %v2051_v59 = vld [vmem:[#allocation13 + $0x190] sm:$0xff] }
  0xe4   :  { %v447_v5 = vunpack.c.l.b16 %v353_v62  ;;  %v448_v6 = vunpack.c.h.b16 %v353_v62  ;;  %v1549_v62 = vld [vmem:[#allocation8 + $0x24] sm:$0xf0] }
  0xe5   :  { %809 = vmatpush.bf16.msrb.mxu1 %v1496_v60  ;;  %v1420_v63 = vor.u32 %v1549_v62, %v1419_v61  ;;  %v2054_v60 = vld [vmem:[#allocation13 + $0x198] sm:$0xff] }
  0xe6   :  { %v449_v11 = vpack.c.b16 %v447_v5, %v445_v3  ;;  %v450_v12 = vpack.c.b16 %v448_v6, %v446_v4  ;;  %v1424_v3 = vor.u32 %v1548_v14, %v1421_v0  ;;  %v1484_v4 = vor.u32 %v1565_v2, %v1483_v1  ;;  %v1564_v5 = vld [vmem:[#allocation8 + $0xa4] sm:$0xf]  ;;  %v1485_v6 = vld [vmem:[#allocation8 + $0xa8] sm:$0xf0]  ;;  %v2060_v1 = vld [vmem:[#allocation13 + $0xa8] sm:$0xff] }
  0xe7   :  { %v1488_v8 = vor.u32 %v1564_v5, %v1485_v6  ;;  %v2058_v0 = vld [vmem:[#allocation13 + $0xa0] sm:$0xff]  ;;  %v2068_v5 = vld [vmem:[#allocation13 + $0x188] sm:$0xff]  ;;  %v2072_v6 = vld [vmem:[#allocation13 + $0x90] sm:$0xff] }
  0xe8   :  { %458 = vmatpush.bf16.msra.mxu2 %v449_v11  ;;  %472 = vmatpush.bf16.msra.mxu3 %v450_v12  ;;  %v1413_v11 = vld [vmem:[#allocation8 + $0x18] sm:$0xf0]  ;;  %v1412_v12 = vor.u32 %v1547_v9, %v1411_v7  ;;  %v2074_v7 = vld [vmem:[#allocation13 + $0x98] sm:$0xff] }
  0xe9   :  { %791 = vmatpush.bf16.msrb.mxu0 %v1424_v3  ;;  %v1416_v13 = vor.u32 %v1546_v10, %v1413_v11  ;;  %810 = vmatpush.bf16.msrb.mxu1 %v1488_v8  ;;  %v2076_v8 = vld [vmem:[#allocation13 + $0x170] sm:$0xff]  ;;  %v2078_v9 = vld [vmem:[#allocation13 + $0x178] sm:$0xff]  ;;  %v2082_v10 = vld [vmem:[#allocation13 + $0x80] sm:$0xff]  ;;  %v2104_v25 = vpop.f32.mrf.mxu1 }
  0xea   :  { %v2084_v11 = vld [vmem:[#allocation13 + $0x88] sm:$0xff] }
  0xec   :  { %459 = vmatpush.bf16.msra.mxu2 %v439_v20  ;;  %473 = vmatpush.bf16.msra.mxu3 %v440_v21  ;;  %v1545_v20 = vld [vmem:[#allocation8 + $0x4] sm:$0xf0]  ;;  %v1544_v21 = vld [vmem:[#allocation8 + $0x4] sm:$0xf] }
  0xed   :  { %792 = vmatpush.bf16.msrb.mxu0 %v1416_v13  ;;  %811 = vmatpush.bf16.msrb.mxu1 %v1480_v18  ;;  %v1404_v22 = vor.u32 %v1545_v20, %v1403_v19  ;;  %v1408_v26 = vor.u32 %v1544_v21, %v1405_v23 }
  0xf0   :  { %460 = vmatpush.bf16.msra.mxu2 %v429_v43  ;;  %474 = vmatpush.bf16.msra.mxu3 %v430_v30  ;;  %v1990_v43 = vld [vmem:[#allocation13 + $0x1f0] sm:$0xff]  ;;  %v1992_v30 = vld [vmem:[#allocation13 + $0x1f8] sm:$0xff] }
  0xf1   :  { %793 = vmatpush.bf16.msrb.mxu0 %v1408_v26  ;;  %v2106_v26 = vpop.f32.mrf.mxu0 }
  0xf3   :  { %1379 = vmatmul.msk.bf16.vlgmr.msra.gmra.mxu2 %vm391_vm1, %v1972_v52  ;;  %1380 = vmatmul.msk.bf16.vlgmr.msra.gmra.mxu3 %vm391_vm1, %v1972_v52  ;;  %v1567_v52 = vld [vmem:[#allocation8 + $0xb4] sm:$0xf0] }
  0xf4   :  { %748 = vmatpush.bf16.msrb.mxu2 %v1460_v28  ;;  %767 = vmatpush.bf16.msrb.mxu3 %v1524_v29  ;;  %v1492_v58 = vor.u32 %v1567_v52, %v1491_v56  ;;  %v1560_v28 = vld [vmem:[#allocation8 + $0x84] sm:$0xf]  ;;  %v1469_v29 = vld [vmem:[#allocation8 + $0x88] sm:$0xf0]  ;;  %v2046_v56 = vld [vmem:[#allocation13 + $0xb0] sm:$0xff] }
  0xf5   :  { %v1472_v42 = vor.u32 %v1560_v28, %v1469_v29  ;;  %969 = vmatpush.msra.mxu0 %v2006_v41  ;;  %v2048_v52 = vld [vmem:[#allocation13 + $0xb8] sm:$0xff]  ;;  %v2110_v28 = vld [vmem:[#allocation13 + $0x140] sm:$0xff] }
  0xf6   :  { %v2112_v29 = vld [vmem:[#allocation13 + $0x78] sm:$0xff] }
  0xf7   :  { %812 = vmatpush.bf16.msrb.mxu1 %v1472_v42  ;;  %970 = vmatpush.msra.mxu0 %v2018_v45  ;;  %v2116_v42 = vld [vmem:[#allocation13 + $0x148] sm:$0xff] }
  0xf8   :  { %749 = vmatpush.bf16.msrb.mxu2 %v1452_v34  ;;  %768 = vmatpush.bf16.msrb.mxu3 %v1516_v35 }
  0xf9   :  { %971 = vmatpush.msra.mxu0 %v2024_v48 }
  0xfb   :  { %998 = vmatpush.msra.mxu1 %v1992_v30  ;;  %972 = vmatpush.msra.mxu0 %v2036_v53 }
  0xfc   :  { %750 = vmatpush.bf16.msrb.mxu2 %v1444_v39  ;;  %769 = vmatpush.bf16.msrb.mxu3 %v1508_v37  ;;  %v2013_v39 = vld [vmem:[#allocation13 + $0x1c0] sm:$0xff]  ;;  %v2016_v37 = vld [vmem:[#allocation13 + $0x1c8] sm:$0xff] }
  0xfd   :  { %999 = vmatpush.msra.mxu1 %v1998_v32  ;;  %973 = vmatpush.msra.mxu0 %v2048_v52 }
  0xff   :  { %1000 = vmatpush.msra.mxu1 %v2002_v36  ;;  %974 = vmatpush.msra.mxu0 %v2060_v1 }
 0x100   :  { %751 = vmatpush.bf16.msrb.mxu2 %v1436_v50  ;;  %770 = vmatpush.bf16.msrb.mxu3 %v1500_v51  ;;  %v2030_v50 = vld [vmem:[#allocation13 + $0x1b8] sm:$0xff]  ;;  %v2034_v51 = vld [vmem:[#allocation13 + $0xc0] sm:$0xff] }
 0x101   :  { %1001 = vmatpush.msra.mxu1 %v2016_v37  ;;  %975 = vmatpush.msra.mxu0 %v2074_v7 }
 0x103   :  { %1002 = vmatpush.msra.mxu1 %v2030_v50  ;;  %976 = vmatpush.msra.mxu0 %v2084_v11 }
 0x104   :  { %752 = vmatpush.bf16.msrb.mxu2 %v1428_v55  ;;  %771 = vmatpush.bf16.msrb.mxu3 %v1492_v58  ;;  %v2042_v55 = vld [vmem:[#allocation13 + $0x1a8] sm:$0xff] }
 0x105   :  { %1003 = vmatpush.msra.mxu1 %v2042_v55  ;;  %977 = vmatpush.msra.mxu0 %v2112_v29 }
 0x107   :  { %1004 = vmatpush.msra.mxu1 %v2054_v60 }
 0x108   :  { %753 = vmatpush.bf16.msrb.mxu2 %v1420_v63  ;;  %772 = vmatpush.bf16.msrb.mxu3 %v1484_v4  ;;  %v2066_v4 = vld [vmem:[#allocation13 + $0x180] sm:$0xff] }
 0x109   :  { %1005 = vmatpush.msra.mxu1 %v2068_v5 }
 0x10b   :  { %1006 = vmatpush.msra.mxu1 %v2078_v9 }
 0x10c   :  { %754 = vmatpush.bf16.msrb.mxu2 %v1412_v12  ;;  %773 = vmatpush.bf16.msrb.mxu3 %v1476_v16  ;;  %v2098_v16 = vld [vmem:[#allocation13 + $0x158] sm:$0xff] }
 0x10d   :  { %1007 = vmatpush.msra.mxu1 %v2090_v46 }
 0x10f   :  { %1008 = vmatpush.msra.mxu1 %v2098_v16 }
 0x110   :  { %755 = vmatpush.bf16.msrb.mxu2 %v1404_v22  ;;  %774 = vmatpush.bf16.msrb.mxu3 %v1468_v27  ;;  %v2108_v27 = vld [vmem:[#allocation13 + $0x70] sm:$0xff] }
 0x111   :  { %1009 = vmatpush.msra.mxu1 %v2116_v42 }
 0x114   :  { %940 = vmatpush.msra.mxu3 %v1990_v43  ;;  %911 = vmatpush.msra.mxu2 %v2004_v40 }
 0x116   :  { %941 = vmatpush.msra.mxu3 %v1994_v31  ;;  %912 = vmatpush.msra.mxu2 %v2010_v38 }
 0x118   :  { %942 = vmatpush.msra.mxu3 %v2000_v33  ;;  %913 = vmatpush.msra.mxu2 %v2022_v47 }
 0x11a   :  { %943 = vmatpush.msra.mxu3 %v2013_v39  ;;  %914 = vmatpush.msra.mxu2 %v2034_v51 }
 0x11c   :  { %944 = vmatpush.msra.mxu3 %v2027_v49  ;;  %915 = vmatpush.msra.mxu2 %v2046_v56 }
 0x11e   :  { %945 = vmatpush.msra.mxu3 %v2039_v54  ;;  %916 = vmatpush.msra.mxu2 %v2058_v0 }
 0x120   :  { %946 = vmatpush.msra.mxu3 %v2051_v59  ;;  %917 = vmatpush.msra.mxu2 %v2072_v6 }
 0x122   :  { %947 = vmatpush.msra.mxu3 %v2066_v4  ;;  %918 = vmatpush.msra.mxu2 %v2082_v10 }
 0x124   :  { %948 = vmatpush.msra.mxu3 %v2076_v8  ;;  %919 = vmatpush.msra.mxu2 %v2108_v27 }
 0x126   :  { %949 = vmatpush.msra.mxu3 %v2087_v44 }
 0x128   :  { %950 = vmatpush.msra.mxu3 %v2095_v15 }
 0x12a   :  { %951 = vmatpush.msra.mxu3 %v2110_v28 }
 0x166   :  { %v404_v34 = vpop.f32.mrf.mxu2  ;;  %v418_v35 = vpop.f32.mrf.mxu3 }
 0x167   :  { %v481_v61 = vmax.f32 %v404_v34, 0.0  ;;  %v482_v62 = vmax.f32 %v418_v35, 0.0  ;;  %v2120_v34 = vld [vmem:[#allocation13 + $0x60] sm:$0xff]  ;;  %v2122_v35 = vld [vmem:[#allocation13 + $0x130] sm:$0xff] }
 0x168   :  { %920 = vmatpush.msra.mxu2 %v2120_v34  ;;  %952 = vmatpush.msra.mxu3 %v2122_v35 }
 0x16e   :  { %v406_v57 = vpop.f32.mrf.mxu2  ;;  %v420_v58 = vpop.f32.mrf.mxu3 }
 0x16f   :  { %v483_v14 = vmax.f32 %v406_v57, 0.0  ;;  %v484_v63 = vmax.f32 %v420_v58, 0.0  ;;  %v2124_v57 = vld [vmem:[#allocation13 + $0x68] sm:$0xff]  ;;  %v2126_v58 = vpop.f32.mrf.mxu1 }
 0x170   :  { %978 = vmatpush.msra.mxu0 %v2124_v57 }
 0x171   :  { %v489_v2 = vpack.c.bf16 %v483_v14, %v481_v61  ;;  %v490_v3 = vpack.c.bf16 %v484_v63, %v482_v62  ;;  %v2130_v61 = vld [vmem:[#allocation13 + $0x138] sm:$0xff]  ;;  %v2132_v62 = vpop.f32.mrf.mxu0  ;;  %v2136_v14 = vld [vmem:[#allocation13 + $0x50] sm:$0xff]  ;;  %v2138_v63 = vld [vmem:[#allocation13 + $0x120] sm:$0xff] }
 0x172   :  { %2461 = vst [vmem:[#allocation20_spill] sm:$0xff] %v2132_v62  ;;  %1010 = vmatpush.msra.mxu1 %v2130_v61  ;;  %921 = vmatpush.msra.mxu2 %v2136_v14  ;;  %v2179_v62 = vld [vmem:[#allocation13 + $0x10] sm:$0xff] }
 0x173   :  { %756 = vmatmul.bf16.vlgmr.msrb.gmra.mxu2 %v489_v2  ;;  %794 = vmatmul.bf16.vlgmr.msrb.gmra.mxu0 %v489_v2  ;;  %v2140_v2 = vld [vmem:[#allocation13 + $0x58] sm:$0xff] }
 0x174   :  { %775 = vmatmul.bf16.vlgmr.msrb.gmra.mxu3 %v490_v3  ;;  %813 = vmatmul.bf16.vlgmr.msrb.gmra.mxu1 %v490_v3  ;;  %v2144_v3 = vld [vmem:[#allocation13 + $0x128] sm:$0xff] }
 0x175   :  { %953 = vmatpush.msra.mxu3 %v2138_v63  ;;  %979 = vmatpush.msra.mxu0 %v2140_v2 }
 0x176   :  { %v462_v12 = vpop.f32.mrf.mxu2  ;;  %v476_v13 = vpop.f32.mrf.mxu3  ;;  %1011 = vmatpush.msra.mxu1 %v2144_v3 }
 0x177   :  { %v485_v19 = vmax.f32 %v462_v12, 0.0  ;;  %v486_v20 = vmax.f32 %v476_v13, 0.0  ;;  %v2148_v12 = vld [vmem:[#allocation13 + $0x40] sm:$0xff]  ;;  %v2150_v13 = vld [vmem:[#allocation13 + $0x110] sm:$0xff] }
 0x178   :  { %922 = vmatpush.msra.mxu2 %v2148_v12  ;;  %954 = vmatpush.msra.mxu3 %v2150_v13 }
 0x17e   :  { %v464_v17 = vpop.f32.mrf.mxu2  ;;  %v478_v18 = vpop.f32.mrf.mxu3 }
 0x17f   :  { %v487_v21 = vmax.f32 %v464_v17, 0.0  ;;  %v488_v22 = vmax.f32 %v478_v18, 0.0  ;;  %v2152_v17 = vld [vmem:[#allocation13 + $0x48] sm:$0xff]  ;;  %v2156_v18 = vld [vmem:[#allocation13 + $0x118] sm:$0xff] }
 0x180   :  { %980 = vmatpush.msra.mxu0 %v2152_v17  ;;  %1012 = vmatpush.msra.mxu1 %v2156_v18 }
 0x181   :  { %v491_v23 = vpack.c.bf16 %v487_v21, %v485_v19  ;;  %v492_v24 = vpack.c.bf16 %v488_v22, %v486_v20  ;;  %v2160_v19 = vld [vmem:[#allocation13 + $0x30] sm:$0xff]  ;;  %v2162_v20 = vld [vmem:[#allocation13 + $0x100] sm:$0xff]  ;;  %v2164_v21 = vld [vmem:[#allocation13 + $0x38] sm:$0xff] }
 0x182   :  { %2462 = vst [vmem:[#allocation21_spill] sm:$0xff] %v2160_v19  ;;  %923 = vmatpush.msra.mxu2 %v2160_v19  ;;  %955 = vmatpush.msra.mxu3 %v2162_v20  ;;  %v2168_v22 = vld [vmem:[#allocation13 + $0x108] sm:$0xff]  ;;  %v2181_v19 = vld [vmem:[#allocation13 + $0x18] sm:$0xff] }
 0x183   :  { %761 = vmatmul.bf16.gmra.mxu2 %v491_v23  ;;  %799 = vmatmul.bf16.gmra.mxu0 %v491_v23  ;;  %2463 = vst [vmem:[#allocation22_spill] sm:$0xff] %v2162_v20  ;;  %v2172_v23 = vld [vmem:[#allocation13 + $0x20] sm:$0xff]  ;;  %v2184_v20 = vpop.f32.mrf.mxu1 }
 0x184   :  { %780 = vmatmul.bf16.gmra.mxu3 %v492_v24  ;;  %818 = vmatmul.bf16.gmra.mxu1 %v492_v24  ;;  %2464 = vst [vmem:[#allocation23_spill] sm:$0xff] %v2168_v22  ;;  %v2174_v24 = vld [vmem:[#allocation13 + $0x28] sm:$0xff] }
 0x185   :  { %981 = vmatpush.msra.mxu0 %v2164_v21  ;;  %1013 = vmatpush.msra.mxu1 %v2168_v22  ;;  %2465 = vst [vmem:[#allocation24_spill] sm:$0xff] %v2172_v23  ;;  %v2188_v22 = vpop.f32.mrf.mxu0 }
 0x186   :  { %924 = vmatpush.msra.mxu2 %v2172_v23  ;;  %1072 = vmatpush.msrb.mxu3 %v1990_v43  ;;  %v2191_v23 = vld [vmem:[#allocation13] sm:$0xff]  ;;  %v2193_v43 = vld [vmem:[#allocation13 + $0x8] sm:$0xff] }
 0x187   :  { %982 = vmatpush.msra.mxu0 %v2174_v24  ;;  %1130 = vmatpush.msrb.mxu1 %v1992_v30 }
 0x188   :  { %925 = vmatpush.msra.mxu2 %v2179_v62  ;;  %1073 = vmatpush.msrb.mxu3 %v1994_v31 }
 0x189   :  { %983 = vmatpush.msra.mxu0 %v2181_v19  ;;  %1131 = vmatpush.msrb.mxu1 %v1998_v32 }
 0x18a   :  { %926 = vmatpush.msra.mxu2 %v2191_v23  ;;  %1074 = vmatpush.msrb.mxu3 %v2000_v33 }
 0x18b   :  { %984 = vmatpush.msra.mxu0 %v2193_v43  ;;  %1132 = vmatpush.msrb.mxu1 %v2002_v36  ;;  %v2212_v31 = vpop.f32.mrf.mxu1 }
 0x18c   :  { %1043 = vmatpush.msrb.mxu2 %v2004_v40  ;;  %1075 = vmatpush.msrb.mxu3 %v2013_v39  ;;  %v2222_v40 = vld [vmem:[#allocation11] sm:$0x77] }
 0x18d   :  { %1101 = vmatpush.msrb.mxu0 %v2006_v41  ;;  %1133 = vmatpush.msrb.mxu1 %v2016_v37  ;;  %v2216_v33 = vpop.f32.mrf.mxu0 }
 0x18e   :  { %1044 = vmatpush.msrb.mxu2 %v2010_v38  ;;  %1076 = vmatpush.msrb.mxu3 %v2027_v49  ;;  %v826_v38 = vperm.slane %v2222_v40, 4 }
 0x18f   :  { %1102 = vmatpush.msrb.mxu0 %v2018_v45  ;;  %1134 = vmatpush.msrb.mxu1 %v2030_v50 }
 0x190   :  { %1045 = vmatpush.msrb.mxu2 %v2022_v47  ;;  %1077 = vmatpush.msrb.mxu3 %v2039_v54 }
 0x191   :  { %1103 = vmatpush.msrb.mxu0 %v2024_v48  ;;  %1135 = vmatpush.msrb.mxu1 %v2042_v55 }
 0x192   :  { %1046 = vmatpush.msrb.mxu2 %v2034_v51  ;;  %1078 = vmatpush.msrb.mxu3 %v2051_v59  ;;  %v2240_v51 = vperm.slane %v826_v38, 0 }
 0x193   :  { %1104 = vmatpush.msrb.mxu0 %v2036_v53  ;;  %1136 = vmatpush.msrb.mxu1 %v2054_v60 }
 0x194   :  { %1047 = vmatpush.msrb.mxu2 %v2046_v56  ;;  %1079 = vmatpush.msrb.mxu3 %v2066_v4  ;;  %v825_v56 = vperm.slane %v2222_v40, 0 }
 0x195   :  { %1105 = vmatpush.msrb.mxu0 %v2048_v52  ;;  %1137 = vmatpush.msrb.mxu1 %v2068_v5 }
 0x196   :  { %1048 = vmatpush.msrb.mxu2 %v2058_v0  ;;  %1080 = vmatpush.msrb.mxu3 %v2076_v8 }
 0x197   :  { %1106 = vmatpush.msrb.mxu0 %v2060_v1  ;;  %1138 = vmatpush.msrb.mxu1 %v2078_v9 }
 0x198   :  { %1049 = vmatpush.msrb.mxu2 %v2072_v6  ;;  %1081 = vmatpush.msrb.mxu3 %v2087_v44 }
 0x199   :  { %1107 = vmatpush.msrb.mxu0 %v2074_v7  ;;  %1139 = vmatpush.msrb.mxu1 %v2090_v46 }
 0x19a   :  { %1050 = vmatpush.msrb.mxu2 %v2082_v10  ;;  %1082 = vmatpush.msrb.mxu3 %v2095_v15  ;;  %v2259_v10 = vperm.slane %v825_v56, 0 }
 0x19b   :  { %1108 = vmatpush.msrb.mxu0 %v2084_v11  ;;  %1140 = vmatpush.msrb.mxu1 %v2098_v16 }
 0x19c   :  { %1051 = vmatpush.msrb.mxu2 %v2108_v27  ;;  %1083 = vmatpush.msrb.mxu3 %v2110_v28  ;;  %v2466_v27 = vld [vmem:[#allocation21_spill] sm:$0xff]  ;;  %v2467_v28 = vld [vmem:[#allocation22_spill] sm:$0xff] }
 0x19d   :  { %1109 = vmatpush.msrb.mxu0 %v2112_v29  ;;  %1141 = vmatpush.msrb.mxu1 %v2116_v42 }
 0x19e   :  { %1052 = vmatpush.msrb.mxu2 %v2120_v34  ;;  %1084 = vmatpush.msrb.mxu3 %v2122_v35 }
 0x19f   :  { %1110 = vmatpush.msrb.mxu0 %v2124_v57  ;;  %1142 = vmatpush.msrb.mxu1 %v2130_v61 }
 0x1a0   :  { %1053 = vmatpush.msrb.mxu2 %v2136_v14  ;;  %1085 = vmatpush.msrb.mxu3 %v2138_v63  ;;  %v2468_v14 = vld [vmem:[#allocation23_spill] sm:$0xff]  ;;  %v2469_v63 = vld [vmem:[#allocation24_spill] sm:$0xff] }
 0x1a1   :  { %1111 = vmatpush.msrb.mxu0 %v2140_v2  ;;  %1143 = vmatpush.msrb.mxu1 %v2144_v3 }
 0x1a2   :  { %1054 = vmatpush.msrb.mxu2 %v2148_v12  ;;  %1086 = vmatpush.msrb.mxu3 %v2150_v13 }
 0x1a3   :  { %1112 = vmatpush.msrb.mxu0 %v2152_v17  ;;  %1144 = vmatpush.msrb.mxu1 %v2156_v18 }
 0x1a4   :  { %1055 = vmatpush.msrb.mxu2 %v2466_v27  ;;  %1087 = vmatpush.msrb.mxu3 %v2467_v28 }
 0x1a5   :  { %1113 = vmatpush.msrb.mxu0 %v2164_v21  ;;  %1145 = vmatpush.msrb.mxu1 %v2468_v14 }
 0x1a6   :  { %1056 = vmatpush.msrb.mxu2 %v2469_v63 }
 0x1a7   :  { %1114 = vmatpush.msrb.mxu0 %v2174_v24 }
 0x1a8   :  { %1057 = vmatpush.msrb.mxu2 %v2179_v62 }
 0x1a9   :  { %1115 = vmatpush.msrb.mxu0 %v2181_v19 }
 0x1aa   :  { %1058 = vmatpush.msrb.mxu2 %v2191_v23 }
 0x1ab   :  { %1116 = vmatpush.msrb.mxu0 %v2193_v43 }
 0x1f0   :  { %v795_v39 = vpop.f32.mrf.mxu0 }
 0x1f1   :  { %v796_v47 = vadd.f32 %v795_v39, %v2104_v25  ;;  %v814_v49 = vpop.f32.mrf.mxu1  ;;  %v2470_v39 = vld [vmem:[#allocation20_spill] sm:$0xff] }
 0x1f3   :  { %v815_v54 = vadd.f32 %v814_v49, %v796_v47 }
 0x1f5   :  { %v832_v59 = vadd.f32 %v2240_v51, %v815_v54 }
 0x1f6   :  { %v757_v0 = vpop.f32.mrf.mxu2 }
 0x1f7   :  { %v2256_v4 = vmax.f32 %v832_v59, 0.0  ;;  %v758_v6 = vadd.f32 %v757_v0, %v2106_v26  ;;  %v776_v8 = vpop.f32.mrf.mxu3 }
 0x1f8   :  { %v797_v44 = vpop.f32.mrf.mxu0 }
 0x1f9   :  { %v777_v15 = vadd.f32 %v776_v8, %v758_v6  ;;  %v798_v25 = vadd.f32 %v797_v44, %v2126_v58  ;;  %956 = vmatmul.f32.vlgmr.msra.gmra.mxu3 %v2256_v4  ;;  %1014 = vmatmul.f32.vlgmr.msra.gmra.mxu1 %v2256_v4  ;;  %v816_v26 = vpop.f32.mrf.mxu1 }
 0x1fa   :  { %1596 = vmatpush.msra.mxu3 %v1992_v30 }
 0x1fb   :  { %v831_v34 = vadd.f32 %v2259_v10, %v777_v15  ;;  %v817_v35 = vadd.f32 %v816_v26, %v798_v25 }
 0x1fc   :  { %1597 = vmatpush.msra.mxu3 %v1998_v32 }
 0x1fd   :  { %v2275_v58 = vmax.f32 %v831_v34, 0.0  ;;  %v834_v12 = vadd.f32 %v2240_v51, %v817_v35 }
 0x1fe   :  { %v759_v13 = vpop.f32.mrf.mxu2  ;;  %1598 = vmatpush.msra.mxu3 %v2002_v36 }
 0x1ff   :  { %v2281_v38 = vmax.f32 %v834_v12, 0.0  ;;  %v760_v47 = vadd.f32 %v759_v13, %v2470_v39  ;;  %927 = vmatmul.f32.vlgmr.msra.gmra.mxu2 %v2275_v58  ;;  %985 = vmatmul.f32.vlgmr.msra.gmra.mxu0 %v2275_v58  ;;  %v778_v30 = vpop.f32.mrf.mxu3 }
 0x200   :  { %v800_v49 = vpop.f32.mrf.mxu0  ;;  %1580 = vmatpush.msra.mxu2 %v2006_v41  ;;  %1599 = vmatpush.msra.mxu3 %v2016_v37 }
 0x201   :  { %v779_v54 = vadd.f32 %v778_v30, %v760_v47  ;;  %v801_v56 = vadd.f32 %v800_v49, %v2184_v20  ;;  %959 = vmatmul.f32.gmra.mxu3 %v2281_v38  ;;  %1017 = vmatmul.f32.gmra.mxu1 %v2281_v38  ;;  %v819_v32 = vpop.f32.mrf.mxu1 }
 0x202   :  { %1581 = vmatpush.msra.mxu2 %v2018_v45  ;;  %1600 = vmatpush.msra.mxu3 %v2030_v50 }
 0x203   :  { %v833_v62 = vadd.f32 %v2259_v10, %v779_v54  ;;  %v820_v59 = vadd.f32 %v819_v32, %v801_v56 }
 0x204   :  { %1582 = vmatpush.msra.mxu2 %v2024_v48  ;;  %1601 = vmatpush.msra.mxu3 %v2042_v55 }
 0x205   :  { %v2296_v23 = vmax.f32 %v833_v62, 0.0  ;;  %v836_v20 = vadd.f32 %v2240_v51, %v820_v59 }
 0x206   :  { %v762_v0 = vpop.f32.mrf.mxu2  ;;  %1583 = vmatpush.msra.mxu2 %v2036_v53  ;;  %1602 = vmatpush.msra.mxu3 %v2054_v60 }
 0x207   :  { %v2301_v6 = vmax.f32 %v836_v20, 0.0  ;;  %v763_v36 = vadd.f32 %v762_v0, %v2188_v22  ;;  %930 = vmatmul.f32.gmra.mxu2 %v2296_v23  ;;  %988 = vmatmul.f32.gmra.mxu0 %v2296_v23  ;;  %v781_v41 = vpop.f32.mrf.mxu3 }
 0x208   :  { %v802_v8 = vpop.f32.mrf.mxu0  ;;  %1584 = vmatpush.msra.mxu2 %v2048_v52  ;;  %1603 = vmatpush.msra.mxu3 %v2068_v5 }
 0x209   :  { %v782_v37 = vadd.f32 %v781_v41, %v763_v36  ;;  %v803_v45 = vadd.f32 %v802_v8, %v2212_v31  ;;  %962 = vmatmul.f32.gmra.mxu3 %v2301_v6  ;;  %1020 = vmatmul.f32.gmra.mxu1 %v2301_v6  ;;  %v821_v50 = vpop.f32.mrf.mxu1 }
 0x20a   :  { %1585 = vmatpush.msra.mxu2 %v2060_v1  ;;  %1604 = vmatpush.msra.mxu3 %v2078_v9 }
 0x20b   :  { %v835_v22 = vadd.f32 %v2259_v10, %v782_v37  ;;  %v822_v44 = vadd.f32 %v821_v50, %v803_v45 }
 0x20c   :  { %1586 = vmatpush.msra.mxu2 %v2074_v7  ;;  %1605 = vmatpush.msra.mxu3 %v2090_v46 }
 0x20d   :  { %v2316_v48 = vmax.f32 %v835_v22, 0.0  ;;  %v838_v55 = vadd.f32 %v2240_v51, %v822_v44 }
 0x20e   :  { %v764_v31 = vpop.f32.mrf.mxu2  ;;  %1587 = vmatpush.msra.mxu2 %v2084_v11  ;;  %1606 = vmatpush.msra.mxu3 %v2098_v16 }
 0x20f   :  { %v2321_v15 = vmax.f32 %v838_v55, 0.0  ;;  %v765_v53 = vadd.f32 %v764_v31, %v2216_v33  ;;  %933 = vmatmul.f32.gmra.mxu2 %v2316_v48  ;;  %991 = vmatmul.f32.gmra.mxu0 %v2316_v48  ;;  %v783_v52 = vpop.f32.mrf.mxu3 }
 0x210   :  { %1588 = vmatpush.msra.mxu2 %v2112_v29  ;;  %1607 = vmatpush.msra.mxu3 %v2116_v42 }
 0x211   :  { %v784_v60 = vadd.f32 %v783_v52, %v765_v53  ;;  %965 = vmatmul.f32.gmra.mxu3 %v2321_v15  ;;  %1023 = vmatmul.f32.gmra.mxu1 %v2321_v15 }
 0x212   :  { %1589 = vmatpush.msra.mxu2 %v2124_v57  ;;  %1608 = vmatpush.msra.mxu3 %v2130_v61 }
 0x213   :  { %v837_v1 = vadd.f32 %v2259_v10, %v784_v60 }
 0x214   :  { %1590 = vmatpush.msra.mxu2 %v2140_v2  ;;  %1609 = vmatpush.msra.mxu3 %v2144_v3 }
 0x215   :  { %v2335_v5 = vmax.f32 %v837_v1, 0.0  ;;  %v1248_v1 = vperm.slane %v2222_v40, 5 }
 0x216   :  { %1591 = vmatpush.msra.mxu2 %v2152_v17  ;;  %1610 = vmatpush.msra.mxu3 %v2156_v18 }
 0x217   :  { %936 = vmatmul.f32.gmra.mxu2 %v2335_v5  ;;  %994 = vmatmul.f32.gmra.mxu0 %v2335_v5 }
 0x218   :  { %1592 = vmatpush.msra.mxu2 %v2164_v21  ;;  %1611 = vmatpush.msra.mxu3 %v2468_v14 }
 0x21a   :  { %1593 = vmatpush.msra.mxu2 %v2174_v24 }
 0x21c   :  { %1594 = vmatpush.msra.mxu2 %v2181_v19 }
 0x21e   :  { %1595 = vmatpush.msra.mxu2 %v2193_v43 }
 0x276   :  { %v1015_v7 = vpop.f32.mrf.mxu1 }
 0x27c   :  { %v957_v9 = vpop.f32.mrf.mxu3  ;;  %v986_v11 = vpop.f32.mrf.mxu0 }
 0x27d   :  { %v1016_v46 = vadd.f32 %v1015_v7, %v986_v11 }
 0x27e   :  { %v1018_v29 = vpop.f32.mrf.mxu1 }
 0x27f   :  { %v2351_v16 = vsub.f32 %v2256_v4, %v1016_v46 }
 0x281   :  { %v1036_v42 = vmul.f32 %v2351_v16, %v2351_v16 }
 0x282   :  { %v928_v57 = vpop.f32.mrf.mxu2 }
 0x283   :  { %v958_v61 = vadd.f32 %v957_v9, %v928_v57  ;;  %1088 = vmatmul.f32.vlgmr.msrb.gmra.mxu3 %v1036_v42  ;;  %1146 = vmatmul.f32.vlgmr.msrb.gmra.mxu1 %v1036_v42  ;;  %v1262_v42 = vperm.slane %v2222_v40, 6 }
 0x284   :  { %v989_v2 = vpop.f32.mrf.mxu0  ;;  %v960_v18 = vpop.f32.mrf.mxu3 }
 0x285   :  { %v2356_v3 = vsub.f32 %v2275_v58, %v958_v61  ;;  %v1019_v17 = vadd.f32 %v1018_v29, %v989_v2 }
 0x286   :  { %v1021_v43 = vpop.f32.mrf.mxu1 }
 0x287   :  { %v1035_v19 = vmul.f32 %v2356_v3, %v2356_v3  ;;  %v2361_v21 = vsub.f32 %v2281_v38, %v1019_v17 }
 0x289   :  { %1059 = vmatmul.f32.vlgmr.msrb.gmra.mxu2 %v1035_v19  ;;  %1117 = vmatmul.f32.vlgmr.msrb.gmra.mxu0 %v1035_v19  ;;  %v1038_v24 = vmul.f32 %v2361_v21, %v2361_v21  ;;  %v2397_v19 = vperm.slane %v1248_v1, 1 }
 0x28a   :  { %v931_v33 = vpop.f32.mrf.mxu2 }
 0x28b   :  { %v961_v51 = vadd.f32 %v960_v18, %v931_v33  ;;  %1091 = vmatmul.f32.gmra.mxu3 %v1038_v24  ;;  %1149 = vmatmul.f32.gmra.mxu1 %v1038_v24 }
 0x28c   :  { %v992_v4 = vpop.f32.mrf.mxu0  ;;  %v963_v28 = vpop.f32.mrf.mxu3 }
 0x28d   :  { %v2366_v10 = vsub.f32 %v2296_v23, %v961_v51  ;;  %v1022_v25 = vadd.f32 %v1021_v43, %v992_v4 }
 0x28e   :  { %v1024_v63 = vpop.f32.mrf.mxu1 }
 0x28f   :  { %v2369_v26 = vsub.f32 %v2301_v6, %v1022_v25  ;;  %v1037_v27 = vmul.f32 %v2366_v10, %v2366_v10  ;;  %v2401_v25 = vperm.slane %v1262_v42, 2 }
 0x291   :  { %1062 = vmatmul.f32.gmra.mxu2 %v1037_v27  ;;  %1120 = vmatmul.f32.gmra.mxu0 %v1037_v27  ;;  %v1040_v34 = vmul.f32 %v2369_v26, %v2369_v26  ;;  %v1247_v27 = vperm.slane %v2222_v40, 1 }
 0x292   :  { %v934_v35 = vpop.f32.mrf.mxu2 }
 0x293   :  { %v964_v14 = vadd.f32 %v963_v28, %v934_v35  ;;  %1094 = vmatmul.f32.gmra.mxu3 %v1040_v34  ;;  %1152 = vmatmul.f32.gmra.mxu1 %v1040_v34 }
 0x294   :  { %v995_v58 = vpop.f32.mrf.mxu0  ;;  %v966_v30 = vpop.f32.mrf.mxu3 }
 0x295   :  { %v2376_v12 = vsub.f32 %v2316_v48, %v964_v14  ;;  %v1025_v13 = vadd.f32 %v1024_v63, %v995_v58  ;;  %v1261_v58 = vperm.slane %v2222_v40, 2 }
 0x297   :  { %v2379_v38 = vsub.f32 %v2321_v15, %v1025_v13  ;;  %v1039_v39 = vmul.f32 %v2376_v12, %v2376_v12 }
 0x299   :  { %1065 = vmatmul.f32.gmra.mxu2 %v1039_v39  ;;  %1123 = vmatmul.f32.gmra.mxu0 %v1039_v39  ;;  %v1042_v47 = vmul.f32 %v2379_v38, %v2379_v38 }
 0x29a   :  { %v937_v49 = vpop.f32.mrf.mxu2 }
 0x29b   :  { %v967_v54 = vadd.f32 %v966_v30, %v937_v49  ;;  %1097 = vmatmul.f32.gmra.mxu3 %v1042_v47 }
 0x29d   :  { %v2386_v56 = vsub.f32 %v2335_v5, %v967_v54  ;;  %v2410_v54 = vperm.slane %v1247_v27, 1 }
 0x29f   :  { %v1041_v32 = vmul.f32 %v2386_v56, %v2386_v56 }
 0x2a1   :  { %1068 = vmatmul.f32.gmra.mxu2 %v1041_v32 }
 0x2a3   :  { %1155 = vmatmul.f32.vlgmr.msra.gmra.mxu3 %v1042_v47 }
 0x2a9   :  { %1126 = vmatmul.f32.vlgmr.msra.gmra.mxu2 %v1041_v32 }
 0x300   :  { %v1147_v62 = vpop.f32.mrf.mxu1 }
 0x306   :  { %v1089_v59 = vpop.f32.mrf.mxu3  ;;  %v1118_v23 = vpop.f32.mrf.mxu0 }
 0x307   :  { %v1119_v20 = vadd.f32 1e-05, %v1118_v23 }
 0x308   :  { %v1150_v41 = vpop.f32.mrf.mxu1 }
 0x309   :  { %v1148_v0 = vadd.f32 %v1147_v62, %v1119_v20  ;;  %v2415_v20 = vperm.slane %v1261_v58, 2 }
 0x30b   :  { %1628 = vrsqrt.f32 %v1148_v0  ;;  %vm1175_vm3 = vweird.f32 %v1148_v0 }
 0x30c   :  { %v1060_v6 = vpop.f32.mrf.mxu2 }
 0x30d   :  { %v1061_v36 = vadd.f32 1e-05, %v1060_v6 }
 0x30e   :  { %v1121_v8 = vpop.f32.mrf.mxu0  ;;  %v1092_v50 = vpop.f32.mrf.mxu3 }
 0x30f   :  { %v1090_v37 = vadd.f32 %v1089_v59, %v1061_v36  ;;  %v1122_v45 = vadd.f32 1e-05, %v1121_v8 }
 0x310   :  { %v1153_v46 = vpop.f32.mrf.mxu1 }
 0x311   :  { %v1629_v22 = vpop.eup %1628  ;;  %1630 = vrsqrt.f32 %v1090_v37  ;;  %v1151_v44 = vadd.f32 %v1150_v41, %v1122_v45  ;;  %vm1165_vm6 = vweird.f32 %v1090_v37 }
 0x312   :  { %v1170_v48 = vmul.f32 %v1629_v22, %v1148_v0  ;;  %vm1176_vm2 = vweird.f32 %v1629_v22 }
 0x313   :  { %1632 = vrsqrt.f32 %v1151_v44  ;;  %vm1177_vm4 = vmor %vm1175_vm3, %vm1176_vm2  ;;  %vm1195_vm9 = vweird.f32 %v1151_v44 }
 0x314   :  { %v1171_v55 = vmul.f32 %v1629_v22, %v1170_v48  ;;  %v1063_v31 = vpop.f32.mrf.mxu2 }
 0x315   :  { %v1064_v15 = vadd.f32 1e-05, %v1063_v31 }
 0x316   :  { %v1172_v53 = vmul.f32 0.5, %v1171_v55  ;;  %v1124_v52 = vpop.f32.mrf.mxu0  ;;  %v1095_v18 = vpop.f32.mrf.mxu3 }
 0x317   :  { %v1631_v60 = vpop.eup %1630  ;;  %v2391_v5 = vadd.f32 %v1092_v50, %v1064_v15  ;;  %v1125_v7 = vadd.f32 1e-05, %v1124_v52 }
 0x318   :  { %v1173_v9 = vsub.f32 1.5, %v1172_v53  ;;  %v1160_v11 = vmul.f32 %v1631_v60, %v1090_v37  ;;  %vm1166_vm5 = vweird.f32 %v1631_v60 }
 0x319   :  { %v1633_v29 = vpop.eup %1632  ;;  %1634 = vrsqrt.f32 %v2391_v5  ;;  %v2395_v57 = vadd.f32 %v1153_v46, %v1125_v7  ;;  %vm1167_vm8 = vmor %vm1165_vm6, %vm1166_vm5  ;;  %vm1185_vm12 = vweird.f32 %v2391_v5 }
 0x31a   :  { %v1174_v61 = vmul.f32 %v1629_v22, %v1173_v9  ;;  %v1161_v2 = vmul.f32 %v1631_v60, %v1160_v11  ;;  %v1190_v17 = vmul.f32 %v1633_v29, %v1151_v44  ;;  %vm1196_vm7 = vweird.f32 %v1633_v29 }
 0x31b   :  { %1636 = vrsqrt.f32 %v2395_v57  ;;  %vm1197_vm10 = vmor %vm1195_vm9, %vm1196_vm7  ;;  %vm1215_vm15 = vweird.f32 %v2395_v57 }
 0x31c   :  { %v1178_v24 = vsel %vm1177_vm4, %v1629_v22, %v1174_v61  ;;  %v1162_v43 = vmul.f32 0.5, %v1161_v2  ;;  %v1191_v33 = vmul.f32 %v1633_v29, %v1190_v17  ;;  %v1066_v51 = vpop.f32.mrf.mxu2 }
 0x31d   :  { %v1240_v4 = vmul.f32 %v1178_v24, %v2351_v16  ;;  %v1067_v28 = vadd.f32 1e-05, %v1066_v51 }
 0x31e   :  { %v1163_v34 = vsub.f32 1.5, %v1162_v43  ;;  %v1192_v35 = vmul.f32 0.5, %v1191_v33  ;;  %v1098_v41 = vpop.f32.mrf.mxu3 }
 0x31f   :  { %v1635_v14 = vpop.eup %1634  ;;  %v1254_v63 = vmul.f32 %v2397_v19, %v1240_v4  ;;  %v2406_v13 = vadd.f32 %v1095_v18, %v1067_v28 }
 0x320   :  { %v1164_v39 = vmul.f32 %v1631_v60, %v1163_v34  ;;  %v1193_v47 = vsub.f32 1.5, %v1192_v35  ;;  %v1180_v16 = vmul.f32 %v1635_v14, %v2391_v5  ;;  %vm1186_vm11 = vweird.f32 %v1635_v14 }
 0x321   :  { %v1637_v30 = vpop.eup %1636  ;;  %v1268_v49 = vadd.f32 %v2401_v25, %v1254_v63  ;;  %1638 = vrsqrt.f32 %v2406_v13  ;;  %vm1187_vm14 = vmor %vm1185_vm12, %vm1186_vm11  ;;  %vm1205_vm2 = vweird.f32 %v2406_v13 }
 0x322   :  { %v1168_v32 = vsel %vm1167_vm8, %v1631_v60, %v1164_v39  ;;  %v1194_v62 = vmul.f32 %v1633_v29, %v1193_v47  ;;  %v1181_v59 = vmul.f32 %v1635_v14, %v1180_v16  ;;  %v1210_v40 = vmul.f32 %v1637_v30, %v2395_v57 }
 0x323   :  { %1276 = vst [vmem:[#allocation14 + $0x8] sm:$0xff] %v1268_v49  ;;  %v1239_v23 = vmul.f32 %v1168_v32, %v2356_v3  ;;  %vm1216_vm13 = vweird.f32 %v1637_v30 }
 0x324   :  { %v1198_v0 = vsel %vm1197_vm10, %v1633_v29, %v1194_v62  ;;  %v1182_v6 = vmul.f32 0.5, %v1181_v59  ;;  %v1211_v36 = vmul.f32 %v1637_v30, %v1210_v40  ;;  %v1069_v8 = vpop.f32.mrf.mxu2  ;;  %vm1217_vm0 = vmor %vm1215_vm15, %vm1216_vm13 }
 0x325   :  { %v1253_v37 = vmul.f32 %v2410_v54, %v1239_v23  ;;  %v1242_v45 = vmul.f32 %v1198_v0, %v2361_v21  ;;  %v1070_v50 = vadd.f32 1e-05, %v1069_v8 }
 0x326   :  { %v1183_v22 = vsub.f32 1.5, %v1182_v6  ;;  %v1212_v44 = vmul.f32 0.5, %v1211_v36  ;;  %v1156_v17 = vpop.f32.mrf.mxu3 }
 0x327   :  { %v1639_v48 = vpop.eup %1638  ;;  %v1267_v3 = vadd.f32 %v2415_v20, %v1253_v37  ;;  %v1256_v55 = vmul.f32 %v2397_v19, %v1242_v45  ;;  %v1099_v31 = vadd.f32 %v1098_v41, %v1070_v50 }
 0x328   :  { %v1184_v15 = vmul.f32 %v1635_v14, %v1183_v22  ;;  %v1213_v53 = vsub.f32 1.5, %v1212_v44  ;;  %v1200_v52 = vmul.f32 %v1639_v48, %v2406_v13  ;;  %vm1206_vm1 = vweird.f32 %v1639_v48 }
 0x329   :  { %1275 = vst [vmem:[#allocation14] sm:$0xff] %v1267_v3  ;;  %v1270_v21 = vadd.f32 %v2401_v25, %v1256_v55  ;;  %1640 = vrsqrt.f32 %v1099_v31  ;;  %vm1207_vm3 = vmor %vm1205_vm2, %vm1206_vm1  ;;  %vm1225_vm5 = vweird.f32 %v1099_v31 }
 0x32a   :  { %v1188_v60 = vsel %vm1187_vm14, %v1635_v14, %v1184_v15  ;;  %v1214_v1 = vmul.f32 %v1637_v30, %v1213_v53  ;;  %v1201_v7 = vmul.f32 %v1639_v48, %v1200_v52 }
 0x32b   :  { %1278 = vst [vmem:[#allocation14 + $0x18] sm:$0xff] %v1270_v21  ;;  %v1241_v9 = vmul.f32 %v1188_v60, %v2366_v10 }
 0x32c   :  { %v1218_v5 = vsel %vm1217_vm0, %v1637_v30, %v1214_v1  ;;  %v1202_v11 = vmul.f32 0.5, %v1201_v7  ;;  %v1127_v46 = vpop.f32.mrf.mxu2 }
 0x32d   :  { %v1255_v29 = vmul.f32 %v2410_v54, %v1241_v9  ;;  %v1244_v42 = vmul.f32 %v1218_v5, %v2369_v26  ;;  %v1128_v61 = vadd.f32 1e-05, %v1127_v46 }
 0x32e   :  { %v1203_v2 = vsub.f32 1.5, %v1202_v11 }
 0x32f   :  { %v1641_v18 = vpop.eup %1640  ;;  %v1269_v24 = vadd.f32 %v2415_v20, %v1255_v29  ;;  %v1258_v57 = vmul.f32 %v2397_v19, %v1244_v42  ;;  %v1157_v43 = vadd.f32 %v1156_v17, %v1128_v61 }
 0x330   :  { %v1204_v33 = vmul.f32 %v1639_v48, %v1203_v2  ;;  %v1220_v10 = vmul.f32 %v1641_v18, %v1099_v31  ;;  %vm1226_vm4 = vweird.f32 %v1641_v18 }
 0x331   :  { %1277 = vst [vmem:[#allocation14 + $0x10] sm:$0xff] %v1269_v24  ;;  %v1272_v51 = vadd.f32 %v2401_v25, %v1258_v57  ;;  %1642 = vrsqrt.f32 %v1157_v43  ;;  %vm1227_vm6 = vmor %vm1225_vm5, %vm1226_vm4  ;;  %vm1235_vm8 = vweird.f32 %v1157_v43 }
 0x332   :  { %v1208_v26 = vsel %vm1207_vm3, %v1639_v48, %v1204_v33  ;;  %v1221_v4 = vmul.f32 %v1641_v18, %v1220_v10 }
 0x333   :  { %1280 = vst [vmem:[#allocation14 + $0x28] sm:$0xff] %v1272_v51  ;;  %v1243_v27 = vmul.f32 %v1208_v26, %v2376_v12 }
 0x334   :  { %v1222_v28 = vmul.f32 0.5, %v1221_v4 }
 0x335   :  { %v1257_v34 = vmul.f32 %v2410_v54, %v1243_v27 }
 0x336   :  { %v1223_v35 = vsub.f32 1.5, %v1222_v28 }
 0x337   :  { %v1643_v14 = vpop.eup %1642  ;;  %v1271_v63 = vadd.f32 %v2415_v20, %v1257_v34 }
 0x338   :  { %v1224_v58 = vmul.f32 %v1641_v18, %v1223_v35  ;;  %v1230_v13 = vmul.f32 %v1643_v14, %v1157_v43  ;;  %vm1236_vm7 = vweird.f32 %v1643_v14 }
 0x339   :  { %1279 = vst [vmem:[#allocation14 + $0x20] sm:$0xff] %v1271_v63  ;;  %vm1237_vm9 = vmor %vm1235_vm8, %vm1236_vm7 }
 0x33a   :  { %v1228_v39 = vsel %vm1227_vm6, %v1641_v18, %v1224_v58  ;;  %v1231_v47 = vmul.f32 %v1643_v14, %v1230_v13 }
 0x33b   :  { %v1245_v16 = vmul.f32 %v1228_v39, %v2386_v56 }
 0x33c   :  { %v1232_v30 = vmul.f32 0.5, %v1231_v47 }
 0x33d   :  { %v1259_v12 = vmul.f32 %v2410_v54, %v1245_v16 }
 0x33e   :  { %v1233_v49 = vsub.f32 1.5, %v1232_v30 }
 0x33f   :  { %v1273_v32 = vadd.f32 %v2415_v20, %v1259_v12 }
 0x340   :  { %v1234_v62 = vmul.f32 %v1643_v14, %v1233_v49 }
 0x341   :  { %1281 = vst [vmem:[#allocation14 + $0x30] sm:$0xff] %v1273_v32 }
 0x342   :  { %v1238_v59 = vsel %vm1237_vm9, %v1643_v14, %v1234_v62 }
 0x343   :  { %v1246_v40 = vmul.f32 %v1238_v59, %v2379_v38 }
 0x345   :  { %v1260_v56 = vmul.f32 %v2397_v19, %v1246_v40 }
 0x347   :  { %v1274_v54 = vadd.f32 %v2401_v25, %v1260_v56 }
 0x349   :  { %1282 = vst [vmem:[#allocation14 + $0x38] sm:$0xff] %v1274_v54 }
 0x34a   :  { %1295 = dma.vmem_to_hbm [thread:$0]  %s1288_s13, 1024, %s1290_s17, [#allocation4], %s1859_s4, %s1859_s4, %s1860_s15  }
 0x34b   :  { %1844 = dma.done.wait [#allocation4], 1024  }
 0x34c   :  { %1845 = vsyncadd [#allocation4], 4294966272 }
 0x34d   :  { %1300 = vsyncpa [#allocation3], 1 }
 0x34e   :  { %1301 = vsyncpa [#allocation6], 1 }
 0x34f   :  { %1302 = vsyncpa [#allocation9], 1 }
 0x350   :  { %1303 = vsyncpa [#allocation12], 1 }
 0x351   :  { %1304 = vsyncpa [#allocation4], 1 }

</bundles_post_ra>
